<compile_context>
chip_gen: v5e
topology: v5e:2x2
jax: 0.10.0
libtpu: 0.0.40
codegen_flags: <defaults>
</compile_context>

<pallas_src>
import functools

import numpy as np
import jax
import jax.numpy as jnp
from jax.experimental import pallas as pl
from jax.experimental.pallas import tpu as pltpu


# ------------------------- glue (filter / pad setup) -------------------------

def reflect(x, minx, maxx):
    """Exact copy of the numpy reflect() used by mypad (symmetric padding)."""
    x = np.asanyarray(x)
    rng = maxx - minx
    rng_by_2 = 2 * rng
    mod = np.fmod(x - minx, rng_by_2)
    normed_mod = np.where(mod < 0, mod + rng_by_2, mod)
    out = np.where(normed_mod >= rng, rng_by_2 - normed_mod, normed_mod) + minx
    return np.array(out, dtype=x.dtype)


def prep_filt_afb2d(h0_col, h1_col, h0_row=None, h1_row=None):
    """Mirror of torch prep_filt_afb2d: reverse filters, float32 1-D arrays."""
    h0_col = np.array(h0_col[::-1], dtype=np.float32).ravel()
    h1_col = np.array(h1_col[::-1], dtype=np.float32).ravel()
    h0_row = h0_col if h0_row is None else np.array(h0_row[::-1], dtype=np.float32).ravel()
    h1_row = h1_col if h1_row is None else np.array(h1_row[::-1], dtype=np.float32).ravel()
    return h0_col, h1_col, h0_row, h1_row


def _symmetric_pad_indices(l, m1, m2):
    """Only used by the numpy reference; the kernel pads in-VMEM."""
    return np.asarray(
        reflect(np.arange(-m1, l + m2, dtype='int32'), -0.5, l - 0.5),
        dtype=np.int32)


# ------------------------------- Pallas kernel -------------------------------

def _make_swt_kernel(h0_col, h1_col, h0_row, h1_row, H, W):
    L = int(h0_col.shape[0])
    assert L == 2, "kernel specialized to length-2 (db1) analysis filters"
    # taps are already reversed (correlation form, as torch conv2d expects)
    h0r0, h0r1 = float(h0_row[0]), float(h0_row[1])
    h1r0, h1r1 = float(h1_row[0]), float(h1_row[1])
    h0c0, h0c1 = float(h0_col[0]), float(h0_col[1])
    h1c0, h1c1 = float(h1_col[0]), float(h1_col[1])

    # Use the XLU rotate fast-path only when the rotated dim fills whole vreg
    # tiles; otherwise fall back to (proven) slice+concat edge replication.
    w_roll_ok = (W % 128 == 0)   # lane axis
    h_roll_ok = (H % 8 == 0)     # sublane axis

    def kernel(x_ref, out_ref):
        # x_ref block: (bn, bc, H, W) ; out_ref block: (bn, bc, 4, H, W)
        x = x_ref[...]                                          # (bn, bc, H, W) f32

        # Symmetric pad for db1 is (left/top, right/bottom) = (0, 1) and the
        # reflect index past the end is the last element -> the padded shift is
        # "shift toward lower index by one, replicating the last column/row".
        if w_roll_ok:
            last_w = jax.lax.broadcasted_iota(jnp.int32, x.shape, 3) == (W - 1)
        if h_roll_ok:
            last_h = jax.lax.broadcasted_iota(jnp.int32, x.shape, 2) == (H - 1)

        def shift_w(a):
            if w_roll_ok:
                # roll(shift=W-1) => out[i] = a[(i+1) mod W]; fix wrapped last col.
                return jnp.where(last_w, a, pltpu.roll(a, shift=W - 1, axis=3))
            return jnp.concatenate([a[:, :, :, 1:], a[:, :, :, W - 1:W]], axis=3)

        def shift_h(a):
            if h_roll_ok:
                return jnp.where(last_h, a, pltpu.roll(a, shift=H - 1, axis=2))
            return jnp.concatenate([a[:, :, 1:, :], a[:, :, H - 1:H, :]], axis=2)

        # Width (row) pass.
        x_next = shift_w(x)
        lo_r = x * h0r0 + x_next * h0r1
        hi_r = x * h1r0 + x_next * h1r1

        # Height (column) pass.
        lo_n = shift_h(lo_r)
        hi_n = shift_h(hi_r)

        # torch channel order for input channel c: 4c+0=ll, +1=lh, +2=hl, +3=hh
        out_ref[:, :, 0] = lo_r * h0c0 + lo_n * h0c1
        out_ref[:, :, 1] = lo_r * h1c0 + lo_n * h1c1
        out_ref[:, :, 2] = hi_r * h0c0 + hi_n * h0c1
        out_ref[:, :, 3] = hi_r * h1c0 + hi_n * h1c1

    return kernel


# ------------------------------- wrapper / call -------------------------------

@functools.lru_cache(maxsize=None)
def _vmem_capacity_bytes():
    try:
        cap = int(getattr(pltpu.get_tpu_info(), "vmem_capacity_bytes"))
        if cap > 0:
            return cap
    except Exception:
        pass
    return 64 * 1024 * 1024   # conservative fallback: v7x per-TensorCore VMEM


@functools.lru_cache(maxsize=None)
def _num_tensorcores():
    # 2 TensorCores per chip on v7x (and older v4/v5p megacore parts); 1 on v5e/v6e.
    try:
        kind = jax.devices()[0].device_kind.lower()
    except Exception:
        return 1
    return 2 if any(t in kind for t in ("v7", "v4", "v5p")) else 1


def _largest_divisor_leq(n, cap):
    d = int(max(1, min(n, cap)))
    while n % d:
        d -= 1
    return d


def _pick_block(N, C, H, W):
    """Choose (bn, bc) so a (bn, bc, H, W) block stays under the VMEM budget."""
    budget = (_vmem_capacity_bytes() * 9) // 16   # ~72 MiB v5e/v6e, ~36 MiB v7x
    # per-(n, c) plane f32 VMEM bill: 2x input (double-buffered) + 8x output
    # (4 bands, double-buffered) + ~10x in-kernel temporaries
    per_plane = 20 * H * W * 4
    max_planes = max(1, budget // per_plane)
    bc = _largest_divisor_leq(C, max_planes)
    bn = _largest_divisor_leq(N, max(1, max_planes // bc))
    # Only multi-TensorCore parts want >= 2 grid programs; split the batch axis
    # first so each core keeps a maximal channel block.
    if _num_tensorcores() >= 2 and (N // bn) * (C // bc) < 2:
        if N > 1:
            bn = _largest_divisor_leq(N, max(1, N // 2))
        elif C > 1:
            bc = _largest_divisor_leq(C, max(1, C // 2))
    return bn, bc


def afb2d_atrous_pallas(x, filts):
    """One SWT level (dilation=1, symmetric pad). x: (N,C,H,W) f32 -> (N,4C,H,W)."""
    h0_col, h1_col, h0_row, h1_row = filts
    x = x.astype(jnp.float32)
    N, C, H, W = x.shape
    bn, bc = _pick_block(N, C, H, W)

    kernel = _make_swt_kernel(h0_col, h1_col, h0_row, h1_row, H, W)
    vmem_limit = int((_vmem_capacity_bytes() * 3) // 4)   # ~96 MiB v5e/v6e, ~48 MiB v7x
    y5 = pl.pallas_call(
        kernel,
        out_shape=jax.ShapeDtypeStruct((N, C, 4, H, W), jnp.float32),
        grid=(N // bn, C // bc),
        in_specs=[pl.BlockSpec((bn, bc, H, W), lambda n, c: (n, c, 0, 0))],
        out_specs=pl.BlockSpec((bn, bc, 4, H, W), lambda n, c: (n, c, 0, 0, 0)),
        compiler_params=pltpu.CompilerParams(
            dimension_semantics=("parallel", "parallel"),
            vmem_limit_bytes=vmem_limit),
    )(x)
    # (N, C, 4, H, W) -> (N, 4C, H, W): adjacent-axis merge, free (no transpose)
    return y5.reshape(N, 4 * C, H, W)


# ------------------------------- module wrapper -------------------------------

class SWTForwardPallas:
    """Port of SWTForward (J levels of undecimated 2-D DWT, symmetric pad)."""

    def __init__(self, J=1, wave='db1', mode='symmetric'):
        assert mode == 'symmetric', "only 'symmetric' mode implemented"
        if wave == 'db1':
            # pywt 'db1' analysis filters (deterministic, no pywt dependency)
            s = 1.0 / np.sqrt(2.0)
            dec_lo = np.array([s, s], dtype=np.float32)
            dec_hi = np.array([-s, s], dtype=np.float32)
        else:
            # TODO(synk): other wavelets would need pywt coefficients; db1 only.
            raise ValueError('only db1 supported in this synthetic port')
        self.filts = prep_filt_afb2d(dec_lo, dec_hi, dec_lo, dec_hi)
        self.J = J

    def __call__(self, x):
        # Exact semantics of SWTForward.forward: the torch code never passes
        # dilation (every level uses dilation=1), and ll = y[:, 0:1] keeps only
        # channel 0's LL — reproduced faithfully, even for C > 1.
        ll = x
        coeffs = []
        for _ in range(self.J):
            y = afb2d_atrous_pallas(ll, self.filts)
            coeffs.append(y)
            ll = y[:, 0:1, :, :]
        return coeffs


# ------------------------------ numpy reference ------------------------------

def _reference_level(x_np, filts):
    h0_col, h1_col, h0_row, h1_row = filts
    N, C, H, W = x_np.shape
    L = int(h0_col.shape[0])
    L2 = L // 2
    xe_row = _symmetric_pad_indices(W, L2 - 1, L2)
    xe_col = _symmetric_pad_indices(H, L2 - 1, L2)
    xp = x_np[:, :, xe_col[:, None], xe_row[None, :]]
    lo = sum(xp[..., t:t + W] * h0_row[t] for t in range(L))
    hi = sum(xp[..., t:t + W] * h1_row[t] for t in range(L))

    def colf(a, h):
        return sum(a[..., t:t + H, :] * h[t] for t in range(L))

    ll, lh = colf(lo, h0_col), colf(lo, h1_col)
    hl, hh = colf(hi, h0_col), colf(hi, h1_col)
    return np.stack([ll, lh, hl, hh], axis=2).reshape(N, 4 * C, H, W)


# ----------------------------------- main ------------------------------------

if __name__ == "__main__":
    key = jax.random.PRNGKey(0)
    # 128x128 planes: still small, but lane-dense (W % 128 == 0) so the kernel
    # exercises the roll fast-path and unmasked full-vreg stores.
    N, C, H, W = 2, 4, 128, 128
    x = jax.random.normal(key, (N, C, H, W), dtype=jnp.float32)

    swt = SWTForwardPallas(J=2, wave='db1', mode='symmetric')
    coeffs = swt(x)
    coeffs = [jax.block_until_ready(c) for c in coeffs]

    # verify against a pure-numpy reference of the same math
    ll_ref = np.asarray(x, dtype=np.float32)
    for c in coeffs:
        ref = _reference_level(ll_ref, swt.filts)
        np.testing.assert_allclose(np.asarray(c), ref, rtol=1e-5, atol=1e-5)
        ll_ref = ref[:, 0:1]

    print("KERNEL_OK")
</pallas_src>

<mosaic_0001>
module attributes {stable_mosaic.version = 11 : i64} {
  func.func @kernel(%arg0: i32, %arg1: i32, %arg2: memref<2x4x128x128xf32, #tpu.memory_space<vmem>>, %arg3: memref<2x4x4x128x128xf32, #tpu.memory_space<vmem>>) attributes {dimension_semantics = [#tpu.dimension_semantics<parallel>, #tpu.dimension_semantics<parallel>], iteration_bounds = array<i64: 1, 1>, scalar_prefetch = 0 : i64, scratch_operands = 0 : i64, tpu.core_type = #tpu.core_type<tc>, window_params = [{transform_indices = @transform_0, window_bounds = array<i64: 2, 4, 128, 128>}, {transform_indices = @transform_1, window_bounds = array<i64: 2, 4, 4, 128, 128>}]} {
    %c0 = arith.constant 0 : index
    %c0_0 = arith.constant 0 : index
    %c0_1 = arith.constant 0 : index
    %c0_2 = arith.constant 0 : index
    %0 = vector.load %arg2[%c0, %c0_0, %c0_1, %c0_2] : memref<2x4x128x128xf32, #tpu.memory_space<vmem>>, vector<2x4x128x128xf32>
    %1 = tpu.iota {dimensions = array<i32: 3>} : vector<2x4x128x128xi32>
    %c127_i32 = arith.constant 127 : i32
    %2 = vector.broadcast %c127_i32 : i32 to vector<2x4x128x128xi32>
    %3 = arith.cmpi eq, %1, %2 : vector<2x4x128x128xi32>
    %4 = tpu.iota {dimensions = array<i32: 2>} : vector<2x4x128x128xi32>
    %c127_i32_3 = arith.constant 127 : i32
    %5 = vector.broadcast %c127_i32_3 : i32 to vector<2x4x128x128xi32>
    %6 = arith.cmpi eq, %4, %5 : vector<2x4x128x128xi32>
    %c127_i32_4 = arith.constant 127 : i32
    %7 = tpu.dynamic_rotate %0 by %c127_i32_4 dim 3 : vector<2x4x128x128xf32>, i32 -> vector<2x4x128x128xf32>
    %8 = arith.select %3, %0, %7 : vector<2x4x128x128xi1>, vector<2x4x128x128xf32>
    %cst = arith.constant 0.707106769 : f32
    %9 = vector.broadcast %cst : f32 to vector<2x4x128x128xf32>
    %10 = arith.mulf %0, %9 : vector<2x4x128x128xf32>
    %cst_5 = arith.constant 0.707106769 : f32
    %11 = vector.broadcast %cst_5 : f32 to vector<2x4x128x128xf32>
    %12 = arith.mulf %8, %11 : vector<2x4x128x128xf32>
    %13 = arith.addf %10, %12 : vector<2x4x128x128xf32>
    %cst_6 = arith.constant 0.707106769 : f32
    %14 = vector.broadcast %cst_6 : f32 to vector<2x4x128x128xf32>
    %15 = arith.mulf %0, %14 : vector<2x4x128x128xf32>
    %cst_7 = arith.constant -0.707106769 : f32
    %16 = vector.broadcast %cst_7 : f32 to vector<2x4x128x128xf32>
    %17 = arith.mulf %8, %16 : vector<2x4x128x128xf32>
    %18 = arith.addf %15, %17 : vector<2x4x128x128xf32>
    %c127_i32_8 = arith.constant 127 : i32
    %19 = tpu.dynamic_rotate %13 by %c127_i32_8 dim 2 : vector<2x4x128x128xf32>, i32 -> vector<2x4x128x128xf32>
    %20 = arith.select %6, %13, %19 : vector<2x4x128x128xi1>, vector<2x4x128x128xf32>
    %c127_i32_9 = arith.constant 127 : i32
    %21 = tpu.dynamic_rotate %18 by %c127_i32_9 dim 2 : vector<2x4x128x128xf32>, i32 -> vector<2x4x128x128xf32>
    %22 = arith.select %6, %18, %21 : vector<2x4x128x128xi1>, vector<2x4x128x128xf32>
    %cst_10 = arith.constant 0.707106769 : f32
    %23 = vector.broadcast %cst_10 : f32 to vector<2x4x128x128xf32>
    %24 = arith.mulf %13, %23 : vector<2x4x128x128xf32>
    %cst_11 = arith.constant 0.707106769 : f32
    %25 = vector.broadcast %cst_11 : f32 to vector<2x4x128x128xf32>
    %26 = arith.mulf %20, %25 : vector<2x4x128x128xf32>
    %27 = arith.addf %24, %26 : vector<2x4x128x128xf32>
    %c0_12 = arith.constant 0 : index
    %c0_13 = arith.constant 0 : index
    %c0_14 = arith.constant 0 : index
    %c0_15 = arith.constant 0 : index
    %c0_16 = arith.constant 0 : index
    %28 = vector.load %arg3[%c0_12, %c0_13, %c0_14, %c0_15, %c0_16] : memref<2x4x4x128x128xf32, #tpu.memory_space<vmem>>, vector<2x4x1x128x128xf32>
    %29 = vector.shape_cast %28 : vector<2x4x1x128x128xf32> to vector<2x4x128x128xf32>
    %30 = vector.shape_cast %27 : vector<2x4x128x128xf32> to vector<2x4x1x128x128xf32>
    tpu.vector_store %arg3[%c0_12, %c0_13, %c0_14, %c0_15, %c0_16], %30 {strides = array<i32>} : memref<2x4x4x128x128xf32, #tpu.memory_space<vmem>>, vector<2x4x1x128x128xf32>,
    %cst_17 = arith.constant 0.707106769 : f32
    %31 = vector.broadcast %cst_17 : f32 to vector<2x4x128x128xf32>
    %32 = arith.mulf %13, %31 : vector<2x4x128x128xf32>
    %cst_18 = arith.constant -0.707106769 : f32
    %33 = vector.broadcast %cst_18 : f32 to vector<2x4x128x128xf32>
    %34 = arith.mulf %20, %33 : vector<2x4x128x128xf32>
    %35 = arith.addf %32, %34 : vector<2x4x128x128xf32>
    %c0_19 = arith.constant 0 : index
    %c0_20 = arith.constant 0 : index
    %c1 = arith.constant 1 : index
    %c0_21 = arith.constant 0 : index
    %c0_22 = arith.constant 0 : index
    %36 = vector.load %arg3[%c0_19, %c0_20, %c1, %c0_21, %c0_22] : memref<2x4x4x128x128xf32, #tpu.memory_space<vmem>>, vector<2x4x1x128x128xf32>
    %37 = vector.shape_cast %36 : vector<2x4x1x128x128xf32> to vector<2x4x128x128xf32>
    %38 = vector.shape_cast %35 : vector<2x4x128x128xf32> to vector<2x4x1x128x128xf32>
    tpu.vector_store %arg3[%c0_19, %c0_20, %c1, %c0_21, %c0_22], %38 {strides = array<i32>} : memref<2x4x4x128x128xf32, #tpu.memory_space<vmem>>, vector<2x4x1x128x128xf32>,
    %cst_23 = arith.constant 0.707106769 : f32
    %39 = vector.broadcast %cst_23 : f32 to vector<2x4x128x128xf32>
    %40 = arith.mulf %18, %39 : vector<2x4x128x128xf32>
    %cst_24 = arith.constant 0.707106769 : f32
    %41 = vector.broadcast %cst_24 : f32 to vector<2x4x128x128xf32>
    %42 = arith.mulf %22, %41 : vector<2x4x128x128xf32>
    %43 = arith.addf %40, %42 : vector<2x4x128x128xf32>
    %c0_25 = arith.constant 0 : index
    %c0_26 = arith.constant 0 : index
    %c2 = arith.constant 2 : index
    %c0_27 = arith.constant 0 : index
    %c0_28 = arith.constant 0 : index
    %44 = vector.load %arg3[%c0_25, %c0_26, %c2, %c0_27, %c0_28] : memref<2x4x4x128x128xf32, #tpu.memory_space<vmem>>, vector<2x4x1x128x128xf32>
    %45 = vector.shape_cast %44 : vector<2x4x1x128x128xf32> to vector<2x4x128x128xf32>
    %46 = vector.shape_cast %43 : vector<2x4x128x128xf32> to vector<2x4x1x128x128xf32>
    tpu.vector_store %arg3[%c0_25, %c0_26, %c2, %c0_27, %c0_28], %46 {strides = array<i32>} : memref<2x4x4x128x128xf32, #tpu.memory_space<vmem>>, vector<2x4x1x128x128xf32>,
    %cst_29 = arith.constant 0.707106769 : f32
    %47 = vector.broadcast %cst_29 : f32 to vector<2x4x128x128xf32>
    %48 = arith.mulf %18, %47 : vector<2x4x128x128xf32>
    %cst_30 = arith.constant -0.707106769 : f32
    %49 = vector.broadcast %cst_30 : f32 to vector<2x4x128x128xf32>
    %50 = arith.mulf %22, %49 : vector<2x4x128x128xf32>
    %51 = arith.addf %48, %50 : vector<2x4x128x128xf32>
    %c0_31 = arith.constant 0 : index
    %c0_32 = arith.constant 0 : index
    %c3 = arith.constant 3 : index
    %c0_33 = arith.constant 0 : index
    %c0_34 = arith.constant 0 : index
    %52 = vector.load %arg3[%c0_31, %c0_32, %c3, %c0_33, %c0_34] : memref<2x4x4x128x128xf32, #tpu.memory_space<vmem>>, vector<2x4x1x128x128xf32>
    %53 = vector.shape_cast %52 : vector<2x4x1x128x128xf32> to vector<2x4x128x128xf32>
    %54 = vector.shape_cast %51 : vector<2x4x128x128xf32> to vector<2x4x1x128x128xf32>
    tpu.vector_store %arg3[%c0_31, %c0_32, %c3, %c0_33, %c0_34], %54 {strides = array<i32>} : memref<2x4x4x128x128xf32, #tpu.memory_space<vmem>>, vector<2x4x1x128x128xf32>,
    return
  }
  func.func @transform_0(%arg0: i32, %arg1: i32) -> (i32, i32, i32, i32) {
    %c0_i32 = arith.constant 0 : i32
    %c0_i32_0 = arith.constant 0 : i32
    %c0_i32_1 = arith.constant 0 : i32
    return %arg0, %arg1, %c0_i32, %c0_i32_0 : i32, i32, i32, i32
  }
  func.func @transform_1(%arg0: i32, %arg1: i32) -> (i32, i32, i32, i32, i32) {
    %c0_i32 = arith.constant 0 : i32
    %c0_i32_0 = arith.constant 0 : i32
    %c0_i32_1 = arith.constant 0 : i32
    %c0_i32_2 = arith.constant 0 : i32
    return %arg0, %arg1, %c0_i32, %c0_i32_0, %c0_i32_1 : i32, i32, i32, i32, i32
  }
}

</mosaic_0001>

<bundles_post_ra>
// kernel: tpu_custom_call.1
= control target key start
LH: loop header
LB: loop body
LE: loop exit
PB: predicated region body
PF: predicated region fallthrough
CT: control target
= control target key end

     0   :  { %6 = vsyncpa [#allocation3], 0  ;;  %s7163_s0 = inlined_call_operand.hbm [shape: f32[2,4,128,128], index: 0, kind: input, shape index: {}]   ;;  %s7164_s1 = inlined_call_operand.hbm [shape: f32[2,4,4,128,128], index: 1, kind: output, shape index: {}]  }
   0x1   :  { %7 = vsyncpa [#allocation4], 0  ;;  %s12_s8 = sshll.u32 %s7163_s0, 4  ;;  %s3962_s9 = smov [#allocation2]   ;;  %s13_s8 = int_to_ptr.hbm [resolvable:$true] %s12_s8 }
   0x2   :  { %s14_s10 = sshll.u32 %s3962_s9, 4  ;;  %s3963_s11 = smov 128   ;;  %s15_s10 = int_to_ptr.vmem [resolvable:$true] %s14_s10 }
   0x3   :  { %s3964_s12 = smov 8  }
   0x4   :  { %20 = dma.hbm_to_vmem [thread:$0]  %s13_s8, 16384, %s15_s10, [#allocation3], %s3963_s11, %s3963_s11, %s3964_s12  }
   0x5   :  { %3958 = dma.done.wait [#allocation3], 16384  }
   0x6   :  { %3959 = vsyncadd [#allocation3], 4294950912  ;;  %v3983_v0 = vld [vmem:[#allocation2 + $0x20] sm:$0xff]  ;;  %v3985_v1 = vld [vmem:[#allocation2 + $0x10] sm:$0xff]  ;;  %s3965_s13 = smov 127   ;;  %v153_v33 = vlaneseq  ;;  %s3966_s0 = smov [#allocation5]  }
   0x7   :  { %v3987_v2 = vld [vmem:[#allocation2] sm:$0xff]  ;;  %197 = vrot.lane.b32.xlu2 %v3983_v0, %s3965_s13  ;;  %193 = vrot.lane.b32.xlu1 %v3985_v1, %s3965_s13  ;;  %v3995_v3 = vld [vmem:[#allocation2 + $0x28] sm:$0xff]  ;;  %v3997_v4 = vld [vmem:[#allocation2 + $0x18] sm:$0xff]  ;;  %v577_v39 = vmul.f32 0.70710677, %v3983_v0  ;;  %s3781_s14 = sshll.u32 %s3966_s0, 4  ;;  %s3782_s14 = int_to_ptr.vmem [resolvable:$true] %s3781_s14 }
   0x8   :  { %189 = vrot.lane.b32.xlu0 %v3987_v2, %s3965_s13  ;;  %v3999_v5 = vld [vmem:[#allocation2 + $0x8] sm:$0xff]  ;;  %v4007_v6 = vld [vmem:[#allocation2 + $0x40] sm:$0xff]  ;;  %v4009_v7 = vld [vmem:[#allocation2 + $0x38] sm:$0xff]  ;;  %v4121_v37 = vand.u32 127, %v153_v33  ;;  %v4135_v41 = vmul.f32 0.70710677, %v3985_v1 }
   0x9   :  { %v4011_v8 = vld [vmem:[#allocation2 + $0x30] sm:$0xff]  ;;  %v4019_v9 = vld [vmem:[#allocation2 + $0x58] sm:$0xff]  ;;  %v4023_v11 = vld [vmem:[#allocation2 + $0x48] sm:$0xff]  ;;  %v4138_v42 = vmul.f32 0.70710677, %v3987_v2  ;;  %s3783_s17 = sshll.u32 %s7164_s1, 4  ;;  %s3784_s17 = int_to_ptr.hbm [resolvable:$true] %s3783_s17 }
   0xa   :  { %v4021_v10 = vld [vmem:[#allocation2 + $0x50] sm:$0xff]  ;;  %v4033_v13 = vld [vmem:[#allocation2 + $0x68] sm:$0xff]  ;;  %v4035_v14 = vld [vmem:[#allocation2 + $0x60] sm:$0xff]  ;;  %vm155_vm0 = vcmp.eq.s32.totalorder %v4121_v37, 127  ;;  %v578_v43 = vmul.f32 0.70710677, %v3995_v3 }
   0xb   :  { %v4031_v12 = vld [vmem:[#allocation2 + $0x70] sm:$0xff]  ;;  %7284 = vst [vmem:[#allocation8_spill] sm:$0xff] %v4035_v14  ;;  %v4043_v15 = vld [vmem:[#allocation2 + $0x88] sm:$0xff]  ;;  %v4045_v16 = vld [vmem:[#allocation2 + $0x80] sm:$0xff]  ;;  %v4142_v44 = vmul.f32 0.70710677, %v3997_v4 }
   0xc   :  { %7285 = vst [vmem:[#allocation9_spill] sm:$0xff] %v4045_v16  ;;  %v4047_v17 = vld [vmem:[#allocation2 + $0x78] sm:$0xff]  ;;  %v4055_v18 = vld [vmem:[#allocation2 + $0xa0] sm:$0xff]  ;;  %v4059_v20 = vld [vmem:[#allocation2 + $0x90] sm:$0xff]  ;;  %v4145_v45 = vmul.f32 0.70710677, %v3999_v5 }
   0xd   :  { %v4057_v19 = vld [vmem:[#allocation2 + $0x98] sm:$0xff]  ;;  %v4069_v22 = vld [vmem:[#allocation2 + $0xb0] sm:$0xff]  ;;  %v4071_v23 = vld [vmem:[#allocation2 + $0xa8] sm:$0xff]  ;;  %v4154_v51 = vmul.f32 0.70710677, %v4007_v6 }
   0xe   :  { %v4067_v21 = vld [vmem:[#allocation2 + $0xb8] sm:$0xff]  ;;  %v4079_v24 = vld [vmem:[#allocation2 + $0xd0] sm:$0xff]  ;;  %v4081_v25 = vld [vmem:[#allocation2 + $0xc8] sm:$0xff]  ;;  %v4157_v52 = vmul.f32 0.70710677, %v4009_v7 }
   0xf   :  { %199 = vrot.lane.b32.xlu2 %v3995_v3, %s3965_s13  ;;  %195 = vrot.lane.b32.xlu1 %v3997_v4, %s3965_s13  ;;  %7286 = vst [vmem:[#allocation10_spill] sm:$0xff] %v4067_v21  ;;  %v4083_v26 = vld [vmem:[#allocation2 + $0xc0] sm:$0xff]  ;;  %v4091_v27 = vld [vmem:[#allocation2 + $0xe8] sm:$0xff]  ;;  %v4095_v29 = vld [vmem:[#allocation2 + $0xd8] sm:$0xff]  ;;  %v4160_v53 = vmul.f32 0.70710677, %v4011_v8 }
  0x10   :  { %191 = vrot.lane.b32.xlu0 %v3999_v5, %s3965_s13  ;;  %v4093_v28 = vld [vmem:[#allocation2 + $0xe0] sm:$0xff]  ;;  %v4105_v31 = vld [vmem:[#allocation2 + $0xf8] sm:$0xff]  ;;  %v4107_v32 = vld [vmem:[#allocation2 + $0xf0] sm:$0xff]  ;;  %v4163_v54 = vmul.f32 0.70710677, %v4019_v9 }
  0x11   :  { %v4103_v30 = vld [vmem:[#allocation2 + $0x100] sm:$0xff]  ;;  %v4115_v34 = vld [vmem:[#allocation2 + $0x118] sm:$0xff]  ;;  %v4117_v35 = vld [vmem:[#allocation2 + $0x110] sm:$0xff]  ;;  %v4166_v55 = vmul.f32 0.70710677, %v4021_v10 }
  0x12   :  { %v4119_v36 = vld [vmem:[#allocation2 + $0x108] sm:$0xff]  ;;  %v4147_v46 = vld [vmem:[#allocation2 + $0x130] sm:$0xff]  ;;  %v4151_v50 = vld [vmem:[#allocation2 + $0x120] sm:$0xff]  ;;  %v4169_v56 = vmul.f32 0.70710677, %v4023_v11 }
  0x13   :  { %v4149_v47 = vld [vmem:[#allocation2 + $0x128] sm:$0xff]  ;;  %v4176_v57 = vmul.f32 0.70710677, %v4031_v12  ;;  %v4179_v58 = vmul.f32 0.70710677, %v4033_v13 }
  0x14   :  { %v4182_v59 = vmul.f32 0.70710677, %v4035_v14  ;;  %v4187_v60 = vmul.f32 0.70710677, %v4043_v15  ;;  %v4190_v61 = vmul.f32 0.70710677, %v4045_v16 }
  0x15   :  { %7287 = vst [vmem:[#allocation11_spill] sm:$0xff] %v4179_v58 }
  0x16   :  { %7288 = vst [vmem:[#allocation12_spill] sm:$0xff] %v4182_v59  ;;  %v4202_v59 = vshrl.u32 %v153_v33, 7  ;;  %v4233_v33 = vmul.f32 0.70710677, %v4081_v25 }
  0x17   :  { %205 = vrot.lane.b32.xlu2 %v4007_v6, %s3965_s13  ;;  %203 = vrot.lane.b32.xlu1 %v4009_v7, %s3965_s13  ;;  %7289 = vst [vmem:[#allocation13_spill] sm:$0xff] %v4190_v61 }
  0x18   :  { %201 = vrot.lane.b32.xlu0 %v4011_v8, %s3965_s13  ;;  %vm1341_vm1 = vcmp.lt.s32.totalorder %v4202_v59, 7  ;;  %7298 = vst [vmem:[#allocation22_spill] sm:$0xff] %v4233_v33 }
  0x1f   :  { %211 = vrot.lane.b32.xlu2 %v4019_v9, %s3965_s13  ;;  %209 = vrot.lane.b32.xlu1 %v4021_v10, %s3965_s13 }
  0x20   :  { %207 = vrot.lane.b32.xlu0 %v4023_v11, %s3965_s13 }
  0x27   :  { %217 = vrot.lane.b32.xlu2 %v4031_v12, %s3965_s13  ;;  %215 = vrot.lane.b32.xlu1 %v4033_v13, %s3965_s13 }
  0x28   :  { %213 = vrot.lane.b32.xlu0 %v4035_v14, %s3965_s13 }
  0x2f   :  { %223 = vrot.lane.b32.xlu2 %v4043_v15, %s3965_s13  ;;  %221 = vrot.lane.b32.xlu1 %v4045_v16, %s3965_s13  ;;  %v4208_v16 = vmul.f32 0.70710677, %v4057_v19 }
  0x30   :  { %219 = vrot.lane.b32.xlu0 %v4047_v17, %s3965_s13 }
  0x31   :  { %7292 = vst [vmem:[#allocation16_spill] sm:$0xff] %v4208_v16 }
  0x37   :  { %229 = vrot.lane.b32.xlu2 %v4055_v18, %s3965_s13  ;;  %227 = vrot.lane.b32.xlu1 %v4057_v19, %s3965_s13  ;;  %v64_v19 = vld [vmem:[#allocation2 + $0x138] sm:$0xff] }
  0x38   :  { %225 = vrot.lane.b32.xlu0 %v4059_v20, %s3965_s13 }
  0x3f   :  { %235 = vrot.lane.b32.xlu2 %v4067_v21, %s3965_s13  ;;  %233 = vrot.lane.b32.xlu1 %v4069_v22, %s3965_s13 }
  0x40   :  { %231 = vrot.lane.b32.xlu0 %v4071_v23, %s3965_s13 }
  0x47   :  { %241 = vrot.lane.b32.xlu2 %v4079_v24, %s3965_s13  ;;  %239 = vrot.lane.b32.xlu1 %v4081_v25, %s3965_s13  ;;  %v4249_v25 = vmul.f32 0.70710677, %v4093_v28 }
  0x48   :  { %237 = vrot.lane.b32.xlu0 %v4083_v26, %s3965_s13 }
  0x49   :  { %7301 = vst [vmem:[#allocation25_spill] sm:$0xff] %v4249_v25  ;;  %v4267_v25 = vmul.f32 0.70710677, %v4103_v30 }
  0x4b   :  { %7305 = vst [vmem:[#allocation27_spill] sm:$0xff] %v4267_v25 }
  0x4f   :  { %247 = vrot.lane.b32.xlu2 %v4091_v27, %s3965_s13  ;;  %245 = vrot.lane.b32.xlu1 %v4093_v28, %s3965_s13  ;;  %v4264_v28 = vmul.f32 0.70710677, %v4095_v29 }
  0x50   :  { %243 = vrot.lane.b32.xlu0 %v4095_v29, %s3965_s13 }
  0x51   :  { %7304 = vst [vmem:[#allocation26_spill] sm:$0xff] %v4264_v28  ;;  %v4423_v28 = vld [vmem:[#allocation2 + $0x1a0] sm:$0xff] }
  0x57   :  { %253 = vrot.lane.b32.xlu2 %v4103_v30, %s3965_s13  ;;  %251 = vrot.lane.b32.xlu1 %v4105_v31, %s3965_s13 }
  0x58   :  { %249 = vrot.lane.b32.xlu0 %v4107_v32, %s3965_s13 }
  0x5f   :  { %259 = vrot.lane.b32.xlu2 %v4115_v34, %s3965_s13  ;;  %257 = vrot.lane.b32.xlu1 %v4117_v35, %s3965_s13 }
  0x60   :  { %255 = vrot.lane.b32.xlu0 %v4119_v36, %s3965_s13 }
  0x61   :  { %v198_v38 = vpop.permute.xlu2 %197 }
  0x62   :  { %v449_v40 = vsel %vm155_vm0, %v3983_v0, %v198_v38  ;;  %v4197_v38 = vmul.f32 0.70710677, %v4047_v17  ;;  %v4214_v17 = vmul.f32 0.70710677, %v4067_v21  ;;  %v68_v21 = vld [vmem:[#allocation2 + $0x158] sm:$0xff] }
  0x63   :  { %v705_v48 = vmul.f32 0.70710677, %v449_v40  ;;  %v961_v49 = vmul.f32 -0.70710677, %v449_v40  ;;  %v4200_v40 = vmul.f32 0.70710677, %v4055_v18 }
  0x64   :  { %7290 = vst [vmem:[#allocation14_spill] sm:$0xff] %v4197_v38  ;;  %v65_v38 = vld [vmem:[#allocation2 + $0x140] sm:$0xff] }
  0x65   :  { %v4192_v62 = vadd.f32 %v705_v48, %v577_v39  ;;  %v4194_v63 = vadd.f32 %v961_v49, %v577_v39  ;;  %7291 = vst [vmem:[#allocation15_spill] sm:$0xff] %v4200_v40  ;;  %v4211_v39 = vmul.f32 0.70710677, %v4059_v20  ;;  %v66_v49 = vld [vmem:[#allocation2 + $0x148] sm:$0xff]  ;;  %v4226_v20 = vmul.f32 0.70710677, %v4071_v23 }
  0x66   :  { %7294 = vst [vmem:[#allocation18_spill] sm:$0xff] %v4214_v17  ;;  %v69_v17 = vld [vmem:[#allocation2 + $0x160] sm:$0xff] }
  0x67   :  { %265 = vrot.lane.b32.xlu2 %v4147_v46, %s3965_s13  ;;  %263 = vrot.lane.b32.xlu1 %v4149_v47, %s3965_s13  ;;  %7293 = vst [vmem:[#allocation17_spill] sm:$0xff] %v4211_v39  ;;  %v1986_v23 = vmul.f32 0.70710677, %v4192_v62  ;;  %v7302_v40 = vrot.slane %v4192_v62, 1 }
  0x68   :  { %261 = vrot.lane.b32.xlu0 %v4151_v50, %s3965_s13  ;;  %7296 = vst [vmem:[#allocation20_spill] sm:$0xff] %v4226_v20 }
  0x69   :  { %v200_v0 = vpop.permute.xlu2 %199 }
  0x6a   :  { %v450_v58 = vsel %vm155_vm0, %v3995_v3, %v200_v0  ;;  %v4223_v0 = vmul.f32 0.70710677, %v4069_v22  ;;  %v4240_v22 = vmul.f32 0.70710677, %v4083_v26 }
  0x6b   :  { %v706_v48 = vmul.f32 0.70710677, %v450_v58  ;;  %v962_v61 = vmul.f32 -0.70710677, %v450_v58  ;;  %v4230_v58 = vmul.f32 0.70710677, %v4079_v24 }
  0x6c   :  { %7295 = vst [vmem:[#allocation19_spill] sm:$0xff] %v4223_v0  ;;  %v4246_v24 = vmul.f32 0.70710677, %v4091_v27 }
  0x6d   :  { %v4218_v14 = vadd.f32 %v706_v48, %v578_v43  ;;  %v4220_v3 = vadd.f32 %v962_v61, %v578_v43  ;;  %7297 = vst [vmem:[#allocation21_spill] sm:$0xff] %v4230_v58  ;;  %v2883_v61 = vmul.f32 0.70710677, %v4194_v63 }
  0x6e   :  { %7299 = vst [vmem:[#allocation23_spill] sm:$0xff] %v4240_v22  ;;  %v7303_v22 = vrot.slane %v4194_v63, 1 }
  0x6f   :  { %v7179_v48 = vrot.slane %v4218_v14, 1  ;;  %v7184_v43 = vrot.slane %v4220_v3, 1  ;;  %271 = vrot.lane.b32.xlu2 %v66_v49, %s3965_s13  ;;  %269 = vrot.lane.b32.xlu1 %v65_v38, %s3965_s13  ;;  %7300 = vst [vmem:[#allocation24_spill] sm:$0xff] %v4246_v24 }
  0x70   :  { %267 = vrot.lane.b32.xlu0 %v64_v19, %s3965_s13 }
  0x71   :  { %v1422_v26 = vsel %vm1341_vm1, %v7302_v40, %v7179_v48  ;;  %v1806_v33 = vsel %vm1341_vm1, %v7303_v22, %v7184_v43  ;;  %v206_v20 = vpop.permute.xlu2 %205  ;;  %v4270_v40 = vmul.f32 0.70710677, %v4105_v31  ;;  %v4273_v22 = vmul.f32 0.70710677, %v4107_v32 }
  0x72   :  { %v2114_v27 = vmul.f32 0.70710677, %v1422_v26  ;;  %v2498_v0 = vmul.f32 -0.70710677, %v1422_v26  ;;  %v3011_v24 = vmul.f32 0.70710677, %v1806_v33  ;;  %v453_v30 = vsel %vm155_vm0, %v4007_v6, %v206_v20 }
  0x73   :  { %v3396_v39 = vmul.f32 -0.70710677, %v1806_v33  ;;  %7306 = vst [vmem:[#allocation28_spill] sm:$0xff] %v4270_v40  ;;  %v4276_v26 = vmul.f32 0.70710677, %v4115_v34  ;;  %v67_v33 = vld [vmem:[#allocation2 + $0x150] sm:$0xff] }
  0x74   :  { %v2242_v48 = vadd.f32 %v2114_v27, %v1986_v23  ;;  %v2626_v16 = vadd.f32 %v2498_v0, %v1986_v23  ;;  %v3139_v58 = vadd.f32 %v3011_v24, %v2883_v61  ;;  %7307 = vst [vmem:[#allocation29_spill] sm:$0xff] %v4273_v22  ;;  %v4282_v31 = vmul.f32 0.70710677, %v4117_v35 }
  0x75   :  { %7308 = vst [vmem:[#allocation30_spill] sm:$0xff] %v4276_v26  ;;  %v3524_v29 = vadd.f32 %v3396_v39, %v2883_v61  ;;  %v4285_v0 = vmul.f32 0.70710677, %v4119_v36  ;;  %v4288_v23 = vmul.f32 0.70710677, %v4147_v46  ;;  %v4425_v26 = vld [vmem:[#allocation2 + $0x198] sm:$0xff] }
  0x76   :  { %7309 = vst [vmem:[#allocation31_spill] sm:$0xff] %v4282_v31  ;;  %v4291_v32 = vmul.f32 0.70710677, %v4149_v47  ;;  %v709_v6 = vmul.f32 0.70710677, %v453_v30 }
  0x77   :  { %7310 = vst [vmem:[#allocation32_spill] sm:$0xff] %v4285_v0  ;;  %277 = vrot.lane.b32.xlu2 %v69_v17, %s3965_s13  ;;  %275 = vrot.lane.b32.xlu1 %v68_v21, %s3965_s13  ;;  %v965_v34 = vmul.f32 -0.70710677, %v453_v30  ;;  %v4297_v35 = vmul.f32 0.70710677, %v4151_v50  ;;  %v4415_v0 = vld [vmem:[#allocation2 + $0x1a8] sm:$0xff] }
  0x78   :  { %2370 = vst [vmem:[#allocation5 + $0x20] sm:$0xff] %v2242_v48  ;;  %273 = vrot.lane.b32.xlu0 %v67_v33, %s3965_s13  ;;  %v4299_v36 = vmul.f32 0.70710677, %v66_v49  ;;  %v4301_v47 = vmul.f32 0.70710677, %v65_v38  ;;  %v72_v49 = vld [vmem:[#allocation2 + $0x178] sm:$0xff] }
  0x79   :  { %7311 = vst [vmem:[#allocation33_spill] sm:$0xff] %v4288_v23  ;;  %v212_v46 = vpop.permute.xlu2 %211  ;;  %v194_v39 = vpop.permute.xlu1 %193  ;;  %v4311_v50 = vmul.f32 0.70710677, %v69_v17  ;;  %v4313_v61 = vmul.f32 0.70710677, %v68_v21  ;;  %v4322_v24 = vadd.f32 %v965_v34, %v4154_v51  ;;  %v70_v17 = vld [vmem:[#allocation2 + $0x168] sm:$0xff] }
  0x7a   :  { %7312 = vst [vmem:[#allocation34_spill] sm:$0xff] %v4291_v32  ;;  %v456_v20 = vsel %vm155_vm0, %v4019_v9, %v212_v46  ;;  %v190_v48 = vpop.permute.xlu0 %189  ;;  %v4324_v9 = vmul.f32 0.70710677, %v67_v33  ;;  %v4326_v27 = vmul.f32 0.70710677, %v72_v49 }
  0x7b   :  { %2755 = vst [vmem:[#allocation5 + $0xa0] sm:$0xff] %v2626_v16  ;;  %v4303_v16 = vmul.f32 0.70710677, %v64_v19  ;;  %v445_v38 = vsel %vm155_vm0, %v3987_v2, %v190_v48  ;;  %v4319_v19 = vadd.f32 %v709_v6, %v4154_v51  ;;  %v968_v46 = vmul.f32 -0.70710677, %v456_v20 }
  0x7c   :  { %3268 = vst [vmem:[#allocation5 + $0x120] sm:$0xff] %v3139_v58  ;;  %v447_v58 = vsel %vm155_vm0, %v3985_v1, %v194_v39  ;;  %v71_v1 = vld [vmem:[#allocation2 + $0x170] sm:$0xff]  ;;  %v701_v39 = vmul.f32 0.70710677, %v445_v38  ;;  %v957_v43 = vmul.f32 -0.70710677, %v445_v38 }
  0x7d   :  { %7313 = vst [vmem:[#allocation35_spill] sm:$0xff] %v4297_v35  ;;  %v703_v21 = vmul.f32 0.70710677, %v447_v58  ;;  %v959_v30 = vmul.f32 -0.70710677, %v447_v58  ;;  %v4357_v34 = vadd.f32 %v968_v46, %v4163_v54 }
  0x7e   :  { %3653 = vst [vmem:[#allocation5 + $0x1a0] sm:$0xff] %v3524_v29  ;;  %v712_v29 = vmul.f32 0.70710677, %v456_v20  ;;  %v4329_v2 = vmul.f32 0.70710677, %v4218_v14  ;;  %v4360_v20 = vadd.f32 %v701_v39, %v4138_v42 }
  0x7f   :  { %7314 = vst [vmem:[#allocation36_spill] sm:$0xff] %v4299_v36  ;;  %283 = vrot.lane.b32.xlu2 %v72_v49, %s3965_s13  ;;  %v4332_v6 = vmul.f32 0.70710677, %v71_v1  ;;  %281 = vrot.lane.b32.xlu1 %v71_v1, %s3965_s13  ;;  %v4335_v51 = vmul.f32 0.70710677, %v70_v17  ;;  %v831_v49 = vadd.f32 %v703_v21, %v4135_v41  ;;  %v4354_v1 = vadd.f32 %v959_v30, %v4135_v41  ;;  %v74_v21 = vld [vmem:[#allocation2 + $0x188] sm:$0xff] }
  0x80   :  { %7315 = vst [vmem:[#allocation37_spill] sm:$0xff] %v4301_v47  ;;  %v4338_v33 = vmul.f32 0.70710677, %v4220_v3  ;;  %v4343_v58 = vmul.f32 0.70710677, %v4319_v19  ;;  %279 = vrot.lane.b32.xlu0 %v70_v17, %s3965_s13  ;;  %v4350_v38 = vadd.f32 %v712_v29, %v4163_v54  ;;  %v4363_v17 = vadd.f32 %v957_v43, %v4138_v42  ;;  %v73_v47 = vld [vmem:[#allocation2 + $0x180] sm:$0xff] }
  0x81   :  { %7316 = vst [vmem:[#allocation38_spill] sm:$0xff] %v4303_v16  ;;  %v4347_v48 = vmul.f32 0.70710677, %v4322_v24 }
  0x82   :  { %7317 = vst [vmem:[#allocation39_spill] sm:$0xff] %v4311_v50  ;;  %v4369_v41 = vmul.f32 0.70710677, %v4350_v38  ;;  %v1984_v50 = vmul.f32 0.70710677, %v831_v49 }
  0x83   :  { %7318 = vst [vmem:[#allocation40_spill] sm:$0xff] %v4313_v61  ;;  %v4377_v61 = vmul.f32 0.70710677, %v4357_v34 }
  0x84   :  { %7319 = vst [vmem:[#allocation41_spill] sm:$0xff] %v4324_v9  ;;  %v75_v9 = vld [vmem:[#allocation2 + $0x190] sm:$0xff] }
  0x85   :  { %7320 = vst [vmem:[#allocation42_spill] sm:$0xff] %v4326_v27  ;;  %v4374_v46 = vmul.f32 0.70710677, %v75_v9  ;;  %v218_v27 = vpop.permute.xlu2 %217 }
  0x86   :  { %7321 = vst [vmem:[#allocation43_spill] sm:$0xff] %v4332_v6  ;;  %v192_v6 = vpop.permute.xlu0 %191 }
  0x87   :  { %7322 = vst [vmem:[#allocation44_spill] sm:$0xff] %v4335_v51  ;;  %v196_v51 = vpop.permute.xlu1 %195  ;;  %v446_v54 = vsel %vm155_vm0, %v3999_v5, %v192_v6  ;;  %v2881_v6 = vmul.f32 0.70710677, %v4354_v1  ;;  %289 = vrot.lane.b32.xlu2 %v75_v9, %s3965_s13  ;;  %287 = vrot.lane.b32.xlu1 %v74_v21, %s3965_s13  ;;  %v7328_v9 = vrot.slane %v4192_v62, 1 }
  0x88   :  { %7323 = vst [vmem:[#allocation45_spill] sm:$0xff] %v4360_v20  ;;  %v448_v29 = vsel %vm155_vm0, %v3997_v4, %v196_v51  ;;  %v702_v42 = vmul.f32 0.70710677, %v446_v54  ;;  %v958_v43 = vmul.f32 -0.70710677, %v446_v54  ;;  %v1229_v4 = vrot.slane %v831_v49, 1  ;;  %285 = vrot.lane.b32.xlu0 %v73_v47, %s3965_s13 }
  0x89   :  { %7324 = vst [vmem:[#allocation46_spill] sm:$0xff] %v4369_v41  ;;  %v704_v30 = vmul.f32 0.70710677, %v448_v29  ;;  %v960_v39 = vmul.f32 -0.70710677, %v448_v29  ;;  %v1614_v51 = vrot.slane %v4354_v1, 1 }
  0x8a   :  { %7325 = vst [vmem:[#allocation47_spill] sm:$0xff] %v4374_v46  ;;  %v830_v32 = vadd.f32 %v702_v42, %v4145_v45  ;;  %v1086_v5 = vadd.f32 %v958_v43, %v4145_v45  ;;  %v4388_v46 = vmul.f32 0.70710677, %v4360_v20  ;;  %v4398_v45 = vsel %vm155_vm0, %v4031_v12, %v218_v27 }
  0x8b   :  { %7326 = vst [vmem:[#allocation48_spill] sm:$0xff] %v4377_v61  ;;  %v832_v16 = vadd.f32 %v704_v30, %v4142_v44  ;;  %v1088_v35 = vadd.f32 %v960_v39, %v4142_v44  ;;  %v4393_v44 = vmul.f32 0.70710677, %v4363_v17  ;;  %v4401_v43 = vmul.f32 0.70710677, %v74_v21 }
  0x8c   :  { %v1221_v39 = vrot.slane %v830_v32, 1  ;;  %v1606_v42 = vrot.slane %v1086_v5, 1  ;;  %v7329_v12 = vrot.slane %v4194_v63, 1  ;;  %v4430_v41 = vmul.f32 0.70710677, %v4398_v45 }
  0x8d   :  { %v1237_v49 = vrot.slane %v832_v16, 1  ;;  %v1622_v1 = vrot.slane %v1088_v35, 1  ;;  %v1985_v30 = vmul.f32 0.70710677, %v832_v16  ;;  %7327 = vst [vmem:[#allocation49_spill] sm:$0xff] %v4401_v43 }
  0x8e   :  { %v1446_v62 = vsel %vm1341_vm1, %v1221_v39, %v1229_v4  ;;  %v2882_v25 = vmul.f32 0.70710677, %v1088_v35 }
  0x8f   :  { %v1430_v54 = vsel %vm1341_vm1, %v1237_v49, %v7328_v9  ;;  %v1438_v29 = vsel %vm1341_vm1, %v1229_v4, %v1237_v49  ;;  %v1814_v27 = vsel %vm1341_vm1, %v1622_v1, %v7329_v12  ;;  %v1822_v16 = vsel %vm1341_vm1, %v1614_v51, %v1622_v1  ;;  %295 = vrot.lane.b32.xlu2 %v4415_v0, %s3965_s13 }
  0x90   :  { %v2112_v21 = vmul.f32 0.70710677, %v1438_v29  ;;  %v2113_v43 = vmul.f32 0.70710677, %v1430_v54  ;;  %v2496_v31 = vmul.f32 -0.70710677, %v1438_v29  ;;  %293 = vrot.lane.b32.xlu1 %v4423_v28, %s3965_s13  ;;  %291 = vrot.lane.b32.xlu0 %v4425_v26, %s3965_s13 }
  0x91   :  { %v2497_v9 = vmul.f32 -0.70710677, %v1430_v54  ;;  %v3009_v36 = vmul.f32 0.70710677, %v1822_v16  ;;  %v3010_v22 = vmul.f32 0.70710677, %v1814_v27  ;;  %v204_v54 = vpop.permute.xlu1 %203 }
  0x92   :  { %v7330_v49 = vrot.slane %v4360_v20, 1  ;;  %v2240_v12 = vadd.f32 %v2112_v21, %v1984_v50  ;;  %v2241_v40 = vadd.f32 %v2113_v43, %v1985_v30  ;;  %v2624_v23 = vadd.f32 %v2496_v31, %v1984_v50  ;;  %v202_v21 = vpop.permute.xlu0 %201 }
  0x93   :  { %v3394_v1 = vmul.f32 -0.70710677, %v1822_v16  ;;  %v2625_v29 = vadd.f32 %v2497_v9, %v1985_v30  ;;  %v3395_v61 = vmul.f32 -0.70710677, %v1814_v27  ;;  %v4427_v4 = vmul.f32 0.70710677, %v73_v47 }
  0x94   :  { %v1454_v63 = vsel %vm1341_vm1, %v7330_v49, %v1221_v39  ;;  %2368 = vst [vmem:[#allocation5 + $0x10] sm:$0xff] %v2240_v12  ;;  %v3137_v20 = vadd.f32 %v3009_v36, %v2881_v6  ;;  %v7331_v39 = vrot.slane %v4363_v17, 1  ;;  %v3138_v35 = vadd.f32 %v3010_v22, %v2882_v25  ;;  %v224_v12 = vpop.permute.xlu2 %223 }
  0x95   :  { %v2110_v50 = vmul.f32 0.70710677, %v1454_v63  ;;  %2369 = vst [vmem:[#allocation5 + $0x18] sm:$0xff] %v2241_v40  ;;  %v1830_v47 = vsel %vm1341_vm1, %v1606_v42, %v1614_v51  ;;  %v1983_v30 = vmul.f32 0.70710677, %v830_v32  ;;  %v3522_v36 = vadd.f32 %v3394_v1, %v2881_v6 }
  0x96   :  { %v1838_v31 = vsel %vm1341_vm1, %v7331_v39, %v1606_v42  ;;  %v2111_v43 = vmul.f32 0.70710677, %v1446_v62  ;;  %2753 = vst [vmem:[#allocation5 + $0x90] sm:$0xff] %v2624_v23  ;;  %v2494_v27 = vmul.f32 -0.70710677, %v1454_v63  ;;  %v452_v40 = vsel %vm155_vm0, %v4009_v7, %v204_v54  ;;  %v4450_v7 = vld [vmem:[#allocation2 + $0x1c0] sm:$0xff] }
  0x97   :  { %v2880_v16 = vmul.f32 0.70710677, %v1086_v5  ;;  %v1301_v22 = vrot.slane %v4350_v38, 1  ;;  %2754 = vst [vmem:[#allocation5 + $0x98] sm:$0xff] %v2625_v29  ;;  %v3523_v51 = vadd.f32 %v3395_v61, %v2882_v25  ;;  %v2495_v32 = vmul.f32 -0.70710677, %v1446_v62  ;;  %301 = vrot.lane.b32.xlu2 %v4450_v7, %s3965_s13 }
  0x98   :  { %v3007_v42 = vmul.f32 0.70710677, %v1838_v31  ;;  %v1686_v9 = vrot.slane %v4357_v34, 1  ;;  %3266 = vst [vmem:[#allocation5 + $0x110] sm:$0xff] %v3137_v20  ;;  %v2238_v49 = vadd.f32 %v2110_v50, %v4388_v46  ;;  %v3008_v23 = vmul.f32 0.70710677, %v1830_v47 }
  0x99   :  { %v3392_v6 = vmul.f32 -0.70710677, %v1838_v31  ;;  %3267 = vst [vmem:[#allocation5 + $0x118] sm:$0xff] %v3138_v35  ;;  %v2239_v5 = vadd.f32 %v2111_v43, %v1983_v30  ;;  %v3393_v63 = vmul.f32 -0.70710677, %v1830_v47  ;;  %v2622_v25 = vadd.f32 %v2494_v27, %v4388_v46  ;;  %v4459_v29 = vld [vmem:[#allocation2 + $0x1b8] sm:$0xff] }
  0x9a   :  { %v708_v1 = vmul.f32 0.70710677, %v452_v40  ;;  %3651 = vst [vmem:[#allocation5 + $0x190] sm:$0xff] %v3522_v36  ;;  %v462_v61 = vsel %vm155_vm0, %v4043_v15, %v224_v12  ;;  %v964_v62 = vmul.f32 -0.70710677, %v452_v40  ;;  %v451_v20 = vsel %vm155_vm0, %v4011_v8, %v202_v21  ;;  %v4461_v54 = vld [vmem:[#allocation2 + $0x1b0] sm:$0xff]  ;;  %299 = vrot.lane.b32.xlu1 %v4459_v29, %s3965_s13 }
  0x9b   :  { %3652 = vst [vmem:[#allocation5 + $0x198] sm:$0xff] %v3523_v51  ;;  %v2623_v39 = vadd.f32 %v2495_v32, %v1983_v30  ;;  %v707_v50 = vmul.f32 0.70710677, %v451_v20  ;;  %v963_v35 = vmul.f32 -0.70710677, %v451_v20  ;;  %v3135_v15 = vadd.f32 %v3007_v42, %v4393_v44  ;;  %297 = vrot.lane.b32.xlu0 %v4461_v54, %s3965_s13 }
  0x9c   :  { %v836_v31 = vadd.f32 %v708_v1, %v4157_v52  ;;  %v971_v46 = vmul.f32 -0.70710677, %v4398_v45  ;;  %2366 = vst [vmem:[#allocation5] sm:$0xff] %v2238_v49  ;;  %v3136_v47 = vadd.f32 %v3008_v23, %v2880_v16  ;;  %v1092_v43 = vadd.f32 %v964_v62, %v4157_v52 }
  0x9d   :  { %2367 = vst [vmem:[#allocation5 + $0x8] sm:$0xff] %v2239_v5  ;;  %v3520_v8 = vadd.f32 %v3392_v6, %v4393_v44  ;;  %v4470_v36 = vmul.f32 0.70710677, %v462_v61  ;;  %v835_v27 = vadd.f32 %v707_v50, %v4160_v53  ;;  %v3521_v45 = vadd.f32 %v3393_v63, %v2880_v16 }
  0x9e   :  { %v1269_v30 = vrot.slane %v836_v31, 1  ;;  %2751 = vst [vmem:[#allocation5 + $0x80] sm:$0xff] %v2622_v25  ;;  %v1654_v52 = vrot.slane %v1092_v43, 1  ;;  %v1989_v40 = vmul.f32 0.70710677, %v836_v31  ;;  %v1091_v51 = vadd.f32 %v963_v35, %v4160_v53 }
  0x9f   :  { %2752 = vst [vmem:[#allocation5 + $0x88] sm:$0xff] %v2623_v39  ;;  %v7332_v44 = vrot.slane %v4319_v19, 1  ;;  %v2886_v42 = vmul.f32 0.70710677, %v1092_v43  ;;  %v1261_v21 = vrot.slane %v835_v27, 1  ;;  %v7333_v23 = vrot.slane %v4322_v24, 1 }
  0xa0   :  { %v1988_v49 = vmul.f32 0.70710677, %v835_v27  ;;  %3264 = vst [vmem:[#allocation5 + $0x100] sm:$0xff] %v3135_v15  ;;  %v1646_v63 = vrot.slane %v1091_v51, 1  ;;  %v7334_v25 = vrot.slane %v4218_v14, 1  ;;  %v7335_v50 = vrot.slane %v4220_v3, 1  ;;  %v210_v14 = vpop.permute.xlu1 %209  ;;  %v208_v3 = vpop.permute.xlu0 %207 }
  0xa1   :  { %v1398_v32 = vsel %vm1341_vm1, %v1269_v30, %v7332_v44  ;;  %v1782_v6 = vsel %vm1341_vm1, %v1654_v52, %v7333_v23  ;;  %3265 = vst [vmem:[#allocation5 + $0x108] sm:$0xff] %v3136_v47  ;;  %v1406_v1 = vsel %vm1341_vm1, %v1261_v21, %v1269_v30  ;;  %v4500_v27 = vadd.f32 %v4430_v41, %v4176_v57  ;;  %v4510_v41 = vld [vmem:[#allocation2 + $0x1d8] sm:$0xff] }
  0xa2   :  { %v2117_v16 = vmul.f32 0.70710677, %v1398_v32  ;;  %v2501_v5 = vmul.f32 -0.70710677, %v1398_v32  ;;  %v3014_v53 = vmul.f32 0.70710677, %v1782_v6  ;;  %v1414_v62 = vsel %vm1341_vm1, %v7334_v25, %v1261_v21  ;;  %307 = vrot.lane.b32.xlu2 %v4510_v41, %s3965_s13 }
  0xa3   :  { %v3399_v12 = vmul.f32 -0.70710677, %v1782_v6  ;;  %3649 = vst [vmem:[#allocation5 + $0x180] sm:$0xff] %v3520_v8  ;;  %v1790_v31 = vsel %vm1341_vm1, %v1646_v63, %v1654_v52  ;;  %v1798_v35 = vsel %vm1341_vm1, %v7335_v50, %v1646_v63  ;;  %v2115_v43 = vmul.f32 0.70710677, %v1414_v62 }
  0xa4   :  { %v2245_v20 = vadd.f32 %v2117_v16, %v1989_v40  ;;  %v2629_v39 = vadd.f32 %v2501_v5, %v1989_v40  ;;  %3650 = vst [vmem:[#allocation5 + $0x188] sm:$0xff] %v3521_v45  ;;  %v3142_v15 = vadd.f32 %v3014_v53, %v2886_v42  ;;  %v2116_v30 = vmul.f32 0.70710677, %v1406_v1 }
  0xa5   :  { %v3527_v47 = vadd.f32 %v3399_v12, %v2886_v42  ;;  %v4503_v8 = vadd.f32 %v971_v46, %v4176_v57  ;;  %v2499_v52 = vmul.f32 -0.70710677, %v1414_v62  ;;  %v2500_v40 = vmul.f32 -0.70710677, %v1406_v1 }
  0xa6   :  { %2373 = vst [vmem:[#allocation5 + $0x38] sm:$0xff] %v2245_v20  ;;  %v974_v44 = vmul.f32 -0.70710677, %v462_v61  ;;  %v2243_v45 = vadd.f32 %v2115_v43, %v4329_v2  ;;  %v2244_v32 = vadd.f32 %v2116_v30, %v1988_v49  ;;  %v3012_v42 = vmul.f32 0.70710677, %v1798_v35  ;;  %v230_v43 = vpop.permute.xlu2 %229 }
  0xa7   :  { %2758 = vst [vmem:[#allocation5 + $0xb8] sm:$0xff] %v2629_v39  ;;  %v2627_v21 = vadd.f32 %v2499_v52, %v4329_v2  ;;  %v3013_v23 = vmul.f32 0.70710677, %v1790_v31  ;;  %v3397_v6 = vmul.f32 -0.70710677, %v1798_v35  ;;  %v455_v57 = vsel %vm155_vm0, %v4021_v10, %v210_v14  ;;  %v4517_v2 = vld [vmem:[#allocation2 + $0x1d0] sm:$0xff] }
  0xa8   :  { %3271 = vst [vmem:[#allocation5 + $0x138] sm:$0xff] %v3142_v15  ;;  %v2628_v46 = vadd.f32 %v2500_v40, %v1988_v49  ;;  %v2885_v16 = vmul.f32 0.70710677, %v1091_v51  ;;  %v3398_v61 = vmul.f32 -0.70710677, %v1790_v31  ;;  %v454_v5 = vsel %vm155_vm0, %v4023_v11, %v208_v3  ;;  %305 = vrot.lane.b32.xlu1 %v4517_v2, %s3965_s13  ;;  %v4528_v51 = vld [vmem:[#allocation2 + $0x1c8] sm:$0xff] }
  0xa9   :  { %3656 = vst [vmem:[#allocation5 + $0x1b8] sm:$0xff] %v3527_v47  ;;  %v4520_v63 = vmul.f32 0.70710677, %v4500_v27  ;;  %v4523_v10 = vmul.f32 0.70710677, %v4503_v8  ;;  %v3140_v49 = vadd.f32 %v3012_v42, %v4338_v33  ;;  %v4532_v11 = vadd.f32 %v4470_v36, %v4187_v60  ;;  %303 = vrot.lane.b32.xlu0 %v4528_v51, %s3965_s13 }
  0xaa   :  { %2371 = vst [vmem:[#allocation5 + $0x28] sm:$0xff] %v2243_v45  ;;  %v3141_v53 = vadd.f32 %v3013_v23, %v2885_v16  ;;  %v711_v12 = vmul.f32 0.70710677, %v455_v57  ;;  %v967_v1 = vmul.f32 -0.70710677, %v455_v57  ;;  %v4537_v25 = vadd.f32 %v974_v44, %v4187_v60 }
  0xab   :  { %2372 = vst [vmem:[#allocation5 + $0x30] sm:$0xff] %v2244_v32  ;;  %v3525_v62 = vadd.f32 %v3397_v6, %v4338_v33  ;;  %v710_v20 = vmul.f32 0.70710677, %v454_v5  ;;  %v966_v39 = vmul.f32 -0.70710677, %v454_v5  ;;  %v3526_v36 = vadd.f32 %v3398_v61, %v2885_v16 }
  0xac   :  { %2756 = vst [vmem:[#allocation5 + $0xa8] sm:$0xff] %v2627_v21  ;;  %v4541_v31 = vmul.f32 0.70710677, %v4532_v11  ;;  %v839_v50 = vadd.f32 %v711_v12, %v4166_v55  ;;  %v1095_v35 = vadd.f32 %v967_v1, %v4166_v55  ;;  %v4546_v15 = vmul.f32 0.70710677, %v4537_v25  ;;  %v216_v1 = vpop.permute.xlu1 %215 }
  0xad   :  { %2757 = vst [vmem:[#allocation5 + $0xb0] sm:$0xff] %v2628_v46  ;;  %v4549_v60 = vmul.f32 0.70710677, %v4415_v0  ;;  %v838_v33 = vadd.f32 %v710_v20, %v4169_v56  ;;  %v4553_v47 = vmul.f32 0.70710677, %v4423_v28  ;;  %v1094_v52 = vadd.f32 %v966_v39, %v4169_v56 }
  0xae   :  { %3269 = vst [vmem:[#allocation5 + $0x128] sm:$0xff] %v3140_v49  ;;  %v1293_v30 = vrot.slane %v839_v50, 1  ;;  %v1678_v14 = vrot.slane %v1095_v35, 1  ;;  %v465_v55 = vsel %vm155_vm0, %v4055_v18, %v230_v43  ;;  %v1992_v40 = vmul.f32 0.70710677, %v839_v50 }
  0xaf   :  { %3270 = vst [vmem:[#allocation5 + $0x130] sm:$0xff] %v3141_v53  ;;  %v2889_v3 = vmul.f32 0.70710677, %v1095_v35  ;;  %v1285_v0 = vrot.slane %v838_v33, 1  ;;  %v1670_v56 = vrot.slane %v1094_v52, 1  ;;  %v7336_v6 = vrot.slane %v4319_v19, 1 }
  0xb0   :  { %3654 = vst [vmem:[#allocation5 + $0x1a8] sm:$0xff] %v3525_v62  ;;  %v1374_v28 = vsel %vm1341_vm1, %v1293_v30, %v1301_v22  ;;  %v1758_v44 = vsel %vm1341_vm1, %v1678_v14, %v1686_v9  ;;  %v1991_v45 = vmul.f32 0.70710677, %v838_v33  ;;  %v7337_v16 = vrot.slane %v4322_v24, 1 }
  0xb1   :  { %3655 = vst [vmem:[#allocation5 + $0x1b0] sm:$0xff] %v3526_v36  ;;  %v2120_v32 = vmul.f32 0.70710677, %v1374_v28  ;;  %v2504_v42 = vmul.f32 -0.70710677, %v1374_v28  ;;  %v1382_v18 = vsel %vm1341_vm1, %v1285_v0, %v1293_v30  ;;  %v1390_v57 = vsel %vm1341_vm1, %v7336_v6, %v1285_v0  ;;  %v214_v36 = vpop.permute.xlu0 %213  ;;  %v4591_v0 = vld [vmem:[#allocation2 + $0x1e0] sm:$0xff] }
  0xb2   :  { %v3017_v21 = vmul.f32 0.70710677, %v1758_v44  ;;  %v3402_v23 = vmul.f32 -0.70710677, %v1758_v44  ;;  %v1766_v46 = vsel %vm1341_vm1, %v1670_v56, %v1678_v14  ;;  %v1774_v61 = vsel %vm1341_vm1, %v7337_v16, %v1670_v56  ;;  %v7338_v56 = vld [vmem:[#allocation8_spill] sm:$0xff]  ;;  %309 = vrot.lane.b32.xlu0 %v4591_v0, %s3965_s13 }
  0xb3   :  { %v2248_v5 = vadd.f32 %v2120_v32, %v1992_v40  ;;  %v2632_v49 = vadd.f32 %v2504_v42, %v1992_v40  ;;  %v2118_v12 = vmul.f32 0.70710677, %v1390_v57  ;;  %v2119_v20 = vmul.f32 0.70710677, %v1382_v18  ;;  %v4587_v40 = vld [vmem:[#allocation2 + $0x1f0] sm:$0xff] }
  0xb4   :  { %v3145_v53 = vadd.f32 %v3017_v21, %v2889_v3  ;;  %v3530_v62 = vadd.f32 %v3402_v23, %v2889_v3  ;;  %v2502_v39 = vmul.f32 -0.70710677, %v1390_v57  ;;  %v2503_v19 = vmul.f32 -0.70710677, %v1382_v18  ;;  %v4589_v3 = vld [vmem:[#allocation2 + $0x1e8] sm:$0xff]  ;;  %313 = vrot.lane.b32.xlu2 %v4587_v40, %s3965_s13 }
  0xb5   :  { %v1325_v50 = vrot.slane %v4500_v27, 1  ;;  %v4581_v35 = vmul.f32 0.70710677, %v4425_v26  ;;  %2376 = vst [vmem:[#allocation5 + $0x50] sm:$0xff] %v2248_v5  ;;  %v2246_v24 = vadd.f32 %v2118_v12, %v4343_v58  ;;  %v3015_v33 = vmul.f32 0.70710677, %v1774_v61  ;;  %311 = vrot.lane.b32.xlu1 %v4589_v3, %s3965_s13 }
  0xb6   :  { %2761 = vst [vmem:[#allocation5 + $0xd0] sm:$0xff] %v2632_v49  ;;  %v2247_v43 = vadd.f32 %v2119_v20, %v1991_v45  ;;  %v3016_v30 = vmul.f32 0.70710677, %v1766_v46  ;;  %v458_v14 = vsel %vm155_vm0, %v4033_v13, %v216_v1  ;;  %v721_v28 = vmul.f32 0.70710677, %v465_v55 }
  0xb7   :  { %3274 = vst [vmem:[#allocation5 + $0x150] sm:$0xff] %v3145_v53  ;;  %v2630_v26 = vadd.f32 %v2502_v39, %v4343_v58  ;;  %v3400_v44 = vmul.f32 -0.70710677, %v1774_v61  ;;  %v457_v32 = vsel %vm155_vm0, %v7338_v56, %v214_v36  ;;  %v1710_v13 = vrot.slane %v4503_v8, 1  ;;  %v7339_v53 = vld [vmem:[#allocation15_spill] sm:$0xff]  ;;  %v7341_v39 = vld [vmem:[#allocation12_spill] sm:$0xff] }
  0xb8   :  { %3659 = vst [vmem:[#allocation5 + $0x1d0] sm:$0xff] %v3530_v62  ;;  %v2631_v42 = vadd.f32 %v2503_v19, %v1991_v45  ;;  %v2888_v21 = vmul.f32 0.70710677, %v1094_v52  ;;  %v3401_v18 = vmul.f32 -0.70710677, %v1766_v46  ;;  %v7212_v58 = vrot.slane %v4532_v11, 1 }
  0xb9   :  { %v977_v23 = vmul.f32 -0.70710677, %v465_v55  ;;  %2374 = vst [vmem:[#allocation5 + $0x40] sm:$0xff] %v2246_v24  ;;  %v3143_v6 = vadd.f32 %v3015_v33, %v4347_v48  ;;  %v714_v57 = vmul.f32 0.70710677, %v458_v14  ;;  %v7211_v16 = vrot.slane %v4537_v25, 1 }
  0xba   :  { %2375 = vst [vmem:[#allocation5 + $0x48] sm:$0xff] %v2247_v43  ;;  %v3144_v61 = vadd.f32 %v3016_v30, %v2888_v21  ;;  %v970_v5 = vmul.f32 -0.70710677, %v458_v14  ;;  %v713_v49 = vmul.f32 0.70710677, %v457_v32  ;;  %v4608_v45 = vadd.f32 %v721_v28, %v7339_v53  ;;  %v7340_v46 = vld [vmem:[#allocation11_spill] sm:$0xff] }
  0xbb   :  { %2759 = vst [vmem:[#allocation5 + $0xc0] sm:$0xff] %v2630_v26  ;;  %v3528_v52 = vadd.f32 %v3400_v44, %v4347_v48  ;;  %v842_v12 = vadd.f32 %v714_v57, %v7340_v46  ;;  %v969_v1 = vmul.f32 -0.70710677, %v457_v32  ;;  %v3529_v55 = vadd.f32 %v3401_v18, %v2888_v21 }
  0xbc   :  { %2760 = vst [vmem:[#allocation5 + $0xc8] sm:$0xff] %v2631_v42  ;;  %v4613_v62 = vmul.f32 0.70710677, %v4450_v7  ;;  %v1098_v20 = vadd.f32 %v970_v5, %v7340_v46  ;;  %v841_v19 = vadd.f32 %v713_v49, %v7341_v39  ;;  %v4618_v36 = vmul.f32 0.70710677, %v4608_v45  ;;  %v236_v7 = vpop.permute.xlu2 %235 }
  0xbd   :  { %3272 = vst [vmem:[#allocation5 + $0x140] sm:$0xff] %v3143_v6  ;;  %v4621_v24 = vmul.f32 0.70710677, %v4459_v29  ;;  %v1317_v48 = vrot.slane %v842_v12, 1  ;;  %v1097_v33 = vadd.f32 %v969_v1, %v7341_v39  ;;  %v1995_v30 = vmul.f32 0.70710677, %v842_v12 }
  0xbe   :  { %3273 = vst [vmem:[#allocation5 + $0x148] sm:$0xff] %v3144_v61  ;;  %v1702_v43 = vrot.slane %v1098_v20, 1  ;;  %v2892_v14 = vmul.f32 0.70710677, %v1098_v20  ;;  %v1309_v26 = vrot.slane %v841_v19, 1  ;;  %v4629_v29 = vadd.f32 %v977_v23, %v7339_v53  ;;  %v7342_v20 = vld [vmem:[#allocation10_spill] sm:$0xff] }
  0xbf   :  { %3657 = vst [vmem:[#allocation5 + $0x1c0] sm:$0xff] %v3528_v52  ;;  %v1350_v28 = vsel %vm1341_vm1, %v1317_v48, %v1325_v50  ;;  %v1694_v44 = vrot.slane %v1097_v33, 1  ;;  %v1994_v56 = vmul.f32 0.70710677, %v841_v19  ;;  %v7213_v38 = vrot.slane %v4608_v45, 1 }
  0xc0   :  { %3658 = vst [vmem:[#allocation5 + $0x1c8] sm:$0xff] %v3529_v55  ;;  %v1734_v32 = vsel %vm1341_vm1, %v1702_v43, %v1710_v13  ;;  %v2123_v42 = vmul.f32 0.70710677, %v1350_v28  ;;  %v2507_v21 = vmul.f32 -0.70710677, %v1350_v28  ;;  %v1358_v57 = vsel %vm1341_vm1, %v1309_v26, %v1317_v48  ;;  %v222_v55 = vpop.permute.xlu1 %221  ;;  %v220_v48 = vpop.permute.xlu0 %219 }
  0xc1   :  { %v3020_v18 = vmul.f32 0.70710677, %v1734_v32  ;;  %v3405_v6 = vmul.f32 -0.70710677, %v1734_v32  ;;  %v1366_v61 = vsel %vm1341_vm1, %v1301_v22, %v1309_v26  ;;  %v1742_v49 = vsel %vm1341_vm1, %v1694_v44, %v1702_v43  ;;  %v7344_v32 = vld [vmem:[#allocation9_spill] sm:$0xff] }
  0xc2   :  { %v2251_v23 = vadd.f32 %v2123_v42, %v1995_v30  ;;  %v2635_v5 = vadd.f32 %v2507_v21, %v1995_v30  ;;  %v1750_v53 = vsel %vm1341_vm1, %v1686_v9, %v1694_v44  ;;  %v2121_v12 = vmul.f32 0.70710677, %v1366_v61  ;;  %v7343_v9 = vld [vmem:[#allocation46_spill] sm:$0xff] }
  0xc3   :  { %v3148_v52 = vadd.f32 %v3020_v18, %v2892_v14  ;;  %v3533_v46 = vadd.f32 %v3405_v6, %v2892_v14  ;;  %v2122_v1 = vmul.f32 0.70710677, %v1358_v57  ;;  %v468_v22 = vsel %vm155_vm0, %v7342_v20, %v236_v7  ;;  %v3801_v6 = vld [vmem:[#allocation2 + $0x78] sm:$0xff] }
  0xc4   :  { %2379 = vst [vmem:[#allocation5 + $0x68] sm:$0xff] %v2251_v23  ;;  %v2505_v39 = vmul.f32 -0.70710677, %v1366_v61  ;;  %v2506_v19 = vmul.f32 -0.70710677, %v1358_v57  ;;  %v2249_v43 = vadd.f32 %v2121_v12, %v7343_v9  ;;  %v461_v7 = vsel %vm155_vm0, %v7344_v32, %v222_v55  ;;  %v4661_v61 = vld [vmem:[#allocation2 + $0x208] sm:$0xff] }
  0xc5   :  { %v4652_v34 = vmul.f32 0.70710677, %v4629_v29  ;;  %2764 = vst [vmem:[#allocation5 + $0xe8] sm:$0xff] %v2635_v5  ;;  %v2250_v30 = vadd.f32 %v2122_v1, %v1994_v56  ;;  %v3018_v14 = vmul.f32 0.70710677, %v1750_v53  ;;  %v460_v57 = vsel %vm155_vm0, %v3801_v6, %v220_v48  ;;  %319 = vrot.lane.b32.xlu2 %v4661_v61, %s3965_s13  ;;  %v4674_v55 = vld [vmem:[#allocation2 + $0x1f8] sm:$0xff] }
  0xc6   :  { %3277 = vst [vmem:[#allocation5 + $0x168] sm:$0xff] %v3148_v52  ;;  %v2633_v28 = vadd.f32 %v2505_v39, %v7343_v9  ;;  %v3019_v26 = vmul.f32 0.70710677, %v1742_v49  ;;  %v3403_v44 = vmul.f32 -0.70710677, %v1750_v53  ;;  %v2634_v42 = vadd.f32 %v2506_v19, %v1994_v56  ;;  %v7345_v52 = vld [vmem:[#allocation48_spill] sm:$0xff]  ;;  %315 = vrot.lane.b32.xlu0 %v4674_v55, %s3965_s13 }
  0xc7   :  { %3662 = vst [vmem:[#allocation5 + $0x1e8] sm:$0xff] %v3533_v46  ;;  %v2891_v21 = vmul.f32 0.70710677, %v1097_v33  ;;  %v3404_v18 = vmul.f32 -0.70710677, %v1742_v49  ;;  %v3146_v12 = vadd.f32 %v3018_v14, %v7345_v52  ;;  %v4666_v53 = vld [vmem:[#allocation2 + $0x200] sm:$0xff]  ;;  %v242_v49 = vpop.permute.xlu2 %241 }
  0xc8   :  { %v724_v23 = vmul.f32 0.70710677, %v468_v22  ;;  %v980_v5 = vmul.f32 -0.70710677, %v468_v22  ;;  %2377 = vst [vmem:[#allocation5 + $0x58] sm:$0xff] %v2249_v43  ;;  %v7214_v56 = vrot.slane %v4629_v29, 1  ;;  %317 = vrot.lane.b32.xlu1 %v4666_v53, %s3965_s13  ;;  %v3531_v20 = vadd.f32 %v3403_v44, %v7345_v52 }
  0xc9   :  { %2378 = vst [vmem:[#allocation5 + $0x60] sm:$0xff] %v2250_v30  ;;  %v3147_v33 = vadd.f32 %v3019_v26, %v2891_v21  ;;  %v717_v46 = vmul.f32 0.70710677, %v461_v7  ;;  %v4670_v1 = vadd.s32 120, %v4202_v59  ;;  %v3802_v22 = vld [vmem:[#allocation2 + $0xd0] sm:$0xff]  ;;  %v3532_v43 = vadd.f32 %v3404_v18, %v2891_v21  ;;  %v7347_v30 = vld [vmem:[#allocation13_spill] sm:$0xff] }
  0xca   :  { %2762 = vst [vmem:[#allocation5 + $0xd8] sm:$0xff] %v2633_v28  ;;  %v471_v39 = vsel %vm155_vm0, %v3802_v22, %v242_v49  ;;  %v973_v19 = vmul.f32 -0.70710677, %v461_v7  ;;  %v716_v48 = vmul.f32 0.70710677, %v460_v57  ;;  %v7348_v26 = vld [vmem:[#allocation18_spill] sm:$0xff] }
  0xcb   :  { %v4682_v9 = vmul.f32 0.70710677, %v4461_v54  ;;  %2763 = vst [vmem:[#allocation5 + $0xe0] sm:$0xff] %v2634_v42  ;;  %v4685_v14 = vadd.f32 %v717_v46, %v7347_v30  ;;  %v972_v28 = vmul.f32 -0.70710677, %v460_v57  ;;  %v4688_v44 = vadd.f32 %v724_v23, %v7348_v26  ;;  %v7349_v6 = vld [vmem:[#allocation14_spill] sm:$0xff] }
  0xcc   :  { %3275 = vst [vmem:[#allocation5 + $0x158] sm:$0xff] %v3146_v12  ;;  %v4691_v32 = vmul.f32 0.70710677, %v4510_v41  ;;  %v4694_v7 = vadd.f32 %v973_v19, %v7347_v30  ;;  %v844_v52 = vadd.f32 %v716_v48, %v7349_v6  ;;  %v4697_v54 = vmul.f32 0.70710677, %v471_v39  ;;  %v7350_v30 = vld [vmem:[#allocation45_spill] sm:$0xff] }
  0xcd   :  { %7346 = vst [vmem:[#allocation8_spill] sm:$0xff] %v4682_v9  ;;  %v7209_v42 = vrot.slane %v4685_v14, 1  ;;  %vm188_vm2 = vcmp.eq.s32.totalorder %v4670_v1, 127  ;;  %v1100_v21 = vadd.f32 %v972_v28, %v7349_v6  ;;  %v4703_v18 = vadd.f32 %v980_v5, %v7348_v26  ;;  %v3898_v1 = vld [vmem:[#allocation2 + $0x388] sm:$0xff] }
  0xce   :  { %3276 = vst [vmem:[#allocation5 + $0x160] sm:$0xff] %v3147_v33  ;;  %v4705_v41 = vmul.f32 -0.70710677, %v471_v39  ;;  %v7210_v57 = vrot.slane %v4694_v7, 1  ;;  %v1998_v23 = vmul.f32 0.70710677, %v4685_v14 }
  0xcf   :  { %3660 = vst [vmem:[#allocation5 + $0x1d8] sm:$0xff] %v3531_v20  ;;  %v1455_v12 = vsel %vm1341_vm1, %v7209_v42, %v7212_v58  ;;  %v2895_v33 = vmul.f32 0.70710677, %v4694_v7  ;;  %v1333_v49 = vrot.slane %v844_v52, 1  ;;  %v1718_v5 = vrot.slane %v1100_v21, 1 }
  0xd0   :  { %3661 = vst [vmem:[#allocation5 + $0x1e0] sm:$0xff] %v3532_v43  ;;  %v1839_v46 = vsel %vm1341_vm1, %v7210_v57, %v7211_v16  ;;  %v2126_v20 = vmul.f32 0.70710677, %v1455_v12  ;;  %v2510_v22 = vmul.f32 -0.70710677, %v1455_v12  ;;  %v7351_v28 = vrot.slane %v7350_v30, 1 }
  0xd1   :  { %v1997_v39 = vmul.f32 0.70710677, %v844_v52  ;;  %v3023_v19 = vmul.f32 0.70710677, %v1839_v46  ;;  %v3408_v48 = vmul.f32 -0.70710677, %v1839_v46  ;;  %v1342_v43 = vsel %vm1341_vm1, %v1325_v50, %v1333_v49  ;;  %v228_v46 = vpop.permute.xlu1 %227 }
  0xd2   :  { %v1462_v26 = vsel %vm1341_vm1, %v1333_v49, %v7351_v28  ;;  %v2254_v6 = vadd.f32 %v2126_v20, %v1998_v23  ;;  %v2638_v42 = vadd.f32 %v2510_v22, %v1998_v23  ;;  %v1726_v12 = vsel %vm1341_vm1, %v1710_v13, %v1718_v5  ;;  %v226_v20 = vpop.permute.xlu0 %225 }
  0xd3   :  { %v1485_v57 = vsel %vm188_vm2, %v844_v52, %v1462_v26  ;;  %v3151_v27 = vadd.f32 %v3023_v19, %v2895_v33  ;;  %v3536_v16 = vadd.f32 %v3408_v48, %v2895_v33  ;;  %v7352_v50 = vrot.slane %v4363_v17, 1  ;;  %v3803_v19 = vld [vmem:[#allocation2 + $0x98] sm:$0xff] }
  0xd4   :  { %v2124_v58 = vmul.f32 0.70710677, %v1342_v43  ;;  %2382 = vst [vmem:[#allocation5 + $0x200] sm:$0xff] %v2254_v6  ;;  %v2125_v23 = vmul.f32 0.70710677, %v1485_v57  ;;  %v464_v17 = vsel %vm155_vm0, %v3803_v19, %v228_v46 }
  0xd5   :  { %v1846_v30 = vsel %vm1341_vm1, %v1718_v5, %v7352_v50  ;;  %v2508_v8 = vmul.f32 -0.70710677, %v1342_v43  ;;  %2767 = vst [vmem:[#allocation5 + $0x280] sm:$0xff] %v2638_v42  ;;  %v2509_v22 = vmul.f32 -0.70710677, %v1485_v57  ;;  %v4749_v42 = vld [vmem:[#allocation2 + $0x220] sm:$0xff] }
  0xd6   :  { %v1869_v52 = vsel %vm188_vm2, %v1100_v21, %v1846_v30  ;;  %v2252_v13 = vadd.f32 %v2124_v58, %v4520_v63  ;;  %v3021_v33 = vmul.f32 0.70710677, %v1726_v12  ;;  %3280 = vst [vmem:[#allocation5 + $0x300] sm:$0xff] %v3151_v27  ;;  %v2253_v5 = vadd.f32 %v2125_v23, %v1997_v39  ;;  %v3804_v30 = vld [vmem:[#allocation2 + $0x90] sm:$0xff]  ;;  %325 = vrot.lane.b32.xlu2 %v4749_v42, %s3965_s13  ;;  %v3805_v27 = vld [vmem:[#allocation2 + $0xe8] sm:$0xff] }
  0xd7   :  { %v2636_v48 = vadd.f32 %v2508_v8, %v4520_v63  ;;  %v3022_v28 = vmul.f32 0.70710677, %v1869_v52  ;;  %v3406_v26 = vmul.f32 -0.70710677, %v1726_v12  ;;  %3665 = vst [vmem:[#allocation5 + $0x380] sm:$0xff] %v3536_v16  ;;  %v2637_v6 = vadd.f32 %v2509_v22, %v1997_v39  ;;  %v248_v12 = vpop.permute.xlu2 %247  ;;  %v4760_v16 = vld [vmem:[#allocation2 + $0x218] sm:$0xff] }
  0xd8   :  { %v2894_v50 = vmul.f32 0.70710677, %v1100_v21  ;;  %v3407_v43 = vmul.f32 -0.70710677, %v1869_v52  ;;  %v463_v58 = vsel %vm155_vm0, %v3804_v30, %v226_v20  ;;  %v4752_v57 = vmul.f32 0.70710677, %v4688_v44  ;;  %323 = vrot.lane.b32.xlu1 %v4760_v16, %s3965_s13 }
  0xd9   :  { %v4755_v46 = vmul.f32 0.70710677, %v4703_v18  ;;  %2380 = vst [vmem:[#allocation5 + $0x70] sm:$0xff] %v2252_v13  ;;  %v3149_v63 = vadd.f32 %v3021_v33, %v4523_v10  ;;  %v4763_v21 = vmul.f32 0.70710677, %v4517_v2  ;;  %v474_v52 = vsel %vm155_vm0, %v3805_v27, %v248_v12  ;;  %v4769_v8 = vld [vmem:[#allocation2 + $0x210] sm:$0xff] }
  0xda   :  { %2381 = vst [vmem:[#allocation5 + $0x78] sm:$0xff] %v2253_v5  ;;  %v3150_v39 = vadd.f32 %v3022_v28, %v2894_v50  ;;  %v720_v23 = vmul.f32 0.70710677, %v464_v17  ;;  %v7354_v20 = vld [vmem:[#allocation21_spill] sm:$0xff]  ;;  %v3534_v2 = vadd.f32 %v3406_v26, %v4523_v10  ;;  %v976_v22 = vmul.f32 -0.70710677, %v464_v17  ;;  %321 = vrot.lane.b32.xlu0 %v4769_v8, %s3965_s13 }
  0xdb   :  { %7353 = vst [vmem:[#allocation15_spill] sm:$0xff] %v4763_v21  ;;  %v4773_v13 = vadd.f32 %v4697_v54, %v7354_v20  ;;  %v719_v33 = vmul.f32 0.70710677, %v463_v58  ;;  %v4780_v19 = vadd.f32 %v4705_v41, %v7354_v20  ;;  %v3535_v5 = vadd.f32 %v3407_v43, %v2894_v50  ;;  %v7355_v28 = vld [vmem:[#allocation16_spill] sm:$0xff] }
  0xdc   :  { %2765 = vst [vmem:[#allocation5 + $0xf0] sm:$0xff] %v2636_v48  ;;  %v848_v30 = vadd.f32 %v720_v23, %v7355_v28  ;;  %v975_v12 = vmul.f32 -0.70710677, %v463_v58  ;;  %v4784_v54 = vmul.f32 0.70710677, %v4528_v51  ;;  %v1104_v17 = vadd.f32 %v976_v22, %v7355_v28  ;;  %v7357_v48 = vld [vmem:[#allocation17_spill] sm:$0xff] }
  0xdd   :  { %2766 = vst [vmem:[#allocation5 + $0xf8] sm:$0xff] %v2637_v6  ;;  %v4787_v10 = vmul.f32 0.70710677, %v4587_v40  ;;  %v847_v26 = vadd.f32 %v719_v33, %v7357_v48  ;;  %v4792_v27 = vmul.f32 0.70710677, %v4773_v13 }
  0xde   :  { %7356 = vst [vmem:[#allocation11_spill] sm:$0xff] %v4784_v54  ;;  %v4795_v41 = vmul.f32 0.70710677, %v4780_v19  ;;  %v1238_v6 = vrot.slane %v848_v30, 1  ;;  %v1103_v50 = vadd.f32 %v975_v12, %v7357_v48  ;;  %v730_v51 = vmul.f32 0.70710677, %v474_v52 }
  0xdf   :  { %3278 = vst [vmem:[#allocation5 + $0x170] sm:$0xff] %v3149_v63  ;;  %v1623_v43 = vrot.slane %v1104_v17, 1  ;;  %v2001_v58 = vmul.f32 0.70710677, %v848_v30  ;;  %v2898_v63 = vmul.f32 0.70710677, %v1104_v17 }
  0xe0   :  { %3279 = vst [vmem:[#allocation5 + $0x178] sm:$0xff] %v3150_v39  ;;  %v1431_v40 = vsel %vm1341_vm1, %v1238_v6, %v7213_v38  ;;  %v1230_v23 = vrot.slane %v847_v26, 1  ;;  %v1615_v20 = vrot.slane %v1103_v50, 1  ;;  %v7358_v30 = vrot.slane %v4532_v11, 1 }
  0xe1   :  { %3663 = vst [vmem:[#allocation5 + $0x1f0] sm:$0xff] %v3534_v2  ;;  %v1815_v39 = vsel %vm1341_vm1, %v1623_v43, %v7214_v56  ;;  %v2129_v22 = vmul.f32 0.70710677, %v1431_v40  ;;  %v2513_v33 = vmul.f32 -0.70710677, %v1431_v40  ;;  %v7359_v56 = vrot.slane %v4537_v25, 1 }
  0xe2   :  { %3664 = vst [vmem:[#allocation5 + $0x1f8] sm:$0xff] %v3535_v5  ;;  %v2000_v2 = vmul.f32 0.70710677, %v847_v26  ;;  %v3026_v28 = vmul.f32 0.70710677, %v1815_v39  ;;  %v1439_v5 = vsel %vm1341_vm1, %v1230_v23, %v1238_v6  ;;  %v1447_v17 = vsel %vm1341_vm1, %v7358_v30, %v1230_v23  ;;  %v234_v6 = vpop.permute.xlu1 %233 }
  0xe3   :  { %v3411_v12 = vmul.f32 -0.70710677, %v1815_v39  ;;  %v2257_v48 = vadd.f32 %v2129_v22, %v2001_v58  ;;  %v2641_v38 = vadd.f32 %v2513_v33, %v2001_v58  ;;  %v1823_v49 = vsel %vm1341_vm1, %v1615_v20, %v1623_v43  ;;  %v232_v22 = vpop.permute.xlu0 %231 }
  0xe4   :  { %v1831_v26 = vsel %vm1341_vm1, %v7359_v56, %v1615_v20  ;;  %v3154_v40 = vadd.f32 %v3026_v28, %v2898_v63  ;;  %v2127_v54 = vmul.f32 0.70710677, %v1447_v17  ;;  %v2128_v21 = vmul.f32 0.70710677, %v1439_v5  ;;  %v3806_v20 = vld [vmem:[#allocation2 + $0xb0] sm:$0xff] }
  0xe5   :  { %v3539_v39 = vadd.f32 %v3411_v12, %v2898_v63  ;;  %v7218_v11 = vrot.slane %v4703_v18, 1  ;;  %2385 = vst [vmem:[#allocation5 + $0x218] sm:$0xff] %v2257_v48  ;;  %v2511_v9 = vmul.f32 -0.70710677, %v1447_v17  ;;  %v2512_v23 = vmul.f32 -0.70710677, %v1439_v5 }
  0xe6   :  { %2770 = vst [vmem:[#allocation5 + $0x298] sm:$0xff] %v2641_v38  ;;  %v2255_v58 = vadd.f32 %v2127_v54, %v4541_v31  ;;  %v2256_v43 = vadd.f32 %v2128_v21, %v2000_v2  ;;  %v3024_v33 = vmul.f32 0.70710677, %v1831_v26  ;;  %v3025_v25 = vmul.f32 0.70710677, %v1823_v49  ;;  %v4823_v12 = vld [vmem:[#allocation2 + $0x238] sm:$0xff] }
  0xe7   :  { %v986_v30 = vmul.f32 -0.70710677, %v474_v52  ;;  %3283 = vst [vmem:[#allocation5 + $0x318] sm:$0xff] %v3154_v40  ;;  %v2639_v56 = vadd.f32 %v2511_v9, %v4541_v31  ;;  %v3409_v63 = vmul.f32 -0.70710677, %v1831_v26  ;;  %v467_v28 = vsel %vm155_vm0, %v3806_v20, %v234_v6  ;;  %v3807_v48 = vld [vmem:[#allocation2 + $0xa8] sm:$0xff]  ;;  %331 = vrot.lane.b32.xlu2 %v4823_v12, %s3965_s13 }
  0xe8   :  { %3668 = vst [vmem:[#allocation5 + $0x398] sm:$0xff] %v3539_v39  ;;  %v2640_v5 = vadd.f32 %v2512_v23, %v2000_v2  ;;  %v2897_v17 = vmul.f32 0.70710677, %v1103_v50  ;;  %v3410_v38 = vmul.f32 -0.70710677, %v1823_v49  ;;  %v466_v21 = vsel %vm155_vm0, %v3807_v48, %v232_v22  ;;  %v4829_v52 = vld [vmem:[#allocation2 + $0x230] sm:$0xff] }
  0xe9   :  { %v4832_v31 = vmul.f32 0.70710677, %v4589_v3  ;;  %v4835_v9 = vmul.f32 0.70710677, %v4591_v0  ;;  %v7362_v54 = vld [vmem:[#allocation24_spill] sm:$0xff]  ;;  %2383 = vst [vmem:[#allocation5 + $0x208] sm:$0xff] %v2255_v58  ;;  %v3152_v49 = vadd.f32 %v3024_v33, %v4546_v15  ;;  %329 = vrot.lane.b32.xlu1 %v4829_v52, %s3965_s13 }
  0xea   :  { %v4838_v26 = vadd.f32 %v730_v51, %v7362_v54  ;;  %v4843_v50 = vld [vmem:[#allocation2 + $0x228] sm:$0xff]  ;;  %2384 = vst [vmem:[#allocation5 + $0x210] sm:$0xff] %v2256_v43  ;;  %v3153_v40 = vadd.f32 %v3025_v25, %v2897_v17  ;;  %v723_v3 = vmul.f32 0.70710677, %v467_v28  ;;  %v979_v39 = vmul.f32 -0.70710677, %v467_v28 }
  0xeb   :  { %7360 = vst [vmem:[#allocation12_spill] sm:$0xff] %v4832_v31  ;;  %327 = vrot.lane.b32.xlu0 %v4843_v50, %s3965_s13  ;;  %v3537_v51 = vadd.f32 %v3409_v63, %v4546_v15  ;;  %v722_v6 = vmul.f32 0.70710677, %v466_v21  ;;  %v978_v23 = vmul.f32 -0.70710677, %v466_v21  ;;  %v4851_v22 = vadd.f32 %v986_v30, %v7362_v54  ;;  %v7363_v33 = vld [vmem:[#allocation19_spill] sm:$0xff] }
  0xec   :  { %7361 = vst [vmem:[#allocation10_spill] sm:$0xff] %v4835_v9  ;;  %v3538_v58 = vadd.f32 %v3410_v38, %v2897_v17  ;;  %v851_v43 = vadd.f32 %v723_v3, %v7363_v33  ;;  %v1107_v25 = vadd.f32 %v979_v39, %v7363_v33  ;;  %v4857_v28 = vmul.f32 0.70710677, %v4838_v26  ;;  %v7365_v15 = vld [vmem:[#allocation20_spill] sm:$0xff]  ;;  %v240_v9 = vpop.permute.xlu1 %239 }
  0xed   :  { %2768 = vst [vmem:[#allocation5 + $0x288] sm:$0xff] %v2639_v56  ;;  %v4860_v56 = vmul.f32 0.70710677, %v4661_v61  ;;  %v850_v63 = vadd.f32 %v722_v6, %v7365_v15  ;;  %v4864_v30 = vmul.f32 0.70710677, %v4851_v22  ;;  %v1106_v48 = vadd.f32 %v978_v23, %v7365_v15  ;;  %v3808_v21 = vld [vmem:[#allocation2 + $0x100] sm:$0xff] }
  0xee   :  { %2769 = vst [vmem:[#allocation5 + $0x290] sm:$0xff] %v2640_v5  ;;  %v254_v5 = vpop.permute.xlu2 %253  ;;  %v1262_v17 = vrot.slane %v851_v43, 1  ;;  %v1647_v38 = vrot.slane %v1107_v25, 1  ;;  %v2901_v3 = vmul.f32 0.70710677, %v1107_v25  ;;  %v7366_v39 = vrot.slane %v4688_v44, 1 }
  0xef   :  { %3281 = vst [vmem:[#allocation5 + $0x308] sm:$0xff] %v3152_v49  ;;  %v477_v54 = vsel %vm155_vm0, %v3808_v21, %v254_v5  ;;  %v2004_v49 = vmul.f32 0.70710677, %v851_v43  ;;  %v1254_v61 = vrot.slane %v850_v63, 1  ;;  %v1639_v23 = vrot.slane %v1106_v48, 1 }
  0xf0   :  { %7364 = vst [vmem:[#allocation46_spill] sm:$0xff] %v4860_v56  ;;  %v1407_v6 = vsel %vm1341_vm1, %v1262_v17, %v7366_v39  ;;  %v7368_v39 = vrot.slane %v4629_v29, 1  ;;  %v238_v56 = vpop.permute.xlu0 %237 }
  0xf1   :  { %3282 = vst [vmem:[#allocation5 + $0x310] sm:$0xff] %v3153_v40  ;;  %v1791_v40 = vsel %vm1341_vm1, %v1647_v38, %v7218_v11  ;;  %v2132_v33 = vmul.f32 0.70710677, %v1407_v6  ;;  %v2516_v15 = vmul.f32 -0.70710677, %v1407_v6  ;;  %v1415_v43 = vsel %vm1341_vm1, %v1254_v61, %v1262_v17 }
  0xf2   :  { %3666 = vst [vmem:[#allocation5 + $0x388] sm:$0xff] %v3537_v51  ;;  %v2003_v51 = vmul.f32 0.70710677, %v850_v63  ;;  %v3029_v20 = vmul.f32 0.70710677, %v1791_v40  ;;  %v1799_v21 = vsel %vm1341_vm1, %v1639_v23, %v1647_v38  ;;  %v1807_v63 = vsel %vm1341_vm1, %v7368_v39, %v1639_v23 }
  0xf3   :  { %3667 = vst [vmem:[#allocation5 + $0x390] sm:$0xff] %v3538_v58  ;;  %v3414_v25 = vmul.f32 -0.70710677, %v1791_v40  ;;  %v7367_v58 = vrot.slane %v4608_v45, 1  ;;  %v2260_v11 = vadd.f32 %v2132_v33, %v2004_v49  ;;  %v2644_v6 = vadd.f32 %v2516_v15, %v2004_v49 }
  0xf4   :  { %v3157_v0 = vadd.f32 %v3029_v20, %v2901_v3  ;;  %v2131_v40 = vmul.f32 0.70710677, %v1415_v43  ;;  %v2515_v45 = vmul.f32 -0.70710677, %v1415_v43  ;;  %v3027_v38 = vmul.f32 0.70710677, %v1807_v63 }
  0xf5   :  { %v1423_v5 = vsel %vm1341_vm1, %v7367_v58, %v1254_v61  ;;  %v3542_v17 = vadd.f32 %v3414_v25, %v2901_v3  ;;  %v4891_v58 = vmul.f32 0.70710677, %v4666_v53  ;;  %2388 = vst [vmem:[#allocation5 + $0x230] sm:$0xff] %v2260_v11  ;;  %v4895_v23 = vmul.f32 0.70710677, %v4674_v55  ;;  %v3809_v3 = vld [vmem:[#allocation2 + $0xc8] sm:$0xff] }
  0xf6   :  { %v2130_v2 = vmul.f32 0.70710677, %v1423_v5  ;;  %v2514_v31 = vmul.f32 -0.70710677, %v1423_v5  ;;  %2773 = vst [vmem:[#allocation5 + $0x2b0] sm:$0xff] %v2644_v6  ;;  %v2259_v20 = vadd.f32 %v2131_v40, %v2003_v51  ;;  %v470_v33 = vsel %vm155_vm0, %v3809_v3, %v240_v9  ;;  %v3810_v25 = vld [vmem:[#allocation2 + $0xc0] sm:$0xff] }
  0xf7   :  { %7369 = vst [vmem:[#allocation9_spill] sm:$0xff] %v4891_v58  ;;  %v3028_v49 = vmul.f32 0.70710677, %v1799_v21  ;;  %v733_v15 = vmul.f32 0.70710677, %v477_v54  ;;  %v469_v11 = vsel %vm155_vm0, %v3810_v25, %v238_v56  ;;  %v2643_v55 = vadd.f32 %v2515_v45, %v2003_v51  ;;  %v4906_v6 = vld [vmem:[#allocation2 + $0x248] sm:$0xff] }
  0xf8   :  { %v2258_v29 = vadd.f32 %v2130_v2, %v4618_v36  ;;  %7370 = vst [vmem:[#allocation48_spill] sm:$0xff] %v4895_v23  ;;  %v2642_v43 = vadd.f32 %v2514_v31, %v4618_v36  ;;  %v3412_v53 = vmul.f32 -0.70710677, %v1807_v63  ;;  %v4902_v2 = vld [vmem:[#allocation2 + $0x250] sm:$0xff]  ;;  %v2900_v5 = vmul.f32 0.70710677, %v1106_v48  ;;  %v260_v31 = vpop.permute.xlu2 %259  ;;  %335 = vrot.lane.b32.xlu1 %v4906_v6, %s3965_s13 }
  0xf9   :  { %3286 = vst [vmem:[#allocation5 + $0x330] sm:$0xff] %v3157_v0  ;;  %v3413_v39 = vmul.f32 -0.70710677, %v1799_v21  ;;  %337 = vrot.lane.b32.xlu2 %v4902_v2, %s3965_s13  ;;  %v989_v9 = vmul.f32 -0.70710677, %v477_v54  ;;  %v3155_v36 = vadd.f32 %v3027_v38, %v4652_v34  ;;  %v4911_v56 = vld [vmem:[#allocation2 + $0x240] sm:$0xff] }
  0xfa   :  { %3671 = vst [vmem:[#allocation5 + $0x3b0] sm:$0xff] %v3542_v17  ;;  %v726_v0 = vmul.f32 0.70710677, %v470_v33  ;;  %v3156_v51 = vadd.f32 %v3028_v49, %v2900_v5  ;;  %v3811_v48 = vld [vmem:[#allocation2 + $0x118] sm:$0xff]  ;;  %v982_v63 = vmul.f32 -0.70710677, %v470_v33  ;;  %333 = vrot.lane.b32.xlu0 %v4911_v56, %s3965_s13  ;;  %v3540_v45 = vadd.f32 %v3412_v53, %v4652_v34 }
  0xfb   :  { %2386 = vst [vmem:[#allocation5 + $0x220] sm:$0xff] %v2258_v29  ;;  %v480_v21 = vsel %vm155_vm0, %v3811_v48, %v260_v31  ;;  %v725_v17 = vmul.f32 0.70710677, %v469_v11  ;;  %v7371_v54 = vld [vmem:[#allocation27_spill] sm:$0xff]  ;;  %v7372_v29 = vld [vmem:[#allocation22_spill] sm:$0xff] }
  0xfc   :  { %2387 = vst [vmem:[#allocation5 + $0x228] sm:$0xff] %v2259_v20  ;;  %v4918_v40 = vadd.f32 %v733_v15, %v7371_v54  ;;  %v854_v38 = vadd.f32 %v726_v0, %v7372_v29  ;;  %v981_v3 = vmul.f32 -0.70710677, %v469_v11  ;;  %v3541_v20 = vadd.f32 %v3413_v39, %v2900_v5  ;;  %v7374_v25 = vld [vmem:[#allocation23_spill] sm:$0xff] }
  0xfd   :  { %2771 = vst [vmem:[#allocation5 + $0x2a0] sm:$0xff] %v2642_v43  ;;  %v4923_v49 = vmul.f32 0.70710677, %v4749_v42  ;;  %v1110_v33 = vadd.f32 %v982_v63, %v7372_v29  ;;  %v853_v31 = vadd.f32 %v725_v17, %v7374_v25  ;;  %v4928_v48 = vmul.f32 0.70710677, %v4760_v16 }
  0xfe   :  { %2772 = vst [vmem:[#allocation5 + $0x2a8] sm:$0xff] %v2643_v55  ;;  %v736_v15 = vmul.f32 0.70710677, %v480_v21  ;;  %v1286_v43 = vrot.slane %v854_v38, 1  ;;  %v1109_v34 = vadd.f32 %v981_v3, %v7374_v25  ;;  %v4932_v53 = vadd.f32 %v989_v9, %v7371_v54 }
  0xff   :  { %7373 = vst [vmem:[#allocation13_spill] sm:$0xff] %v4923_v49  ;;  %v1671_v11 = vrot.slane %v1110_v33, 1  ;;  %v2007_v55 = vmul.f32 0.70710677, %v854_v38  ;;  %v2904_v42 = vmul.f32 0.70710677, %v1110_v33 }
 0x100   :  { %3284 = vst [vmem:[#allocation5 + $0x320] sm:$0xff] %v3155_v36  ;;  %v7376_v5 = vrot.slane %v4773_v13, 1  ;;  %v1278_v36 = vrot.slane %v853_v31, 1  ;;  %v1663_v16 = vrot.slane %v1109_v34, 1  ;;  %v2006_v0 = vmul.f32 0.70710677, %v853_v31 }
 0x101   :  { %7375 = vst [vmem:[#allocation18_spill] sm:$0xff] %v4928_v48  ;;  %v7377_v17 = vrot.slane %v4780_v19, 1  ;;  %v7378_v3 = vrot.slane %v4688_v44, 1  ;;  %v7386_v44 = vrot.slane %v4851_v22, 1 }
 0x102   :  { %3285 = vst [vmem:[#allocation5 + $0x328] sm:$0xff] %v3156_v51  ;;  %v1383_v39 = vsel %vm1341_vm1, %v1286_v43, %v7376_v5  ;;  %v1391_v38 = vsel %vm1341_vm1, %v1278_v36, %v1286_v43  ;;  %v7379_v5 = vrot.slane %v4703_v18, 1  ;;  %v246_v43 = vpop.permute.xlu1 %245 }
 0x103   :  { %3669 = vst [vmem:[#allocation5 + $0x3a0] sm:$0xff] %v3540_v45  ;;  %v1767_v9 = vsel %vm1341_vm1, %v1671_v11, %v7377_v17  ;;  %v2135_v51 = vmul.f32 0.70710677, %v1383_v39  ;;  %v2519_v54 = vmul.f32 -0.70710677, %v1383_v39  ;;  %v1399_v33 = vsel %vm1341_vm1, %v7378_v3, %v1278_v36 }
 0x104   :  { %3670 = vst [vmem:[#allocation5 + $0x3a8] sm:$0xff] %v3541_v20  ;;  %v3032_v29 = vmul.f32 0.70710677, %v1767_v9  ;;  %v3417_v45 = vmul.f32 -0.70710677, %v1767_v9  ;;  %v1775_v20 = vsel %vm1341_vm1, %v1663_v16, %v1671_v11  ;;  %v1783_v39 = vsel %vm1341_vm1, %v7379_v5, %v1663_v16  ;;  %v3813_v5 = vld [vmem:[#allocation2 + $0xd8] sm:$0xff] }
 0x105   :  { %v2263_v25 = vadd.f32 %v2135_v51, %v2007_v55  ;;  %v2647_v31 = vadd.f32 %v2519_v54, %v2007_v55  ;;  %v2133_v63 = vmul.f32 0.70710677, %v1399_v33  ;;  %v2134_v61 = vmul.f32 0.70710677, %v1391_v38  ;;  %v244_v51 = vpop.permute.xlu0 %243 }
 0x106   :  { %v3160_v17 = vadd.f32 %v3032_v29, %v2904_v42  ;;  %v3545_v9 = vadd.f32 %v3417_v45, %v2904_v42  ;;  %v2517_v48 = vmul.f32 -0.70710677, %v1399_v33  ;;  %v2518_v36 = vmul.f32 -0.70710677, %v1391_v38  ;;  %v3812_v45 = vld [vmem:[#allocation2 + $0xe0] sm:$0xff] }
 0x107   :  { %2391 = vst [vmem:[#allocation5 + $0x248] sm:$0xff] %v2263_v25  ;;  %v992_v55 = vmul.f32 -0.70710677, %v480_v21  ;;  %v2261_v11 = vadd.f32 %v2133_v63, %v4752_v57  ;;  %v2262_v54 = vadd.f32 %v2134_v61, %v2006_v0  ;;  %v3030_v18 = vmul.f32 0.70710677, %v1783_v39 }
 0x108   :  { %2776 = vst [vmem:[#allocation5 + $0x2c8] sm:$0xff] %v2647_v31  ;;  %v2645_v16 = vadd.f32 %v2517_v48, %v4752_v57  ;;  %v3031_v29 = vmul.f32 0.70710677, %v1775_v20  ;;  %v3415_v42 = vmul.f32 -0.70710677, %v1783_v39  ;;  %v473_v3 = vsel %vm155_vm0, %v3812_v45, %v246_v43  ;;  %v7380_v57 = vld [vmem:[#allocation30_spill] sm:$0xff]  ;;  %v266_v39 = vpop.permute.xlu2 %265 }
 0x109   :  { %3289 = vst [vmem:[#allocation5 + $0x348] sm:$0xff] %v3160_v17  ;;  %v2646_v25 = vadd.f32 %v2518_v36, %v2006_v0  ;;  %v2903_v33 = vmul.f32 0.70710677, %v1109_v34  ;;  %v3416_v38 = vmul.f32 -0.70710677, %v1775_v20  ;;  %v472_v21 = vsel %vm155_vm0, %v3813_v5, %v244_v51  ;;  %v4972_v0 = vld [vmem:[#allocation2 + $0x268] sm:$0xff] }
 0x10a   :  { %3674 = vst [vmem:[#allocation5 + $0x3c8] sm:$0xff] %v3545_v9  ;;  %v4963_v61 = vmul.f32 0.70710677, %v4918_v40  ;;  %v4966_v63 = vmul.f32 0.70710677, %v4932_v53  ;;  %v4969_v48 = vadd.f32 %v736_v15, %v7380_v57  ;;  %v3158_v31 = vadd.f32 %v3030_v18, %v4755_v46  ;;  %v3814_v17 = vld [vmem:[#allocation2 + $0x130] sm:$0xff]  ;;  %343 = vrot.lane.b32.xlu2 %v4972_v0, %s3965_s13 }
 0x10b   :  { %2389 = vst [vmem:[#allocation5 + $0x238] sm:$0xff] %v2261_v11  ;;  %v4975_v34 = vmul.f32 0.70710677, %v4769_v8  ;;  %v3159_v20 = vadd.f32 %v3031_v29, %v2903_v33  ;;  %v483_v9 = vsel %vm155_vm0, %v3814_v17, %v266_v39  ;;  %v729_v43 = vmul.f32 0.70710677, %v473_v3  ;;  %v4981_v15 = vld [vmem:[#allocation2 + $0x260] sm:$0xff] }
 0x10c   :  { %2390 = vst [vmem:[#allocation5 + $0x240] sm:$0xff] %v2262_v54  ;;  %v4984_v36 = vadd.f32 %v992_v55, %v7380_v57  ;;  %v3543_v51 = vadd.f32 %v3415_v42, %v4755_v46  ;;  %v985_v8 = vmul.f32 -0.70710677, %v473_v3  ;;  %v728_v11 = vmul.f32 0.70710677, %v472_v21  ;;  %341 = vrot.lane.b32.xlu1 %v4981_v15, %s3965_s13  ;;  %v4989_v54 = vld [vmem:[#allocation2 + $0x258] sm:$0xff] }
 0x10d   :  { %7381 = vst [vmem:[#allocation14_spill] sm:$0xff] %v4975_v34  ;;  %v3544_v18 = vadd.f32 %v3416_v38, %v2903_v33  ;;  %v4992_v29 = vmul.f32 0.70710677, %v4823_v12  ;;  %v7383_v45 = vld [vmem:[#allocation25_spill] sm:$0xff]  ;;  %v984_v39 = vmul.f32 -0.70710677, %v472_v21  ;;  %339 = vrot.lane.b32.xlu0 %v4989_v54, %s3965_s13 }
 0x10e   :  { %2774 = vst [vmem:[#allocation5 + $0x2b8] sm:$0xff] %v2645_v16  ;;  %v857_v5 = vadd.f32 %v729_v43, %v7383_v45  ;;  %v4999_v55 = vmul.f32 0.70710677, %v4969_v48  ;;  %v1113_v16 = vadd.f32 %v985_v8, %v7383_v45  ;;  %v7384_v42 = vld [vmem:[#allocation26_spill] sm:$0xff]  ;;  %v739_v12 = vmul.f32 0.70710677, %v483_v9 }
 0x10f   :  { %2775 = vst [vmem:[#allocation5 + $0x2c0] sm:$0xff] %v2646_v25  ;;  %v856_v3 = vadd.f32 %v728_v11, %v7384_v42  ;;  %v5004_v25 = vmul.f32 0.70710677, %v4984_v36  ;;  %v1112_v38 = vadd.f32 %v984_v39, %v7384_v42  ;;  %v995_v21 = vmul.f32 -0.70710677, %v483_v9 }
 0x110   :  { %7382 = vst [vmem:[#allocation45_spill] sm:$0xff] %v4992_v29  ;;  %v1310_v33 = vrot.slane %v857_v5, 1  ;;  %v1695_v57 = vrot.slane %v1113_v16, 1  ;;  %v2010_v17 = vmul.f32 0.70710677, %v857_v5  ;;  %v7385_v43 = vrot.slane %v4838_v26, 1 }
 0x111   :  { %3287 = vst [vmem:[#allocation5 + $0x338] sm:$0xff] %v3158_v31  ;;  %v2907_v8 = vmul.f32 0.70710677, %v1113_v16  ;;  %v1302_v11 = vrot.slane %v856_v3, 1  ;;  %v1687_v45 = vrot.slane %v1112_v38, 1  ;;  %v7387_v5 = vrot.slane %v4773_v13, 1 }
 0x112   :  { %3288 = vst [vmem:[#allocation5 + $0x340] sm:$0xff] %v3159_v20  ;;  %v1359_v31 = vsel %vm1341_vm1, %v1310_v33, %v7385_v43  ;;  %v1743_v20 = vsel %vm1341_vm1, %v1695_v57, %v7386_v44  ;;  %v252_v43 = vpop.permute.xlu1 %251  ;;  %v7388_v44 = vrot.slane %v4780_v19, 1 }
 0x113   :  { %3672 = vst [vmem:[#allocation5 + $0x3b8] sm:$0xff] %v3543_v51  ;;  %v2138_v46 = vmul.f32 0.70710677, %v1359_v31  ;;  %v2522_v39 = vmul.f32 -0.70710677, %v1359_v31  ;;  %v1375_v16 = vsel %vm1341_vm1, %v7387_v5, %v1302_v11  ;;  %v1751_v58 = vsel %vm1341_vm1, %v1687_v45, %v1695_v57  ;;  %v3815_v5 = vld [vmem:[#allocation2 + $0xf8] sm:$0xff] }
 0x114   :  { %3673 = vst [vmem:[#allocation5 + $0x3c0] sm:$0xff] %v3544_v18  ;;  %v2009_v51 = vmul.f32 0.70710677, %v856_v3  ;;  %v3035_v9 = vmul.f32 0.70710677, %v1743_v20  ;;  %v1367_v18 = vsel %vm1341_vm1, %v1302_v11, %v1310_v33  ;;  %v1759_v3 = vsel %vm1341_vm1, %v7388_v44, %v1687_v45 }
 0x115   :  { %v3420_v42 = vmul.f32 -0.70710677, %v1743_v20  ;;  %v2266_v34 = vadd.f32 %v2138_v46, %v2010_v17  ;;  %v2650_v23 = vadd.f32 %v2522_v39, %v2010_v17  ;;  %v2136_v29 = vmul.f32 0.70710677, %v1375_v16  ;;  %v250_v17 = vpop.permute.xlu0 %249 }
 0x116   :  { %v3163_v31 = vadd.f32 %v3035_v9, %v2907_v8  ;;  %v2137_v33 = vmul.f32 0.70710677, %v1367_v18  ;;  %v2520_v49 = vmul.f32 -0.70710677, %v1375_v16  ;;  %v2521_v11 = vmul.f32 -0.70710677, %v1367_v18 }
 0x117   :  { %v3548_v20 = vadd.f32 %v3420_v42, %v2907_v8  ;;  %2394 = vst [vmem:[#allocation5 + $0x260] sm:$0xff] %v2266_v34  ;;  %v476_v46 = vsel %vm155_vm0, %v3815_v5, %v252_v43  ;;  %v2264_v19 = vadd.f32 %v2136_v29, %v4792_v27  ;;  %v3033_v39 = vmul.f32 0.70710677, %v1759_v3  ;;  %v7390_v9 = vld [vmem:[#allocation33_spill] sm:$0xff] }
 0x118   :  { %2779 = vst [vmem:[#allocation5 + $0x2e0] sm:$0xff] %v2650_v23  ;;  %v2265_v57 = vadd.f32 %v2137_v33, %v2009_v51  ;;  %v3034_v45 = vmul.f32 0.70710677, %v1751_v58  ;;  %v5032_v8 = vmul.f32 0.70710677, %v4829_v52  ;;  %v5035_v42 = vadd.f32 %v739_v12, %v7390_v9  ;;  %v3816_v23 = vld [vmem:[#allocation2 + $0xf0] sm:$0xff] }
 0x119   :  { %3292 = vst [vmem:[#allocation5 + $0x360] sm:$0xff] %v3163_v31  ;;  %v2648_v34 = vadd.f32 %v2520_v49, %v4792_v27  ;;  %v3418_v18 = vmul.f32 -0.70710677, %v1759_v3  ;;  %v2649_v16 = vadd.f32 %v2521_v11, %v2009_v51  ;;  %v2906_v43 = vmul.f32 0.70710677, %v1112_v38  ;;  %v5040_v33 = vld [vmem:[#allocation2 + $0x280] sm:$0xff]  ;;  %v272_v38 = vpop.permute.xlu2 %271 }
 0x11a   :  { %7389 = vst [vmem:[#allocation21_spill] sm:$0xff] %v5032_v8  ;;  %v3419_v44 = vmul.f32 -0.70710677, %v1751_v58  ;;  %v475_v29 = vsel %vm155_vm0, %v3816_v23, %v250_v17  ;;  %v5043_v52 = vmul.f32 0.70710677, %v4843_v50  ;;  %v5046_v12 = vadd.f32 %v995_v21, %v7390_v9  ;;  %349 = vrot.lane.b32.xlu2 %v5040_v33, %s3965_s13  ;;  %v5054_v58 = vld [vmem:[#allocation2 + $0x278] sm:$0xff] }
 0x11b   :  { %3677 = vst [vmem:[#allocation5 + $0x3e0] sm:$0xff] %v3548_v20  ;;  %v3161_v27 = vadd.f32 %v3033_v39, %v4795_v41  ;;  %v5050_v49 = vmul.f32 0.70710677, %v4902_v2  ;;  %v3162_v51 = vadd.f32 %v3034_v45, %v2906_v43  ;;  %v3817_v3 = vld [vmem:[#allocation2 + $0x148] sm:$0xff]  ;;  %v732_v21 = vmul.f32 0.70710677, %v476_v46  ;;  %347 = vrot.lane.b32.xlu1 %v5054_v58, %s3965_s13 }
 0x11c   :  { %7391 = vst [vmem:[#allocation16_spill] sm:$0xff] %v5043_v52  ;;  %v486_v50 = vsel %vm155_vm0, %v3817_v3, %v272_v38  ;;  %v988_v31 = vmul.f32 -0.70710677, %v476_v46  ;;  %v5060_v20 = vld [vmem:[#allocation2 + $0x270] sm:$0xff]  ;;  %v3546_v11 = vadd.f32 %v3418_v18, %v4795_v41  ;;  %v731_v5 = vmul.f32 0.70710677, %v475_v29 }
 0x11d   :  { %2392 = vst [vmem:[#allocation5 + $0x250] sm:$0xff] %v2264_v19  ;;  %v987_v17 = vmul.f32 -0.70710677, %v475_v29  ;;  %345 = vrot.lane.b32.xlu0 %v5060_v20, %s3965_s13  ;;  %v5067_v19 = vmul.f32 0.70710677, %v5035_v42  ;;  %v3547_v46 = vadd.f32 %v3419_v44, %v2906_v43  ;;  %v7395_v18 = vld [vmem:[#allocation29_spill] sm:$0xff]  ;;  %v256_v52 = vpop.permute.xlu0 %255 }
 0x11e   :  { %7392 = vst [vmem:[#allocation17_spill] sm:$0xff] %v5050_v49  ;;  %v5076_v41 = vmul.f32 0.70710677, %v4906_v6  ;;  %v859_v23 = vadd.f32 %v731_v5, %v7395_v18  ;;  %v5080_v29 = vmul.f32 0.70710677, %v4911_v56  ;;  %v7401_v8 = vld [vmem:[#allocation36_spill] sm:$0xff] }
 0x11f   :  { %2393 = vst [vmem:[#allocation5 + $0x258] sm:$0xff] %v2265_v57  ;;  %v7393_v57 = vld [vmem:[#allocation28_spill] sm:$0xff]  ;;  %v1115_v44 = vadd.f32 %v987_v17, %v7395_v18  ;;  %v742_v38 = vmul.f32 0.70710677, %v486_v50  ;;  %v3821_v49 = vld [vmem:[#allocation2 + $0x178] sm:$0xff] }
 0x120   :  { %2777 = vst [vmem:[#allocation5 + $0x2d0] sm:$0xff] %v2648_v34  ;;  %v860_v39 = vadd.f32 %v732_v21, %v7393_v57  ;;  %v1116_v45 = vadd.f32 %v988_v31, %v7393_v57  ;;  %v5073_v34 = vmul.f32 0.70710677, %v5046_v12  ;;  %v1326_v21 = vrot.slane %v859_v23, 1 }
 0x121   :  { %2778 = vst [vmem:[#allocation5 + $0x2d8] sm:$0xff] %v2649_v16  ;;  %v7398_v31 = vrot.slane %v4694_v7, 1  ;;  %v1711_v5 = vrot.slane %v1115_v44, 1 }
 0x122   :  { %3290 = vst [vmem:[#allocation5 + $0x350] sm:$0xff] %v3161_v27  ;;  %v1334_v16 = vrot.slane %v860_v39, 1  ;;  %v1719_v43 = vrot.slane %v1116_v45, 1  ;;  %v2013_v3 = vmul.f32 0.70710677, %v860_v39  ;;  %v7397_v27 = vrot.slane %v4685_v14, 1 }
 0x123   :  { %7394 = vst [vmem:[#allocation24_spill] sm:$0xff] %v5076_v41  ;;  %v7399_v14 = vrot.slane %v4838_v26, 1 }
 0x124   :  { %3291 = vst [vmem:[#allocation5 + $0x358] sm:$0xff] %v3162_v51  ;;  %v1463_v6 = vsel %vm1341_vm1, %v1334_v16, %v7397_v27  ;;  %v1847_v56 = vsel %vm1341_vm1, %v1719_v43, %v7398_v31  ;;  %v2910_v51 = vmul.f32 0.70710677, %v1116_v45  ;;  %v1727_v31 = vsel %vm1341_vm1, %v1711_v5, %v1719_v43 }
 0x125   :  { %7396 = vst [vmem:[#allocation19_spill] sm:$0xff] %v5080_v29  ;;  %v1501_v17 = vsel %vm188_vm2, %v860_v39, %v1463_v6  ;;  %v1351_v57 = vsel %vm1341_vm1, %v7399_v14, %v1326_v21  ;;  %v7400_v39 = vrot.slane %v4851_v22, 1  ;;  %v258_v29 = vpop.permute.xlu1 %257  ;;  %v5108_v43 = vadd.f32 %v742_v38, %v7401_v8 }
 0x126   :  { %3675 = vst [vmem:[#allocation5 + $0x3d0] sm:$0xff] %v3546_v11  ;;  %v1885_v11 = vsel %vm188_vm2, %v1116_v45, %v1847_v56  ;;  %v2141_v7 = vmul.f32 0.70710677, %v1501_v17  ;;  %v2525_v18 = vmul.f32 -0.70710677, %v1501_v17 }
 0x127   :  { %3676 = vst [vmem:[#allocation5 + $0x3d8] sm:$0xff] %v3547_v46  ;;  %v1343_v46 = vsel %vm1341_vm1, %v1326_v21, %v1334_v16  ;;  %v3038_v27 = vmul.f32 0.70710677, %v1885_v11  ;;  %v3423_v9 = vmul.f32 -0.70710677, %v1885_v11  ;;  %v1735_v45 = vsel %vm1341_vm1, %v7400_v39, %v1711_v5  ;;  %v3820_v39 = vld [vmem:[#allocation2 + $0x160] sm:$0xff] }
 0x128   :  { %v2139_v6 = vmul.f32 0.70710677, %v1351_v57  ;;  %v2140_v56 = vmul.f32 0.70710677, %v1343_v46  ;;  %v2269_v16 = vadd.f32 %v2141_v7, %v2013_v3  ;;  %v2653_v2 = vadd.f32 %v2525_v18, %v2013_v3 }
 0x129   :  { %v3166_v26 = vadd.f32 %v3038_v27, %v2910_v51  ;;  %v2523_v13 = vmul.f32 -0.70710677, %v1351_v57  ;;  %v998_v21 = vmul.f32 -0.70710677, %v486_v50  ;;  %v3551_v14 = vadd.f32 %v3423_v9, %v2910_v51  ;;  %v3818_v50 = vld [vmem:[#allocation2 + $0x110] sm:$0xff] }
 0x12a   :  { %v2012_v17 = vmul.f32 0.70710677, %v859_v23  ;;  %v2524_v41 = vmul.f32 -0.70710677, %v1343_v46  ;;  %2397 = vst [vmem:[#allocation5 + $0x278] sm:$0xff] %v2269_v16  ;;  %v2267_v22 = vadd.f32 %v2139_v6, %v4857_v28  ;;  %v479_v9 = vsel %vm155_vm0, %v3818_v50, %v258_v29  ;;  %v278_v46 = vpop.permute.xlu2 %277 }
 0x12b   :  { %v3036_v11 = vmul.f32 0.70710677, %v1735_v45  ;;  %v5112_v5 = vmul.f32 0.70710677, %v4972_v0  ;;  %2782 = vst [vmem:[#allocation5 + $0x2f8] sm:$0xff] %v2653_v2  ;;  %v2651_v38 = vadd.f32 %v2523_v13, %v4857_v28  ;;  %v3819_v0 = vld [vmem:[#allocation2 + $0x108] sm:$0xff]  ;;  %v489_v29 = vsel %vm155_vm0, %v3820_v39, %v278_v46 }
 0x12c   :  { %v2268_v3 = vadd.f32 %v2140_v56, %v2012_v17  ;;  %v3037_v7 = vmul.f32 0.70710677, %v1727_v31  ;;  %v5115_v57 = vmul.f32 0.70710677, %v4981_v15  ;;  %v5120_v23 = vmul.f32 0.70710677, %v5108_v43 }
 0x12d   :  { %7402 = vst [vmem:[#allocation20_spill] sm:$0xff] %v5112_v5  ;;  %v3421_v51 = vmul.f32 -0.70710677, %v1735_v45  ;;  %v478_v2 = vsel %vm155_vm0, %v3819_v0, %v256_v52  ;;  %v2652_v18 = vadd.f32 %v2524_v41, %v2012_v17  ;;  %v2909_v15 = vmul.f32 0.70710677, %v1115_v44 }
 0x12e   :  { %7403 = vst [vmem:[#allocation27_spill] sm:$0xff] %v5115_v57  ;;  %v3422_v27 = vmul.f32 -0.70710677, %v1727_v31  ;;  %v5128_v6 = vadd.f32 %v998_v21, %v7401_v8  ;;  %v3164_v28 = vadd.f32 %v3036_v11, %v4864_v30  ;;  %v735_v13 = vmul.f32 0.70710677, %v479_v9  ;;  %v7404_v31 = vld [vmem:[#allocation31_spill] sm:$0xff] }
 0x12f   :  { %3295 = vst [vmem:[#allocation5 + $0x378] sm:$0xff] %v3166_v26  ;;  %v991_v45 = vmul.f32 -0.70710677, %v479_v9  ;;  %v3165_v56 = vadd.f32 %v3037_v7, %v2909_v15  ;;  %v734_v16 = vmul.f32 0.70710677, %v478_v2  ;;  %v5131_v26 = vld [vmem:[#allocation2 + $0x298] sm:$0xff]  ;;  %v3549_v44 = vadd.f32 %v3421_v51, %v4864_v30 }
 0x130   :  { %3680 = vst [vmem:[#allocation5 + $0x3f8] sm:$0xff] %v3551_v14  ;;  %v990_v52 = vmul.f32 -0.70710677, %v478_v2  ;;  %v5134_v41 = vmul.f32 0.70710677, %v5128_v6  ;;  %v863_v8 = vadd.f32 %v735_v13, %v7404_v31  ;;  %355 = vrot.lane.b32.xlu2 %v5131_v26, %s3965_s13  ;;  %v5141_v14 = vld [vmem:[#allocation2 + $0x290] sm:$0xff]  ;;  %v3550_v17 = vadd.f32 %v3422_v27, %v2909_v15 }
 0x131   :  { %2395 = vst [vmem:[#allocation5 + $0x268] sm:$0xff] %v2267_v22  ;;  %v1119_v21 = vadd.f32 %v991_v45, %v7404_v31  ;;  %v5144_v22 = vmul.f32 0.70710677, %v4989_v54  ;;  %v5146_v11 = vmul.f32 0.70710677, %v489_v29  ;;  %353 = vrot.lane.b32.xlu1 %v5141_v14, %s3965_s13  ;;  %v5151_v30 = vld [vmem:[#allocation2 + $0x288] sm:$0xff] }
 0x132   :  { %2396 = vst [vmem:[#allocation5 + $0x270] sm:$0xff] %v2268_v3  ;;  %v7406_v3 = vld [vmem:[#allocation32_spill] sm:$0xff]  ;;  %v5153_v50 = vmul.f32 -0.70710677, %v489_v29  ;;  %v1231_v9 = vrot.slane %v863_v8, 1  ;;  %351 = vrot.lane.b32.xlu0 %v5151_v30, %s3965_s13  ;;  %v7407_v2 = vrot.slane %v4969_v48, 1 }
 0x133   :  { %2780 = vst [vmem:[#allocation5 + $0x2e8] sm:$0xff] %v2651_v38  ;;  %v862_v7 = vadd.f32 %v734_v16, %v7406_v3  ;;  %v1616_v38 = vrot.slane %v1119_v21, 1  ;;  %v1118_v51 = vadd.f32 %v990_v52, %v7406_v3  ;;  %v2016_v54 = vmul.f32 0.70710677, %v863_v8 }
 0x134   :  { %2781 = vst [vmem:[#allocation5 + $0x2f0] sm:$0xff] %v2652_v18  ;;  %v2913_v46 = vmul.f32 0.70710677, %v1119_v21  ;;  %v1440_v18 = vsel %vm1341_vm1, %v1231_v9, %v7407_v2  ;;  %v7408_v15 = vrot.slane %v4984_v36, 1  ;;  %v7410_v8 = vrot.slane %v4932_v53, 1 }
 0x135   :  { %7405 = vst [vmem:[#allocation22_spill] sm:$0xff] %v5144_v22  ;;  %v1223_v0 = vrot.slane %v862_v7, 1  ;;  %v1608_v39 = vrot.slane %v1118_v51, 1  ;;  %v2015_v29 = vmul.f32 0.70710677, %v862_v7 }
 0x136   :  { %3293 = vst [vmem:[#allocation5 + $0x368] sm:$0xff] %v3164_v28  ;;  %v1824_v27 = vsel %vm1341_vm1, %v1616_v38, %v7408_v15  ;;  %v2144_v28 = vmul.f32 0.70710677, %v1440_v18  ;;  %v2528_v13 = vmul.f32 -0.70710677, %v1440_v18  ;;  %v264_v18 = vpop.permute.xlu1 %263 }
 0x137   :  { %3294 = vst [vmem:[#allocation5 + $0x370] sm:$0xff] %v3165_v56  ;;  %v1448_v45 = vsel %vm1341_vm1, %v1223_v0, %v1231_v9  ;;  %v7409_v56 = vrot.slane %v4918_v40, 1  ;;  %v3041_v52 = vmul.f32 0.70710677, %v1824_v27  ;;  %v1832_v31 = vsel %vm1341_vm1, %v1608_v39, %v1616_v38 }
 0x138   :  { %3678 = vst [vmem:[#allocation5 + $0x3e8] sm:$0xff] %v3549_v44  ;;  %v3426_v44 = vmul.f32 -0.70710677, %v1824_v27  ;;  %v1840_v21 = vsel %vm1341_vm1, %v7410_v8, %v1608_v39  ;;  %v2272_v3 = vadd.f32 %v2144_v28, %v2016_v54  ;;  %v2656_v7 = vadd.f32 %v2528_v13, %v2016_v54  ;;  %v3823_v8 = vld [vmem:[#allocation2 + $0x120] sm:$0xff] }
 0x139   :  { %3679 = vst [vmem:[#allocation5 + $0x3f0] sm:$0xff] %v3550_v17  ;;  %v1456_v16 = vsel %vm1341_vm1, %v7409_v56, %v1223_v0  ;;  %v284_v17 = vpop.permute.xlu2 %283  ;;  %v2143_v9 = vmul.f32 0.70710677, %v1448_v45  ;;  %v3169_v15 = vadd.f32 %v3041_v52, %v2913_v46  ;;  %v2527_v0 = vmul.f32 -0.70710677, %v1448_v45  ;;  %v262_v56 = vpop.permute.xlu0 %261  ;;  %v3822_v52 = vld [vmem:[#allocation2 + $0x128] sm:$0xff] }
 0x13a   :  { %v2142_v2 = vmul.f32 0.70710677, %v1456_v16  ;;  %v3554_v22 = vadd.f32 %v3426_v44, %v2913_v46  ;;  %v2526_v57 = vmul.f32 -0.70710677, %v1456_v16  ;;  %2400 = vst [vmem:[#allocation5 + $0x410] sm:$0xff] %v2272_v3  ;;  %v492_v39 = vsel %vm155_vm0, %v3821_v49, %v284_v17 }
 0x13b   :  { %v3039_v38 = vmul.f32 0.70710677, %v1840_v21  ;;  %v5180_v5 = vmul.f32 0.70710677, %v5040_v33  ;;  %2785 = vst [vmem:[#allocation5 + $0x490] sm:$0xff] %v2656_v7  ;;  %v2271_v54 = vadd.f32 %v2143_v9, %v2015_v29  ;;  %v482_v46 = vsel %vm155_vm0, %v3822_v52, %v264_v18 }
 0x13c   :  { %v2270_v27 = vadd.f32 %v2142_v2, %v4963_v61  ;;  %v3040_v28 = vmul.f32 0.70710677, %v1832_v31  ;;  %v3424_v13 = vmul.f32 -0.70710677, %v1840_v21  ;;  %3298 = vst [vmem:[#allocation5 + $0x510] sm:$0xff] %v3169_v15  ;;  %v2654_v45 = vadd.f32 %v2526_v57, %v4963_v61  ;;  %v7412_v57 = vld [vmem:[#allocation42_spill] sm:$0xff] }
 0x13d   :  { %7411 = vst [vmem:[#allocation23_spill] sm:$0xff] %v5180_v5  ;;  %v2912_v16 = vmul.f32 0.70710677, %v1118_v51  ;;  %v3425_v44 = vmul.f32 -0.70710677, %v1832_v31  ;;  %v481_v33 = vsel %vm155_vm0, %v3823_v8, %v262_v56  ;;  %v2655_v49 = vadd.f32 %v2527_v0, %v2015_v29  ;;  %v7414_v56 = vld [vmem:[#allocation34_spill] sm:$0xff] }
 0x13e   :  { %3683 = vst [vmem:[#allocation5 + $0x590] sm:$0xff] %v3554_v22  ;;  %v748_v17 = vmul.f32 0.70710677, %v492_v39  ;;  %v1004_v7 = vmul.f32 -0.70710677, %v492_v39  ;;  %v3167_v21 = vadd.f32 %v3039_v38, %v4966_v63  ;;  %v3552_v61 = vadd.f32 %v3424_v13, %v4966_v63  ;;  %v5198_v22 = vld [vmem:[#allocation2 + $0x2b0] sm:$0xff] }
 0x13f   :  { %2398 = vst [vmem:[#allocation5 + $0x400] sm:$0xff] %v2270_v27  ;;  %v3168_v2 = vadd.f32 %v3040_v28, %v2912_v16  ;;  %v738_v9 = vmul.f32 0.70710677, %v482_v46  ;;  %v994_v18 = vmul.f32 -0.70710677, %v482_v46  ;;  %v3553_v29 = vadd.f32 %v3425_v44, %v2912_v16  ;;  %361 = vrot.lane.b32.xlu2 %v5198_v22, %s3965_s13  ;;  %v5207_v63 = vld [vmem:[#allocation2 + $0x2a8] sm:$0xff] }
 0x140   :  { %2399 = vst [vmem:[#allocation5 + $0x408] sm:$0xff] %v2271_v54  ;;  %v5193_v51 = vadd.f32 %v748_v17, %v7412_v57  ;;  %v5196_v31 = vadd.f32 %v1004_v7, %v7412_v57  ;;  %v737_v15 = vmul.f32 0.70710677, %v481_v33  ;;  %v5201_v0 = vmul.f32 0.70710677, %v5054_v58  ;;  %v7415_v28 = vld [vmem:[#allocation35_spill] sm:$0xff]  ;;  %359 = vrot.lane.b32.xlu1 %v5207_v63, %s3965_s13 }
 0x141   :  { %2783 = vst [vmem:[#allocation5 + $0x480] sm:$0xff] %v2654_v45  ;;  %v866_v27 = vadd.f32 %v738_v9, %v7414_v56  ;;  %v1122_v38 = vadd.f32 %v994_v18, %v7414_v56  ;;  %v993_v52 = vmul.f32 -0.70710677, %v481_v33  ;;  %v5214_v58 = vld [vmem:[#allocation2 + $0x2a0] sm:$0xff]  ;;  %v7416_v46 = vld [vmem:[#allocation39_spill] sm:$0xff]  ;;  %v7417_v33 = vrot.slane %v4918_v40, 1 }
 0x142   :  { %7413 = vst [vmem:[#allocation30_spill] sm:$0xff] %v5201_v0  ;;  %v7237_v39 = vrot.slane %v5193_v51, 1  ;;  %v7236_v54 = vrot.slane %v5196_v31, 1  ;;  %v865_v13 = vadd.f32 %v737_v15, %v7415_v28  ;;  %v5218_v45 = vadd.f32 %v5146_v11, %v7416_v46  ;;  %357 = vrot.lane.b32.xlu0 %v5214_v58, %s3965_s13 }
 0x143   :  { %2784 = vst [vmem:[#allocation5 + $0x488] sm:$0xff] %v2655_v49  ;;  %v2029_v16 = vmul.f32 0.70710677, %v5193_v51  ;;  %v1255_v44 = vrot.slane %v866_v27, 1  ;;  %v1640_v8 = vrot.slane %v1122_v38, 1  ;;  %v7418_v17 = vrot.slane %v4932_v53, 1 }
 0x144   :  { %3296 = vst [vmem:[#allocation5 + $0x500] sm:$0xff] %v3167_v21  ;;  %v1464_v49 = vsel %vm1341_vm1, %v7237_v39, %v7417_v33  ;;  %v2926_v7 = vmul.f32 0.70710677, %v5196_v31  ;;  %v2019_v21 = vmul.f32 0.70710677, %v866_v27  ;;  %v7419_v9 = vrot.slane %v5035_v42, 1 }
 0x145   :  { %3297 = vst [vmem:[#allocation5 + $0x508] sm:$0xff] %v3168_v2  ;;  %v1848_v11 = vsel %vm1341_vm1, %v7236_v54, %v7418_v17  ;;  %v1517_v40 = vsel %vm188_vm2, %v5193_v51, %v1464_v49  ;;  %v7420_v18 = vrot.slane %v5046_v12, 1  ;;  %v1247_v27 = vrot.slane %v865_v13, 1 }
 0x146   :  { %3681 = vst [vmem:[#allocation5 + $0x580] sm:$0xff] %v3552_v61  ;;  %v1901_v2 = vsel %vm188_vm2, %v5196_v31, %v1848_v11  ;;  %v1416_v53 = vsel %vm1341_vm1, %v1255_v44, %v7419_v9  ;;  %v5252_v61 = vadd.f32 %v5153_v50, %v7416_v46  ;;  %v2157_v15 = vmul.f32 0.70710677, %v1517_v40 }
 0x147   :  { %v1800_v57 = vsel %vm1341_vm1, %v1640_v8, %v7420_v18  ;;  %3682 = vst [vmem:[#allocation5 + $0x588] sm:$0xff] %v3553_v29  ;;  %v2541_v56 = vmul.f32 -0.70710677, %v1517_v40  ;;  %v3054_v33 = vmul.f32 0.70710677, %v1901_v2  ;;  %v1121_v11 = vadd.f32 %v993_v52, %v7415_v28 }
 0x148   :  { %v3439_v49 = vmul.f32 -0.70710677, %v1901_v2  ;;  %v2147_v17 = vmul.f32 0.70710677, %v1416_v53  ;;  %v2285_v54 = vadd.f32 %v2157_v15, %v2029_v16  ;;  %v2531_v39 = vmul.f32 -0.70710677, %v1416_v53 }
 0x149   :  { %v2669_v9 = vadd.f32 %v2541_v56, %v2029_v16  ;;  %v3044_v3 = vmul.f32 0.70710677, %v1800_v57  ;;  %v5256_v0 = vmul.f32 0.70710677, %v5218_v45  ;;  %v3182_v18 = vadd.f32 %v3054_v33, %v2926_v7  ;;  %v270_v56 = vpop.permute.xlu1 %269 }
 0x14a   :  { %v3567_v5 = vadd.f32 %v3439_v49, %v2926_v7  ;;  %v3429_v50 = vmul.f32 -0.70710677, %v1800_v57  ;;  %2413 = vst [vmem:[#allocation5 + $0x478] sm:$0xff] %v2285_v54  ;;  %v2275_v29 = vadd.f32 %v2147_v17, %v2019_v21  ;;  %v2916_v46 = vmul.f32 0.70710677, %v1122_v38 }
 0x14b   :  { %v1424_v40 = vsel %vm1341_vm1, %v1247_v27, %v1255_v44  ;;  %v7421_v2 = vrot.slane %v4969_v48, 1  ;;  %v5265_v52 = vmul.f32 0.70710677, %v5252_v61  ;;  %2798 = vst [vmem:[#allocation5 + $0x4f8] sm:$0xff] %v2669_v9  ;;  %v2659_v16 = vadd.f32 %v2531_v39, %v2019_v21  ;;  %v290_v39 = vpop.permute.xlu2 %289  ;;  %v268_v21 = vpop.permute.xlu0 %267 }
 0x14c   :  { %v1632_v53 = vrot.slane %v1121_v11, 1  ;;  %3311 = vst [vmem:[#allocation5 + $0x578] sm:$0xff] %v3182_v18  ;;  %v3172_v7 = vadd.f32 %v3044_v3, %v2916_v46  ;;  %v3557_v54 = vadd.f32 %v3429_v50, %v2916_v46  ;;  %v2146_v57 = vmul.f32 0.70710677, %v1424_v40 }
 0x14d   :  { %v1432_v28 = vsel %vm1341_vm1, %v7421_v2, %v1247_v27  ;;  %3696 = vst [vmem:[#allocation5 + $0x5f8] sm:$0xff] %v3567_v5  ;;  %v7422_v44 = vrot.slane %v4984_v36, 1  ;;  %v2018_v33 = vmul.f32 0.70710677, %v865_v13  ;;  %v2530_v49 = vmul.f32 -0.70710677, %v1424_v40 }
 0x14e   :  { %v2145_v15 = vmul.f32 0.70710677, %v1432_v28  ;;  %v2529_v38 = vmul.f32 -0.70710677, %v1432_v28  ;;  %v1808_v48 = vsel %vm1341_vm1, %v1632_v53, %v1640_v8  ;;  %v5274_v17 = vmul.f32 0.70710677, %v5060_v20 }
 0x14f   :  { %v1816_v27 = vsel %vm1341_vm1, %v7422_v44, %v1632_v53  ;;  %2403 = vst [vmem:[#allocation5 + $0x428] sm:$0xff] %v2275_v29  ;;  %v3824_v5 = vld [vmem:[#allocation2 + $0x190] sm:$0xff]  ;;  %v2274_v36 = vadd.f32 %v2146_v57, %v2018_v33  ;;  %v3043_v18 = vmul.f32 0.70710677, %v1808_v48  ;;  %v5280_v50 = vmul.f32 0.70710677, %v5131_v26 }
 0x150   :  { %v2273_v3 = vadd.f32 %v2145_v15, %v4999_v55  ;;  %v3042_v9 = vmul.f32 0.70710677, %v1816_v27  ;;  %v495_v8 = vsel %vm155_vm0, %v3824_v5, %v290_v39  ;;  %2788 = vst [vmem:[#allocation5 + $0x4a8] sm:$0xff] %v2659_v16  ;;  %v3825_v13 = vld [vmem:[#allocation2 + $0x140] sm:$0xff]  ;;  %v5284_v20 = vld [vmem:[#allocation2 + $0x2c8] sm:$0xff]  ;;  %v2657_v29 = vadd.f32 %v2529_v38, %v4999_v55  ;;  %v3826_v28 = vld [vmem:[#allocation2 + $0x138] sm:$0xff] }
 0x151   :  { %v485_v46 = vsel %vm155_vm0, %v3825_v13, %v270_v56  ;;  %3301 = vst [vmem:[#allocation5 + $0x528] sm:$0xff] %v3172_v7  ;;  %v2915_v40 = vmul.f32 0.70710677, %v1121_v11  ;;  %v3427_v2 = vmul.f32 -0.70710677, %v1816_v27  ;;  %v484_v16 = vsel %vm155_vm0, %v3826_v28, %v268_v21  ;;  %367 = vrot.lane.b32.xlu2 %v5284_v20, %s3965_s13  ;;  %v5291_v26 = vld [vmem:[#allocation2 + $0x2c0] sm:$0xff] }
 0x152   :  { %3686 = vst [vmem:[#allocation5 + $0x5a8] sm:$0xff] %v3557_v54  ;;  %v2658_v53 = vadd.f32 %v2530_v49, %v2018_v33  ;;  %v3428_v15 = vmul.f32 -0.70710677, %v1808_v48  ;;  %v751_v57 = vmul.f32 0.70710677, %v495_v8  ;;  %365 = vrot.lane.b32.xlu1 %v5291_v26, %s3965_s13  ;;  %v5295_v7 = vld [vmem:[#allocation2 + $0x2b8] sm:$0xff]  ;;  %v3170_v11 = vadd.f32 %v3042_v9, %v5004_v25 }
 0x153   :  { %v7240_v55 = vrot.slane %v5128_v6, 1  ;;  %2401 = vst [vmem:[#allocation5 + $0x418] sm:$0xff] %v2273_v3  ;;  %v741_v38 = vmul.f32 0.70710677, %v485_v46  ;;  %v997_v56 = vmul.f32 -0.70710677, %v485_v46  ;;  %363 = vrot.lane.b32.xlu0 %v5295_v7, %s3965_s13  ;;  %v3171_v48 = vadd.f32 %v3043_v18, %v2915_v40 }
 0x154   :  { %2402 = vst [vmem:[#allocation5 + $0x420] sm:$0xff] %v2274_v36  ;;  %v740_v44 = vmul.f32 0.70710677, %v484_v16  ;;  %v996_v27 = vmul.f32 -0.70710677, %v484_v16  ;;  %v3555_v33 = vadd.f32 %v3427_v2, %v5004_v25  ;;  %v7424_v39 = vld [vmem:[#allocation37_spill] sm:$0xff]  ;;  %v3556_v9 = vadd.f32 %v3428_v15, %v2915_v40 }
 0x155   :  { %2786 = vst [vmem:[#allocation5 + $0x498] sm:$0xff] %v2657_v29  ;;  %v5304_v49 = vmul.f32 0.70710677, %v5141_v14  ;;  %v869_v21 = vadd.f32 %v741_v38, %v7424_v39  ;;  %v1125_v3 = vadd.f32 %v997_v56, %v7424_v39  ;;  %v5309_v5 = vmul.f32 0.70710677, %v5151_v30  ;;  %v7426_v36 = vld [vmem:[#allocation38_spill] sm:$0xff] }
 0x156   :  { %2787 = vst [vmem:[#allocation5 + $0x4a0] sm:$0xff] %v2658_v53  ;;  %v5311_v13 = vmul.f32 -0.70710677, %v495_v8  ;;  %v868_v18 = vadd.f32 %v740_v44, %v7426_v36  ;;  %v1124_v25 = vadd.f32 %v996_v27, %v7426_v36  ;;  %v5316_v14 = vmul.f32 0.70710677, %v5198_v22  ;;  %v7427_v2 = vld [vmem:[#allocation47_spill] sm:$0xff] }
 0x157   :  { %7423 = vst [vmem:[#allocation25_spill] sm:$0xff] %v5304_v49  ;;  %v1279_v46 = vrot.slane %v869_v21, 1  ;;  %v1664_v29 = vrot.slane %v1125_v3, 1  ;;  %v5319_v28 = vadd.f32 %v751_v57, %v7427_v2  ;;  %v2022_v40 = vmul.f32 0.70710677, %v869_v21 }
 0x158   :  { %7425 = vst [vmem:[#allocation26_spill] sm:$0xff] %v5309_v5  ;;  %v2919_v16 = vmul.f32 0.70710677, %v1125_v3  ;;  %v1271_v30 = vrot.slane %v868_v18, 1  ;;  %v7428_v8 = vrot.slane %v5108_v43, 1  ;;  %v1656_v22 = vrot.slane %v1124_v25, 1 }
 0x159   :  { %3299 = vst [vmem:[#allocation5 + $0x518] sm:$0xff] %v3170_v11  ;;  %v1776_v15 = vsel %vm1341_vm1, %v1664_v29, %v7240_v55  ;;  %v2021_v11 = vmul.f32 0.70710677, %v868_v18  ;;  %v7430_v21 = vrot.slane %v5046_v12, 1  ;;  %v5343_v12 = vmul.f32 0.70710677, %v5207_v63 }
 0x15a   :  { %3300 = vst [vmem:[#allocation5 + $0x520] sm:$0xff] %v3171_v48  ;;  %v1392_v53 = vsel %vm1341_vm1, %v1279_v46, %v7428_v8  ;;  %v1400_v56 = vsel %vm1341_vm1, %v1271_v30, %v1279_v46  ;;  %v7429_v48 = vrot.slane %v5035_v42, 1  ;;  %v3047_v27 = vmul.f32 0.70710677, %v1776_v15  ;;  %v276_v46 = vpop.permute.xlu1 %275  ;;  %v3827_v5 = vld [vmem:[#allocation2 + $0x1a8] sm:$0xff] }
 0x15b   :  { %3684 = vst [vmem:[#allocation5 + $0x598] sm:$0xff] %v3555_v33  ;;  %v2150_v38 = vmul.f32 0.70710677, %v1392_v53  ;;  %v2534_v57 = vmul.f32 -0.70710677, %v1392_v53  ;;  %v1784_v39 = vsel %vm1341_vm1, %v1656_v22, %v1664_v29  ;;  %v1792_v3 = vsel %vm1341_vm1, %v7430_v21, %v1656_v22  ;;  %v3829_v21 = vld [vmem:[#allocation2 + $0x150] sm:$0xff] }
 0x15c   :  { %3685 = vst [vmem:[#allocation5 + $0x5a0] sm:$0xff] %v3556_v9  ;;  %v1408_v44 = vsel %vm1341_vm1, %v7429_v48, %v1271_v30  ;;  %v3432_v33 = vmul.f32 -0.70710677, %v1776_v15  ;;  %v2149_v8 = vmul.f32 0.70710677, %v1400_v56  ;;  %v3175_v53 = vadd.f32 %v3047_v27, %v2919_v16  ;;  %v296_v30 = vpop.permute.xlu2 %295  ;;  %v274_v48 = vpop.permute.xlu0 %273 }
 0x15d   :  { %v2278_v9 = vadd.f32 %v2150_v38, %v2022_v40  ;;  %v2662_v36 = vadd.f32 %v2534_v57, %v2022_v40  ;;  %v2148_v18 = vmul.f32 0.70710677, %v1408_v44  ;;  %v2532_v55 = vmul.f32 -0.70710677, %v1408_v44  ;;  %7431 = vst [vmem:[#allocation33_spill] sm:$0xff] %v5343_v12  ;;  %v3828_v57 = vld [vmem:[#allocation2 + $0x158] sm:$0xff] }
 0x15e   :  { %v3560_v42 = vadd.f32 %v3432_v33, %v2919_v16  ;;  %v2533_v54 = vmul.f32 -0.70710677, %v1400_v56  ;;  %v3045_v29 = vmul.f32 0.70710677, %v1792_v3  ;;  %v498_v40 = vsel %vm155_vm0, %v3827_v5, %v296_v30  ;;  %v5352_v44 = vld [vmem:[#allocation2 + $0x2e0] sm:$0xff]  ;;  %3304 = vst [vmem:[#allocation5 + $0x540] sm:$0xff] %v3175_v53 }
 0x15f   :  { %2406 = vst [vmem:[#allocation5 + $0x440] sm:$0xff] %v2278_v9  ;;  %v2276_v15 = vadd.f32 %v2148_v18, %v5067_v19  ;;  %v5348_v22 = vmul.f32 0.70710677, %v5319_v28  ;;  %v2277_v16 = vadd.f32 %v2149_v8, %v2021_v11  ;;  %v3046_v38 = vmul.f32 0.70710677, %v1784_v39  ;;  %373 = vrot.lane.b32.xlu2 %v5352_v44, %s3965_s13  ;;  %v5359_v9 = vld [vmem:[#allocation2 + $0x2d8] sm:$0xff] }
 0x160   :  { %2791 = vst [vmem:[#allocation5 + $0x4c0] sm:$0xff] %v2662_v36  ;;  %v488_v56 = vsel %vm155_vm0, %v3828_v57, %v276_v46  ;;  %v2660_v63 = vadd.f32 %v2532_v55, %v5067_v19  ;;  %v2918_v27 = vmul.f32 0.70710677, %v1124_v25  ;;  %v3430_v33 = vmul.f32 -0.70710677, %v1792_v3  ;;  %371 = vrot.lane.b32.xlu1 %v5359_v9, %s3965_s13  ;;  %v5363_v46 = vld [vmem:[#allocation2 + $0x2d0] sm:$0xff] }
 0x161   :  { %v487_v5 = vsel %vm155_vm0, %v3829_v21, %v274_v48  ;;  %3689 = vst [vmem:[#allocation5 + $0x5c0] sm:$0xff] %v3560_v42  ;;  %v2661_v36 = vadd.f32 %v2533_v54, %v2021_v11  ;;  %v3431_v18 = vmul.f32 -0.70710677, %v1784_v39  ;;  %v754_v8 = vmul.f32 0.70710677, %v498_v40  ;;  %369 = vrot.lane.b32.xlu0 %v5363_v46, %s3965_s13 }
 0x162   :  { %v5367_v19 = vadd.f32 %v5311_v13, %v7427_v2  ;;  %2404 = vst [vmem:[#allocation5 + $0x430] sm:$0xff] %v2276_v15  ;;  %v3173_v55 = vadd.f32 %v3045_v29, %v5073_v34  ;;  %v744_v25 = vmul.f32 0.70710677, %v488_v56  ;;  %v1000_v3 = vmul.f32 -0.70710677, %v488_v56  ;;  %v7432_v2 = vld [vmem:[#allocation40_spill] sm:$0xff] }
 0x163   :  { %v7242_v54 = vrot.slane %v5252_v61, 1  ;;  %2405 = vst [vmem:[#allocation5 + $0x438] sm:$0xff] %v2277_v16  ;;  %v3174_v11 = vadd.f32 %v3046_v38, %v2918_v27  ;;  %v743_v39 = vmul.f32 0.70710677, %v487_v5  ;;  %v999_v53 = vmul.f32 -0.70710677, %v487_v5 }
 0x164   :  { %v5374_v42 = vmul.f32 0.70710677, %v5367_v19  ;;  %2789 = vst [vmem:[#allocation5 + $0x4b0] sm:$0xff] %v2660_v63  ;;  %v3558_v13 = vadd.f32 %v3430_v33, %v5073_v34  ;;  %v872_v30 = vadd.f32 %v744_v25, %v7432_v2  ;;  %v1128_v48 = vadd.f32 %v1000_v3, %v7432_v2  ;;  %v7434_v16 = vld [vmem:[#allocation41_spill] sm:$0xff] }
 0x165   :  { %2790 = vst [vmem:[#allocation5 + $0x4b8] sm:$0xff] %v2661_v36  ;;  %v3559_v15 = vadd.f32 %v3431_v18, %v2918_v27  ;;  %v5380_v29 = vmul.f32 0.70710677, %v5214_v58  ;;  %v5382_v57 = vmul.f32 -0.70710677, %v498_v40  ;;  %v871_v38 = vadd.f32 %v743_v39, %v7434_v16 }
 0x166   :  { %3302 = vst [vmem:[#allocation5 + $0x530] sm:$0xff] %v3173_v55  ;;  %v1303_v56 = vrot.slane %v872_v30, 1  ;;  %v1688_v21 = vrot.slane %v1128_v48, 1  ;;  %v1127_v63 = vadd.f32 %v999_v53, %v7434_v16  ;;  %v5387_v34 = vmul.f32 0.70710677, %v5284_v20  ;;  %v5414_v16 = vld [vmem:[#allocation2 + $0x2f0] sm:$0xff] }
 0x167   :  { %7433 = vst [vmem:[#allocation28_spill] sm:$0xff] %v5380_v29  ;;  %v5390_v33 = vadd.f32 %v754_v8, %v4549_v60  ;;  %v2025_v27 = vmul.f32 0.70710677, %v872_v30  ;;  %v2922_v5 = vmul.f32 0.70710677, %v1128_v48  ;;  %v1295_v58 = vrot.slane %v871_v38, 1 }
 0x168   :  { %3303 = vst [vmem:[#allocation5 + $0x538] sm:$0xff] %v3174_v11  ;;  %v7435_v40 = vrot.slane %v5218_v45, 1  ;;  %v1752_v18 = vsel %vm1341_vm1, %v1688_v21, %v7242_v54  ;;  %v1680_v20 = vrot.slane %v1127_v63, 1  ;;  %v2024_v55 = vmul.f32 0.70710677, %v871_v38  ;;  %377 = vrot.lane.b32.xlu1 %v5414_v16, %s3965_s13  ;;  %v3830_v54 = vld [vmem:[#allocation2 + $0x1c0] sm:$0xff] }
 0x169   :  { %3687 = vst [vmem:[#allocation5 + $0x5b0] sm:$0xff] %v3558_v13  ;;  %v1376_v3 = vsel %vm1341_vm1, %v1295_v58, %v1303_v56  ;;  %v7436_v11 = vrot.slane %v5108_v43, 1  ;;  %v3050_v53 = vmul.f32 0.70710677, %v1752_v18  ;;  %v3435_v13 = vmul.f32 -0.70710677, %v1752_v18 }
 0x16a   :  { %v1368_v36 = vsel %vm1341_vm1, %v1303_v56, %v7435_v40  ;;  %3688 = vst [vmem:[#allocation5 + $0x5b8] sm:$0xff] %v3559_v15  ;;  %v1760_v2 = vsel %vm1341_vm1, %v1680_v20, %v1688_v21  ;;  %v7437_v30 = vrot.slane %v5128_v6, 1  ;;  %v5412_v15 = vld [vmem:[#allocation2 + $0x2f8] sm:$0xff]  ;;  %v2152_v40 = vmul.f32 0.70710677, %v1376_v3  ;;  %v5420_v21 = vld [vmem:[#allocation2 + $0x2e8] sm:$0xff] }
 0x16b   :  { %v2153_v25 = vmul.f32 0.70710677, %v1368_v36  ;;  %v2537_v8 = vmul.f32 -0.70710677, %v1368_v36  ;;  %v1384_v39 = vsel %vm1341_vm1, %v7436_v11, %v1295_v58  ;;  %v282_v36 = vpop.permute.xlu1 %281  ;;  %379 = vrot.lane.b32.xlu2 %v5412_v15, %s3965_s13  ;;  %v3178_v6 = vadd.f32 %v3050_v53, %v2922_v5  ;;  %v302_v11 = vpop.permute.xlu2 %301  ;;  %375 = vrot.lane.b32.xlu0 %v5420_v21, %s3965_s13  ;;  %v3831_v53 = vld [vmem:[#allocation2 + $0x170] sm:$0xff] }
 0x16c   :  { %v1768_v48 = vsel %vm1341_vm1, %v7437_v30, %v1680_v20  ;;  %v2151_v43 = vmul.f32 0.70710677, %v1384_v39  ;;  %v3563_v58 = vadd.f32 %v3435_v13, %v2922_v5  ;;  %v2535_v18 = vmul.f32 -0.70710677, %v1384_v39  ;;  %v280_v30 = vpop.permute.xlu0 %279 }
 0x16d   :  { %v2281_v38 = vadd.f32 %v2153_v25, %v2025_v27  ;;  %v2665_v56 = vadd.f32 %v2537_v8, %v2025_v27  ;;  %v2536_v20 = vmul.f32 -0.70710677, %v1376_v3  ;;  %v3048_v25 = vmul.f32 0.70710677, %v1768_v48  ;;  %3307 = vst [vmem:[#allocation5 + $0x558] sm:$0xff] %v3178_v6 }
 0x16e   :  { %v2279_v27 = vadd.f32 %v2151_v43, %v5120_v23  ;;  %v5426_v8 = vmul.f32 0.70710677, %v5291_v26  ;;  %v501_v29 = vsel %vm155_vm0, %v3830_v54, %v302_v11  ;;  %v5431_v5 = vmul.f32 0.70710677, %v5390_v33  ;;  %3692 = vst [vmem:[#allocation5 + $0x5d8] sm:$0xff] %v3563_v58 }
 0x16f   :  { %2409 = vst [vmem:[#allocation5 + $0x458] sm:$0xff] %v2281_v38  ;;  %v2280_v3 = vadd.f32 %v2152_v40, %v2024_v55  ;;  %v3049_v39 = vmul.f32 0.70710677, %v1760_v2  ;;  %v491_v13 = vsel %vm155_vm0, %v3831_v53, %v282_v36  ;;  %v2663_v38 = vadd.f32 %v2535_v18, %v5120_v23 }
 0x170   :  { %7438 = vst [vmem:[#allocation29_spill] sm:$0xff] %v5426_v8  ;;  %v2921_v43 = vmul.f32 0.70710677, %v1127_v63  ;;  %v3433_v26 = vmul.f32 -0.70710677, %v1768_v48  ;;  %v3832_v8 = vld [vmem:[#allocation2 + $0x168] sm:$0xff]  ;;  %v2664_v11 = vadd.f32 %v2536_v20, %v2024_v55  ;;  %v5441_v49 = vadd.f32 %v5382_v57, %v4549_v60 }
 0x171   :  { %2794 = vst [vmem:[#allocation5 + $0x4d8] sm:$0xff] %v2665_v56  ;;  %v490_v12 = vsel %vm155_vm0, %v3832_v8, %v280_v30  ;;  %v7250_v54 = vrot.slane %v5319_v28, 1  ;;  %v3434_v56 = vmul.f32 -0.70710677, %v1760_v2  ;;  %v757_v40 = vmul.f32 0.70710677, %v501_v29 }
 0x172   :  { %2407 = vst [vmem:[#allocation5 + $0x448] sm:$0xff] %v2279_v27  ;;  %v3176_v36 = vadd.f32 %v3048_v25, %v5134_v41  ;;  %v747_v23 = vmul.f32 0.70710677, %v491_v13  ;;  %v1003_v63 = vmul.f32 -0.70710677, %v491_v13  ;;  %v7247_v48 = vrot.slane %v5367_v19, 1 }
 0x173   :  { %2408 = vst [vmem:[#allocation5 + $0x450] sm:$0xff] %v2280_v3  ;;  %v3177_v6 = vadd.f32 %v3049_v39, %v2921_v43  ;;  %v746_v18 = vmul.f32 0.70710677, %v490_v12  ;;  %v1002_v30 = vmul.f32 -0.70710677, %v490_v12  ;;  %v3561_v55 = vadd.f32 %v3433_v26, %v5134_v41  ;;  %v7439_v2 = vld [vmem:[#allocation43_spill] sm:$0xff] }
 0x174   :  { %v5446_v58 = vmul.f32 0.70710677, %v5441_v49  ;;  %2792 = vst [vmem:[#allocation5 + $0x4c8] sm:$0xff] %v2663_v38  ;;  %v875_v60 = vadd.f32 %v747_v23, %v7439_v2  ;;  %v1131_v57 = vadd.f32 %v1003_v63, %v7439_v2  ;;  %v3562_v20 = vadd.f32 %v3434_v56, %v2921_v43  ;;  %v7440_v8 = vld [vmem:[#allocation44_spill] sm:$0xff]  ;;  %v308_v23 = vpop.permute.xlu2 %307 }
 0x175   :  { %2793 = vst [vmem:[#allocation5 + $0x4d0] sm:$0xff] %v2664_v11  ;;  %v5452_v27 = vmul.f32 0.70710677, %v5295_v7  ;;  %v1013_v25 = vmul.f32 -0.70710677, %v501_v29  ;;  %v874_v3 = vadd.f32 %v746_v18, %v7440_v8  ;;  %v1130_v53 = vadd.f32 %v1002_v30, %v7440_v8  ;;  %v288_v30 = vpop.permute.xlu1 %287 }
 0x176   :  { %3305 = vst [vmem:[#allocation5 + $0x548] sm:$0xff] %v3176_v36  ;;  %v1327_v12 = vrot.slane %v875_v60, 1  ;;  %v1712_v39 = vrot.slane %v1131_v57, 1  ;;  %v5457_v13 = vmul.f32 0.70710677, %v5352_v44  ;;  %v5460_v41 = vadd.f32 %v757_v40, %v4613_v62 }
 0x177   :  { %3306 = vst [vmem:[#allocation5 + $0x550] sm:$0xff] %v3177_v6  ;;  %v2028_v38 = vmul.f32 0.70710677, %v875_v60  ;;  %v2925_v43 = vmul.f32 0.70710677, %v1131_v57  ;;  %v1319_v26 = vrot.slane %v874_v3, 1 }
 0x178   :  { %3690 = vst [vmem:[#allocation5 + $0x5c8] sm:$0xff] %v3561_v55  ;;  %v7441_v7 = vrot.slane %v5193_v51, 1  ;;  %v7442_v11 = vrot.slane %v5196_v31, 1  ;;  %v1704_v44 = vrot.slane %v1130_v53, 1  ;;  %v2027_v36 = vmul.f32 0.70710677, %v874_v3 }
 0x179   :  { %3691 = vst [vmem:[#allocation5 + $0x5d0] sm:$0xff] %v3562_v20  ;;  %v1352_v6 = vsel %vm1341_vm1, %v1319_v26, %v1327_v12  ;;  %v7443_v18 = vrot.slane %v5218_v45, 1  ;;  %v7444_v60 = vrot.slane %v5252_v61, 1 }
 0x17a   :  { %v1344_v29 = vsel %vm1341_vm1, %v1327_v12, %v7441_v7  ;;  %v1728_v56 = vsel %vm1341_vm1, %v1712_v39, %v7442_v11  ;;  %v1736_v2 = vsel %vm1341_vm1, %v1704_v44, %v1712_v39  ;;  %v2155_v12 = vmul.f32 0.70710677, %v1352_v6 }
 0x17b   :  { %v2156_v40 = vmul.f32 0.70710677, %v1344_v29  ;;  %v2540_v63 = vmul.f32 -0.70710677, %v1344_v29  ;;  %v1360_v51 = vsel %vm1341_vm1, %v7443_v18, %v1319_v26  ;;  %v3053_v55 = vmul.f32 0.70710677, %v1728_v56  ;;  %v286_v26 = vpop.permute.xlu0 %285 }
 0x17c   :  { %v3438_v31 = vmul.f32 -0.70710677, %v1728_v56  ;;  %v1744_v57 = vsel %vm1341_vm1, %v7444_v60, %v1704_v44  ;;  %v2154_v3 = vmul.f32 0.70710677, %v1360_v51  ;;  %v2538_v29 = vmul.f32 -0.70710677, %v1360_v51  ;;  %v314_v60 = vpop.permute.xlu2 %313 }
 0x17d   :  { %v2284_v20 = vadd.f32 %v2156_v40, %v2028_v38  ;;  %v2668_v8 = vadd.f32 %v2540_v63, %v2028_v38  ;;  %v3181_v7 = vadd.f32 %v3053_v55, %v2925_v43  ;;  %v2539_v11 = vmul.f32 -0.70710677, %v1352_v6  ;;  %v5482_v18 = vld [vmem:[#allocation2 + $0x308] sm:$0xff]  ;;  %v5484_v56 = vld [vmem:[#allocation2 + $0x300] sm:$0xff] }
 0x17e   :  { %v3566_v45 = vadd.f32 %v3438_v31, %v2925_v43  ;;  %v5487_v39 = vadd.f32 %v1013_v25, %v4613_v62  ;;  %v2282_v61 = vadd.f32 %v2154_v3, %v5256_v0  ;;  %v3051_v44 = vmul.f32 0.70710677, %v1744_v57  ;;  %383 = vrot.lane.b32.xlu1 %v5482_v18, %s3965_s13  ;;  %381 = vrot.lane.b32.xlu0 %v5484_v56, %s3965_s13  ;;  %v3833_v25 = vld [vmem:[#allocation2 + $0x188] sm:$0xff]  ;;  %v3834_v55 = vld [vmem:[#allocation2 + $0x180] sm:$0xff] }
 0x17f   :  { %2412 = vst [vmem:[#allocation5 + $0x470] sm:$0xff] %v2284_v20  ;;  %v5491_v38 = vmul.f32 0.70710677, %v5359_v9  ;;  %v5498_v43 = vmul.f32 0.70710677, %v5460_v41  ;;  %v2283_v40 = vadd.f32 %v2155_v12, %v2027_v36  ;;  %v494_v63 = vsel %vm155_vm0, %v3833_v25, %v288_v30  ;;  %v3835_v12 = vld [vmem:[#allocation2 + $0x1d8] sm:$0xff] }
 0x180   :  { %2797 = vst [vmem:[#allocation5 + $0x4f0] sm:$0xff] %v2668_v8  ;;  %v3052_v62 = vmul.f32 0.70710677, %v1736_v2  ;;  %v5503_v6 = vmul.f32 0.70710677, %v5487_v39  ;;  %v2666_v9 = vadd.f32 %v2538_v29, %v5256_v0  ;;  %v493_v31 = vsel %vm155_vm0, %v3834_v55, %v286_v26 }
 0x181   :  { %3310 = vst [vmem:[#allocation5 + $0x570] sm:$0xff] %v3181_v7  ;;  %v3436_v51 = vmul.f32 -0.70710677, %v1744_v57  ;;  %v2667_v20 = vadd.f32 %v2539_v11, %v2027_v36  ;;  %v2924_v8 = vmul.f32 0.70710677, %v1130_v53  ;;  %v3179_v30 = vadd.f32 %v3051_v44, %v5265_v52  ;;  %v7445_v36 = vld [vmem:[#allocation49_spill] sm:$0xff] }
 0x182   :  { %3695 = vst [vmem:[#allocation5 + $0x5f0] sm:$0xff] %v3566_v45  ;;  %v3437_v3 = vmul.f32 -0.70710677, %v1736_v2  ;;  %v504_v7 = vsel %vm155_vm0, %v3835_v12, %v308_v23  ;;  %v750_v25 = vmul.f32 0.70710677, %v494_v63  ;;  %v7251_v57 = vrot.slane %v5441_v49, 1 }
 0x183   :  { %2410 = vst [vmem:[#allocation5 + $0x460] sm:$0xff] %v2282_v61  ;;  %v1006_v0 = vmul.f32 -0.70710677, %v494_v63  ;;  %v3180_v29 = vadd.f32 %v3052_v62, %v2924_v8  ;;  %v749_v26 = vmul.f32 0.70710677, %v493_v31  ;;  %v3564_v53 = vadd.f32 %v3436_v51, %v5265_v52  ;;  %v3836_v11 = vld [vmem:[#allocation2 + $0x1f0] sm:$0xff]  ;;  %v294_v61 = vpop.permute.xlu1 %293 }
 0x184   :  { %2411 = vst [vmem:[#allocation5 + $0x468] sm:$0xff] %v2283_v40  ;;  %v1005_v55 = vmul.f32 -0.70710677, %v493_v31  ;;  %v878_v2 = vadd.f32 %v750_v25, %v7445_v36  ;;  %v5518_v23 = vsel %vm155_vm0, %v3836_v11, %v314_v60  ;;  %v3565_v44 = vadd.f32 %v3437_v3, %v2924_v8 }
 0x185   :  { %2795 = vst [vmem:[#allocation5 + $0x4e0] sm:$0xff] %v2666_v9  ;;  %v1134_v45 = vadd.f32 %v1006_v0, %v7445_v36  ;;  %v5521_v40 = vmul.f32 0.70710677, %v5363_v46  ;;  %v760_v62 = vmul.f32 0.70710677, %v504_v7  ;;  %v5524_v63 = vadd.f32 %v749_v26, %v4427_v4  ;;  %v3837_v46 = vld [vmem:[#allocation2 + $0x1a0] sm:$0xff] }
 0x186   :  { %2796 = vst [vmem:[#allocation5 + $0x4e8] sm:$0xff] %v2667_v20  ;;  %v1016_v52 = vmul.f32 -0.70710677, %v504_v7  ;;  %v1224_v9 = vrot.slane %v878_v2, 1  ;;  %v5527_v31 = vadd.f32 %v1005_v55, %v4427_v4  ;;  %v2031_v60 = vmul.f32 0.70710677, %v878_v2  ;;  %v292_v2 = vpop.permute.xlu0 %291 }
 0x187   :  { %7446 = vst [vmem:[#allocation36_spill] sm:$0xff] %v5521_v40  ;;  %v1609_v51 = vrot.slane %v1134_v45, 1  ;;  %v7248_v12 = vrot.slane %v5524_v63, 1  ;;  %v5531_v20 = vmul.f32 0.70710677, %v5412_v15  ;;  %v497_v8 = vsel %vm155_vm0, %v3837_v46, %v294_v61  ;;  %v3849_v40 = vld [vmem:[#allocation2 + $0x1f8] sm:$0xff] }
 0x188   :  { %3308 = vst [vmem:[#allocation5 + $0x560] sm:$0xff] %v3179_v30  ;;  %v1449_v3 = vsel %vm1341_vm1, %v1224_v9, %v7250_v54  ;;  %v2928_v30 = vmul.f32 0.70710677, %v1134_v45  ;;  %v7249_v7 = vrot.slane %v5527_v31, 1  ;;  %v5545_v15 = vadd.f32 %v760_v62, %v4691_v32 }
 0x189   :  { %3309 = vst [vmem:[#allocation5 + $0x568] sm:$0xff] %v3180_v29  ;;  %v1833_v4 = vsel %vm1341_vm1, %v1609_v51, %v7247_v48  ;;  %v2159_v25 = vmul.f32 0.70710677, %v1449_v3  ;;  %v2543_v0 = vmul.f32 -0.70710677, %v1449_v3  ;;  %v1457_v29 = vsel %vm1341_vm1, %v7248_v12, %v1224_v9  ;;  %v5559_v9 = vld [vmem:[#allocation2 + $0x320] sm:$0xff] }
 0x18a   :  { %3693 = vst [vmem:[#allocation5 + $0x5e0] sm:$0xff] %v3564_v53  ;;  %v3056_v26 = vmul.f32 0.70710677, %v1833_v4  ;;  %v3441_v55 = vmul.f32 -0.70710677, %v1833_v4  ;;  %v1841_v53 = vsel %vm1341_vm1, %v7249_v7, %v1609_v51  ;;  %v5561_v4 = vld [vmem:[#allocation2 + $0x318] sm:$0xff]  ;;  %389 = vrot.lane.b32.xlu1 %v5559_v9, %s3965_s13 }
 0x18b   :  { %3694 = vst [vmem:[#allocation5 + $0x5e8] sm:$0xff] %v3565_v44  ;;  %v2158_v36 = vmul.f32 0.70710677, %v1457_v29  ;;  %v2287_v45 = vadd.f32 %v2159_v25, %v2031_v60  ;;  %v2671_v11 = vadd.f32 %v2543_v0, %v2031_v60  ;;  %v2030_v61 = vmul.f32 0.70710677, %v5524_v63  ;;  %v3838_v25 = vld [vmem:[#allocation2 + $0x198] sm:$0xff]  ;;  %387 = vrot.lane.b32.xlu0 %v5561_v4, %s3965_s13 }
 0x18c   :  { %v2542_v44 = vmul.f32 -0.70710677, %v1457_v29  ;;  %v3184_v62 = vadd.f32 %v3056_v26, %v2928_v30  ;;  %v3569_v46 = vadd.f32 %v3441_v55, %v2928_v30  ;;  %v3055_v3 = vmul.f32 0.70710677, %v1841_v53 }
 0x18d   :  { %v5557_v48 = vmul.f32 0.70710677, %v5414_v16  ;;  %2415 = vst [vmem:[#allocation5 + $0x608] sm:$0xff] %v2287_v45  ;;  %v2286_v12 = vadd.f32 %v2158_v36, %v2030_v61  ;;  %v2927_v51 = vmul.f32 0.70710677, %v5527_v31  ;;  %v496_v60 = vsel %vm155_vm0, %v3838_v25, %v292_v2  ;;  %v300_v2 = vpop.permute.xlu1 %299 }
 0x18e   :  { %v3440_v7 = vmul.f32 -0.70710677, %v1841_v53  ;;  %v5572_v30 = vmul.f32 0.70710677, %v5545_v15  ;;  %2800 = vst [vmem:[#allocation5 + $0x688] sm:$0xff] %v2671_v11  ;;  %v2670_v0 = vadd.f32 %v2542_v44, %v2030_v61  ;;  %v5576_v26 = vadd.f32 %v1016_v52, %v4691_v32 }
 0x18f   :  { %7447 = vst [vmem:[#allocation31_spill] sm:$0xff] %v5557_v48  ;;  %v763_v29 = vmul.f32 0.70710677, %v5518_v23  ;;  %v3183_v55 = vadd.f32 %v3055_v3, %v2927_v51  ;;  %v753_v53 = vmul.f32 0.70710677, %v497_v8  ;;  %v3845_v48 = vld [vmem:[#allocation2 + $0x238] sm:$0xff] }
 0x190   :  { %3313 = vst [vmem:[#allocation5 + $0x708] sm:$0xff] %v3184_v62  ;;  %v1009_v36 = vmul.f32 -0.70710677, %v497_v8  ;;  %v3568_v45 = vadd.f32 %v3440_v7, %v2927_v51  ;;  %v752_v25 = vmul.f32 0.70710677, %v496_v60 }
 0x191   :  { %3698 = vst [vmem:[#allocation5 + $0x788] sm:$0xff] %v3569_v46  ;;  %v1008_v16 = vmul.f32 -0.70710677, %v496_v60  ;;  %v5580_v54 = vmul.f32 0.70710677, %v5576_v26  ;;  %v881_v32 = vadd.f32 %v753_v53, %v4553_v47  ;;  %v7451_v60 = vrot.slane %v5390_v33, 1 }
 0x192   :  { %2414 = vst [vmem:[#allocation5 + $0x600] sm:$0xff] %v2286_v12  ;;  %v5583_v11 = vmul.f32 0.70710677, %v5420_v21  ;;  %v1137_v52 = vadd.f32 %v1009_v36, %v4553_v47  ;;  %v5589_v8 = vmul.f32 -0.70710677, %v5518_v23  ;;  %v880_v7 = vadd.f32 %v752_v25, %v4581_v35 }
 0x193   :  { %2799 = vst [vmem:[#allocation5 + $0x680] sm:$0xff] %v2670_v0  ;;  %v5593_v44 = vmul.f32 0.70710677, %v5482_v18  ;;  %v1248_v12 = vrot.slane %v881_v32, 1  ;;  %v1136_v21 = vadd.f32 %v1008_v16, %v4581_v35  ;;  %v5597_v46 = vmul.f32 0.70710677, %v5484_v56 }
 0x194   :  { %7448 = vst [vmem:[#allocation32_spill] sm:$0xff] %v5583_v11  ;;  %v1633_v62 = vrot.slane %v1137_v52, 1  ;;  %v5600_v47 = vadd.f32 %v763_v29, %v4787_v10  ;;  %v2034_v3 = vmul.f32 0.70710677, %v881_v32  ;;  %v2931_v23 = vmul.f32 0.70710677, %v1137_v52  ;;  %v298_v11 = vpop.permute.xlu0 %297 }
 0x195   :  { %7449 = vst [vmem:[#allocation42_spill] sm:$0xff] %v5593_v44  ;;  %v1240_v51 = vrot.slane %v880_v7, 1  ;;  %v1425_v18 = vsel %vm1341_vm1, %v1248_v12, %v7451_v60  ;;  %v1625_v16 = vrot.slane %v1136_v21, 1  ;;  %v2033_v56 = vmul.f32 0.70710677, %v880_v7  ;;  %v320_v44 = vpop.permute.xlu2 %319 }
 0x196   :  { %3312 = vst [vmem:[#allocation5 + $0x700] sm:$0xff] %v3183_v55  ;;  %v1809_v35 = vsel %vm1341_vm1, %v1633_v62, %v7251_v57  ;;  %v2162_v0 = vmul.f32 0.70710677, %v1425_v18  ;;  %v2546_v55 = vmul.f32 -0.70710677, %v1425_v18  ;;  %v7453_v52 = vrot.slane %v5367_v19, 1 }
 0x197   :  { %7450 = vst [vmem:[#allocation34_spill] sm:$0xff] %v5597_v46  ;;  %v3059_v53 = vmul.f32 0.70710677, %v1809_v35  ;;  %v1433_v29 = vsel %vm1341_vm1, %v1240_v51, %v1248_v12  ;;  %v3444_v36 = vmul.f32 -0.70710677, %v1809_v35  ;;  %v1817_v32 = vsel %vm1341_vm1, %v1625_v16, %v1633_v62 }
 0x198   :  { %3697 = vst [vmem:[#allocation5 + $0x780] sm:$0xff] %v3568_v45  ;;  %v7452_v45 = vrot.slane %v5319_v28, 1  ;;  %v1825_v7 = vsel %vm1341_vm1, %v7453_v52, %v1625_v16  ;;  %v2290_v60 = vadd.f32 %v2162_v0, %v2034_v3  ;;  %v2674_v18 = vadd.f32 %v2546_v55, %v2034_v3  ;;  %v5628_v16 = vld [vmem:[#allocation2 + $0x338] sm:$0xff]  ;;  %v3841_v52 = vld [vmem:[#allocation2 + $0x1b0] sm:$0xff] }
 0x199   :  { %v3187_v61 = vadd.f32 %v3059_v53, %v2931_v23  ;;  %v3572_v12 = vadd.f32 %v3444_v36, %v2931_v23  ;;  %v2161_v35 = vmul.f32 0.70710677, %v1433_v29  ;;  %v2545_v28 = vmul.f32 -0.70710677, %v1433_v29  ;;  %v3840_v53 = vld [vmem:[#allocation2 + $0x1b8] sm:$0xff]  ;;  %395 = vrot.lane.b32.xlu1 %v5628_v16, %s3965_s13  ;;  %v5634_v36 = vld [vmem:[#allocation2 + $0x330] sm:$0xff] }
 0x19a   :  { %v1441_v25 = vsel %vm1341_vm1, %v7452_v45, %v1240_v51  ;;  %v5623_v51 = vmul.f32 0.70710677, %v5600_v47  ;;  %2418 = vst [vmem:[#allocation5 + $0x620] sm:$0xff] %v2290_v60  ;;  %v3057_v62 = vmul.f32 0.70710677, %v1825_v7  ;;  %v3839_v45 = vld [vmem:[#allocation2 + $0x208] sm:$0xff]  ;;  %v500_v29 = vsel %vm155_vm0, %v3840_v53, %v300_v2  ;;  %393 = vrot.lane.b32.xlu0 %v5634_v36, %s3965_s13 }
 0x19b   :  { %v2160_v57 = vmul.f32 0.70710677, %v1441_v25  ;;  %v2544_v46 = vmul.f32 -0.70710677, %v1441_v25  ;;  %v510_v3 = vsel %vm155_vm0, %v3839_v45, %v320_v44  ;;  %2803 = vst [vmem:[#allocation5 + $0x6a0] sm:$0xff] %v2674_v18  ;;  %v2289_v23 = vadd.f32 %v2161_v35, %v2033_v56 }
 0x19c   :  { %v2930_v0 = vmul.f32 0.70710677, %v1136_v21  ;;  %v3058_v55 = vmul.f32 0.70710677, %v1817_v32  ;;  %3316 = vst [vmem:[#allocation5 + $0x720] sm:$0xff] %v3187_v61  ;;  %v499_v60 = vsel %vm155_vm0, %v3841_v52, %v298_v11  ;;  %v2673_v2 = vadd.f32 %v2545_v28, %v2033_v56 }
 0x19d   :  { %v2288_v19 = vadd.f32 %v2160_v57, %v5348_v22  ;;  %v2672_v57 = vadd.f32 %v2544_v46, %v5348_v22  ;;  %v3442_v25 = vmul.f32 -0.70710677, %v1825_v7  ;;  %v3443_v44 = vmul.f32 -0.70710677, %v1817_v32  ;;  %3701 = vst [vmem:[#allocation5 + $0x7a0] sm:$0xff] %v3572_v12 }
 0x19e   :  { %v766_v18 = vmul.f32 0.70710677, %v510_v3  ;;  %v1022_v35 = vmul.f32 -0.70710677, %v510_v3  ;;  %v5644_v61 = vadd.f32 %v5589_v8, %v4787_v10  ;;  %v3185_v22 = vadd.f32 %v3057_v62, %v5374_v42  ;;  %2417 = vst [vmem:[#allocation5 + $0x618] sm:$0xff] %v2289_v23  ;;  %v7455_v3 = vld [vmem:[#allocation8_spill] sm:$0xff] }
 0x19f   :  { %2416 = vst [vmem:[#allocation5 + $0x610] sm:$0xff] %v2288_v19  ;;  %v756_v46 = vmul.f32 0.70710677, %v500_v29  ;;  %v1012_v32 = vmul.f32 -0.70710677, %v500_v29  ;;  %v3186_v7 = vadd.f32 %v3058_v55, %v2930_v0  ;;  %v3570_v56 = vadd.f32 %v3442_v25, %v5374_v42  ;;  %v7454_v19 = vld [vmem:[#allocation46_spill] sm:$0xff] }
 0x1a0   :  { %v755_v45 = vmul.f32 0.70710677, %v499_v60  ;;  %v1011_v53 = vmul.f32 -0.70710677, %v499_v60  ;;  %v5649_v12 = vmul.f32 0.70710677, %v5644_v61  ;;  %v3571_v28 = vadd.f32 %v3443_v44, %v2930_v0 }
 0x1a1   :  { %2801 = vst [vmem:[#allocation5 + $0x690] sm:$0xff] %v2672_v57  ;;  %v884_v10 = vadd.f32 %v756_v46, %v4621_v24  ;;  %v1140_v8 = vadd.f32 %v1012_v32, %v4621_v24  ;;  %v5655_v62 = vadd.f32 %v766_v18, %v7454_v19  ;;  %v5659_v55 = vmul.f32 0.70710677, %v5559_v9 }
 0x1a2   :  { %2802 = vst [vmem:[#allocation5 + $0x698] sm:$0xff] %v2673_v2  ;;  %v883_v23 = vadd.f32 %v755_v45, %v7455_v3  ;;  %v1139_v57 = vadd.f32 %v1011_v53, %v7455_v3  ;;  %v5663_v42 = vmul.f32 0.70710677, %v5561_v4  ;;  %v5666_v24 = vadd.f32 %v1022_v35, %v7454_v19  ;;  %v306_v19 = vpop.permute.xlu1 %305 }
 0x1a3   :  { %7456 = vst [vmem:[#allocation35_spill] sm:$0xff] %v5659_v55  ;;  %v1272_v29 = vrot.slane %v884_v10, 1  ;;  %v1657_v52 = vrot.slane %v1140_v8, 1  ;;  %v2037_v0 = vmul.f32 0.70710677, %v884_v10  ;;  %v7458_v60 = vrot.slane %v5460_v41, 1 }
 0x1a4   :  { %3314 = vst [vmem:[#allocation5 + $0x710] sm:$0xff] %v3185_v22  ;;  %v2934_v25 = vmul.f32 0.70710677, %v1140_v8  ;;  %v1264_v44 = vrot.slane %v883_v23, 1  ;;  %v7459_v2 = vrot.slane %v5487_v39, 1  ;;  %v1649_v4 = vrot.slane %v1139_v57, 1 }
 0x1a5   :  { %7457 = vst [vmem:[#allocation39_spill] sm:$0xff] %v5663_v42  ;;  %v1401_v9 = vsel %vm1341_vm1, %v1272_v29, %v7458_v60  ;;  %v2036_v22 = vmul.f32 0.70710677, %v883_v23  ;;  %v7461_v8 = vrot.slane %v5441_v49, 1 }
 0x1a6   :  { %3315 = vst [vmem:[#allocation5 + $0x718] sm:$0xff] %v3186_v7  ;;  %v1785_v18 = vsel %vm1341_vm1, %v1657_v52, %v7459_v2  ;;  %v2165_v46 = vmul.f32 0.70710677, %v1401_v9  ;;  %v2549_v35 = vmul.f32 -0.70710677, %v1401_v9  ;;  %v1409_v32 = vsel %vm1341_vm1, %v1264_v44, %v1272_v29  ;;  %v304_v9 = vpop.permute.xlu0 %303 }
 0x1a7   :  { %3699 = vst [vmem:[#allocation5 + $0x790] sm:$0xff] %v3570_v56  ;;  %v7460_v7 = vrot.slane %v5390_v33, 1  ;;  %v3062_v53 = vmul.f32 0.70710677, %v1785_v18  ;;  %v3447_v56 = vmul.f32 -0.70710677, %v1785_v18  ;;  %v1793_v10 = vsel %vm1341_vm1, %v1649_v4, %v1657_v52 }
 0x1a8   :  { %3700 = vst [vmem:[#allocation5 + $0x798] sm:$0xff] %v3571_v28  ;;  %v1801_v28 = vsel %vm1341_vm1, %v7461_v8, %v1649_v4  ;;  %v2293_v3 = vadd.f32 %v2165_v46, %v2037_v0  ;;  %v2677_v23 = vadd.f32 %v2549_v35, %v2037_v0  ;;  %v2164_v29 = vmul.f32 0.70710677, %v1409_v32 }
 0x1a9   :  { %v1417_v45 = vsel %vm1341_vm1, %v7460_v7, %v1264_v44  ;;  %v3190_v33 = vadd.f32 %v3062_v53, %v2934_v25  ;;  %v3575_v2 = vadd.f32 %v3447_v56, %v2934_v25  ;;  %v2548_v44 = vmul.f32 -0.70710677, %v1409_v32  ;;  %v3842_v7 = vld [vmem:[#allocation2 + $0x1d0] sm:$0xff]  ;;  %v326_v25 = vpop.permute.xlu2 %325 }
 0x1aa   :  { %v2163_v60 = vmul.f32 0.70710677, %v1417_v45  ;;  %v2547_v11 = vmul.f32 -0.70710677, %v1417_v45  ;;  %v5689_v18 = vmul.f32 0.70710677, %v5655_v62  ;;  %v503_v4 = vsel %vm155_vm0, %v3842_v7, %v306_v19 }
 0x1ab   :  { %2421 = vst [vmem:[#allocation5 + $0x638] sm:$0xff] %v2293_v3  ;;  %v3060_v49 = vmul.f32 0.70710677, %v1801_v28  ;;  %v5695_v0 = vmul.f32 0.70710677, %v5666_v24  ;;  %v2292_v46 = vadd.f32 %v2164_v29, %v2036_v22  ;;  %v3843_v45 = vld [vmem:[#allocation2 + $0x1c8] sm:$0xff]  ;;  %v2676_v29 = vadd.f32 %v2548_v44, %v2036_v22 }
 0x1ac   :  { %v2291_v52 = vadd.f32 %v2163_v60, %v5431_v5  ;;  %2806 = vst [vmem:[#allocation5 + $0x6b8] sm:$0xff] %v2677_v23  ;;  %v3061_v35 = vmul.f32 0.70710677, %v1793_v10  ;;  %v502_v32 = vsel %vm155_vm0, %v3843_v45, %v304_v9  ;;  %v5699_v53 = vld [vmem:[#allocation2 + $0x310] sm:$0xff]  ;;  %v2675_v56 = vadd.f32 %v2547_v11, %v5431_v5  ;;  %v3844_v60 = vld [vmem:[#allocation2 + $0x220] sm:$0xff] }
 0x1ad   :  { %3319 = vst [vmem:[#allocation5 + $0x738] sm:$0xff] %v3190_v33  ;;  %v2933_v8 = vmul.f32 0.70710677, %v1139_v57  ;;  %v3445_v3 = vmul.f32 -0.70710677, %v1801_v28  ;;  %v513_v19 = vsel %vm155_vm0, %v3844_v60, %v326_v25  ;;  %385 = vrot.lane.b32.xlu2 %v5699_v53, %s3965_s13  ;;  %v5706_v23 = vld [vmem:[#allocation2 + $0x350] sm:$0xff]  ;;  %v3188_v11 = vadd.f32 %v3060_v49, %v5446_v58 }
 0x1ae   :  { %3704 = vst [vmem:[#allocation5 + $0x7b8] sm:$0xff] %v3575_v2  ;;  %v3446_v7 = vmul.f32 -0.70710677, %v1793_v10  ;;  %v759_v9 = vmul.f32 0.70710677, %v503_v4  ;;  %401 = vrot.lane.b32.xlu1 %v5706_v23, %s3965_s13  ;;  %v5710_v33 = vld [vmem:[#allocation2 + $0x348] sm:$0xff] }
 0x1af   :  { %2419 = vst [vmem:[#allocation5 + $0x628] sm:$0xff] %v2291_v52  ;;  %v1015_v57 = vmul.f32 -0.70710677, %v503_v4  ;;  %v758_v28 = vmul.f32 0.70710677, %v502_v32  ;;  %399 = vrot.lane.b32.xlu0 %v5710_v33, %s3965_s13  ;;  %v3189_v2 = vadd.f32 %v3061_v35, %v2933_v8  ;;  %v7462_v10 = vld [vmem:[#allocation15_spill] sm:$0xff]  ;;  %v3573_v45 = vadd.f32 %v3445_v3, %v5446_v58 }
 0x1b0   :  { %2420 = vst [vmem:[#allocation5 + $0x630] sm:$0xff] %v2292_v46  ;;  %v769_v22 = vmul.f32 0.70710677, %v513_v19  ;;  %v887_v44 = vadd.f32 %v759_v9, %v7462_v10  ;;  %v1014_v25 = vmul.f32 -0.70710677, %v502_v32  ;;  %v7463_v52 = vld [vmem:[#allocation11_spill] sm:$0xff]  ;;  %v3574_v49 = vadd.f32 %v3446_v7, %v2933_v8  ;;  %v312_v8 = vpop.permute.xlu1 %311 }
 0x1b1   :  { %2804 = vst [vmem:[#allocation5 + $0x6a8] sm:$0xff] %v2675_v56  ;;  %v1025_v60 = vmul.f32 -0.70710677, %v513_v19  ;;  %v1143_v5 = vadd.f32 %v1015_v57, %v7462_v10  ;;  %v886_v21 = vadd.f32 %v758_v28, %v7463_v52  ;;  %v5722_v46 = vmul.f32 0.70710677, %v5628_v16  ;;  %v7466_v7 = vld [vmem:[#allocation13_spill] sm:$0xff] }
 0x1b2   :  { %2805 = vst [vmem:[#allocation5 + $0x6b0] sm:$0xff] %v2676_v29  ;;  %v1296_v4 = vrot.slane %v887_v44, 1  ;;  %v1142_v42 = vadd.f32 %v1014_v25, %v7463_v52  ;;  %v2040_v9 = vmul.f32 0.70710677, %v887_v44  ;;  %v7465_v58 = vrot.slane %v5545_v15, 1 }
 0x1b3   :  { %7464 = vst [vmem:[#allocation37_spill] sm:$0xff] %v5722_v46  ;;  %v1681_v35 = vrot.slane %v1143_v5, 1  ;;  %v2937_v32 = vmul.f32 0.70710677, %v1143_v5  ;;  %v1288_v3 = vrot.slane %v886_v21, 1  ;;  %v5729_v57 = vadd.f32 %v769_v22, %v7466_v7 }
 0x1b4   :  { %3317 = vst [vmem:[#allocation5 + $0x728] sm:$0xff] %v3188_v11  ;;  %v1377_v56 = vsel %vm1341_vm1, %v1296_v4, %v7465_v58  ;;  %v1673_v19 = vrot.slane %v1142_v42, 1  ;;  %v2039_v29 = vmul.f32 0.70710677, %v886_v21  ;;  %v7467_v16 = vrot.slane %v5576_v26, 1 }
 0x1b5   :  { %3318 = vst [vmem:[#allocation5 + $0x730] sm:$0xff] %v3189_v2  ;;  %v2168_v5 = vmul.f32 0.70710677, %v1377_v56  ;;  %v2552_v28 = vmul.f32 -0.70710677, %v1377_v56  ;;  %v1385_v44 = vsel %vm1341_vm1, %v1288_v3, %v1296_v4  ;;  %v7468_v21 = vrot.slane %v5460_v41, 1  ;;  %v332_v4 = vpop.permute.xlu2 %331 }
 0x1b6   :  { %3702 = vst [vmem:[#allocation5 + $0x7a8] sm:$0xff] %v3573_v45  ;;  %v1761_v11 = vsel %vm1341_vm1, %v1681_v35, %v7467_v16  ;;  %v1769_v52 = vsel %vm1341_vm1, %v1673_v19, %v1681_v35  ;;  %v7469_v58 = vrot.slane %v5487_v39, 1  ;;  %v2167_v46 = vmul.f32 0.70710677, %v1385_v44  ;;  %v310_v39 = vpop.permute.xlu0 %309 }
 0x1b7   :  { %3703 = vst [vmem:[#allocation5 + $0x7b0] sm:$0xff] %v3574_v49  ;;  %v3065_v2 = vmul.f32 0.70710677, %v1761_v11  ;;  %v3450_v10 = vmul.f32 -0.70710677, %v1761_v11  ;;  %v1393_v25 = vsel %vm1341_vm1, %v7468_v21, %v1288_v3  ;;  %v2296_v22 = vadd.f32 %v2168_v5, %v2040_v9  ;;  %v3846_v3 = vld [vmem:[#allocation2 + $0x1e8] sm:$0xff] }
 0x1b8   :  { %v2680_v45 = vadd.f32 %v2552_v28, %v2040_v9  ;;  %v1777_v49 = vsel %vm1341_vm1, %v7469_v58, %v1673_v19  ;;  %v2166_v11 = vmul.f32 0.70710677, %v1393_v25  ;;  %v2550_v41 = vmul.f32 -0.70710677, %v1393_v25 }
 0x1b9   :  { %v3193_v56 = vadd.f32 %v3065_v2, %v2937_v32  ;;  %v3578_v16 = vadd.f32 %v3450_v10, %v2937_v32  ;;  %2424 = vst [vmem:[#allocation5 + $0x650] sm:$0xff] %v2296_v22  ;;  %v2551_v55 = vmul.f32 -0.70710677, %v1385_v44  ;;  %v516_v9 = vsel %vm155_vm0, %v3845_v48, %v332_v4  ;;  %v5755_v2 = vld [vmem:[#allocation2 + $0x328] sm:$0xff] }
 0x1ba   :  { %v506_v35 = vsel %vm155_vm0, %v3846_v3, %v312_v8  ;;  %v5752_v5 = vmul.f32 0.70710677, %v5729_v57  ;;  %2809 = vst [vmem:[#allocation5 + $0x6d0] sm:$0xff] %v2680_v45  ;;  %v2294_v32 = vadd.f32 %v2166_v11, %v5498_v43  ;;  %v2295_v19 = vadd.f32 %v2167_v46, %v2039_v29  ;;  %391 = vrot.lane.b32.xlu2 %v5755_v2, %s3965_s13  ;;  %v5763_v8 = vld [vmem:[#allocation2 + $0x368] sm:$0xff]  ;;  %v3847_v45 = vld [vmem:[#allocation2 + $0x1e0] sm:$0xff] }
 0x1bb   :  { %v3063_v28 = vmul.f32 0.70710677, %v1777_v49  ;;  %v5758_v10 = vadd.f32 %v1025_v60, %v7466_v7  ;;  %3322 = vst [vmem:[#allocation5 + $0x750] sm:$0xff] %v3193_v56  ;;  %v2678_v48 = vadd.f32 %v2550_v41, %v5498_v43  ;;  %v3064_v44 = vmul.f32 0.70710677, %v1769_v52  ;;  %407 = vrot.lane.b32.xlu1 %v5763_v8, %s3965_s13  ;;  %v5769_v60 = vld [vmem:[#allocation2 + $0x360] sm:$0xff] }
 0x1bc   :  { %v3448_v21 = vmul.f32 -0.70710677, %v1777_v49  ;;  %3707 = vst [vmem:[#allocation5 + $0x7d0] sm:$0xff] %v3578_v16  ;;  %v2679_v25 = vadd.f32 %v2551_v55, %v2039_v29  ;;  %v2936_v22 = vmul.f32 0.70710677, %v1142_v42  ;;  %v505_v58 = vsel %vm155_vm0, %v3847_v45, %v310_v39  ;;  %405 = vrot.lane.b32.xlu0 %v5769_v60, %s3965_s13  ;;  %v318_v16 = vpop.permute.xlu1 %317 }
 0x1bd   :  { %v3449_v46 = vmul.f32 -0.70710677, %v1769_v52  ;;  %2422 = vst [vmem:[#allocation5 + $0x640] sm:$0xff] %v2294_v32  ;;  %v3191_v7 = vadd.f32 %v3063_v28, %v5503_v6  ;;  %v772_v49 = vmul.f32 0.70710677, %v516_v9  ;;  %v7470_v32 = vld [vmem:[#allocation12_spill] sm:$0xff] }
 0x1be   :  { %v1028_v56 = vmul.f32 -0.70710677, %v516_v9  ;;  %2423 = vst [vmem:[#allocation5 + $0x648] sm:$0xff] %v2295_v19  ;;  %v3192_v42 = vadd.f32 %v3064_v44, %v2936_v22  ;;  %v762_v29 = vmul.f32 0.70710677, %v506_v35  ;;  %v3576_v4 = vadd.f32 %v3448_v21, %v5503_v6  ;;  %v3848_v6 = vld [vmem:[#allocation2 + $0x200] sm:$0xff] }
 0x1bf   :  { %v1018_v52 = vmul.f32 -0.70710677, %v506_v35  ;;  %2807 = vst [vmem:[#allocation5 + $0x6c0] sm:$0xff] %v2678_v48  ;;  %v761_v41 = vmul.f32 0.70710677, %v505_v58  ;;  %v3577_v9 = vadd.f32 %v3449_v46, %v2936_v22  ;;  %v7472_v48 = vld [vmem:[#allocation10_spill] sm:$0xff]  ;;  %v5790_v21 = vsel %vm155_vm0, %v3848_v6, %v318_v16 }
 0x1c0   :  { %v1017_v3 = vmul.f32 -0.70710677, %v505_v58  ;;  %2808 = vst [vmem:[#allocation5 + $0x6c8] sm:$0xff] %v2679_v25  ;;  %v890_v28 = vadd.f32 %v762_v29, %v7470_v32  ;;  %v5782_v19 = vmul.f32 0.70710677, %v5758_v10  ;;  %v7473_v25 = vld [vmem:[#allocation45_spill] sm:$0xff] }
 0x1c1   :  { %v1146_v45 = vadd.f32 %v1018_v52, %v7470_v32  ;;  %3320 = vst [vmem:[#allocation5 + $0x740] sm:$0xff] %v3191_v7  ;;  %v5785_v35 = vmul.f32 0.70710677, %v5634_v36  ;;  %v889_v44 = vadd.f32 %v761_v41, %v7472_v48  ;;  %v5793_v22 = vadd.f32 %v772_v49, %v7473_v25 }
 0x1c2   :  { %3321 = vst [vmem:[#allocation5 + $0x748] sm:$0xff] %v3192_v42  ;;  %v1320_v46 = vrot.slane %v890_v28, 1  ;;  %v1145_v29 = vadd.f32 %v1017_v3, %v7472_v48  ;;  %v5797_v7 = vadd.f32 %v1028_v56, %v7473_v25  ;;  %v2043_v36 = vmul.f32 0.70710677, %v890_v28 }
 0x1c3   :  { %7471 = vst [vmem:[#allocation38_spill] sm:$0xff] %v5785_v35  ;;  %v1705_v58 = vrot.slane %v1146_v45, 1  ;;  %v2940_v52 = vmul.f32 0.70710677, %v1146_v45  ;;  %v1312_v41 = vrot.slane %v889_v44, 1  ;;  %v7474_v32 = vrot.slane %v5600_v47, 1 }
 0x1c4   :  { %3705 = vst [vmem:[#allocation5 + $0x7c0] sm:$0xff] %v3576_v4  ;;  %v7475_v49 = vrot.slane %v5644_v61, 1  ;;  %v1697_v6 = vrot.slane %v1145_v29, 1  ;;  %v2042_v3 = vmul.f32 0.70710677, %v889_v44  ;;  %v7477_v39 = vrot.slane %v5576_v26, 1  ;;  %v338_v26 = vpop.permute.xlu2 %337 }
 0x1c5   :  { %3706 = vst [vmem:[#allocation5 + $0x7c8] sm:$0xff] %v3577_v9  ;;  %v1353_v42 = vsel %vm1341_vm1, %v1320_v46, %v7474_v32  ;;  %v1361_v28 = vsel %vm1341_vm1, %v1312_v41, %v1320_v46  ;;  %v7476_v9 = vrot.slane %v5545_v15, 1 }
 0x1c6   :  { %v1737_v16 = vsel %vm1341_vm1, %v1705_v58, %v7475_v49  ;;  %v2171_v4 = vmul.f32 0.70710677, %v1353_v42  ;;  %v2555_v48 = vmul.f32 -0.70710677, %v1353_v42  ;;  %v1745_v32 = vsel %vm1341_vm1, %v1697_v6, %v1705_v58  ;;  %v316_v49 = vpop.permute.xlu0 %315 }
 0x1c7   :  { %v3068_v56 = vmul.f32 0.70710677, %v1737_v16  ;;  %v3453_v45 = vmul.f32 -0.70710677, %v1737_v16  ;;  %v1369_v25 = vsel %vm1341_vm1, %v7476_v9, %v1312_v41  ;;  %v1753_v44 = vsel %vm1341_vm1, %v7477_v39, %v1697_v6 }
 0x1c8   :  { %v2299_v42 = vadd.f32 %v2171_v4, %v2043_v36  ;;  %v2683_v11 = vadd.f32 %v2555_v48, %v2043_v36  ;;  %v2169_v43 = vmul.f32 0.70710677, %v1369_v25  ;;  %v2170_v16 = vmul.f32 0.70710677, %v1361_v28 }
 0x1c9   :  { %v3196_v55 = vadd.f32 %v3068_v56, %v2940_v52  ;;  %v3581_v46 = vadd.f32 %v3453_v45, %v2940_v52  ;;  %v2553_v35 = vmul.f32 -0.70710677, %v1369_v25  ;;  %v2554_v15 = vmul.f32 -0.70710677, %v1361_v28  ;;  %v5834_v25 = vld [vmem:[#allocation2 + $0x340] sm:$0xff] }
 0x1ca   :  { %2427 = vst [vmem:[#allocation5 + $0x668] sm:$0xff] %v2299_v42  ;;  %v2297_v41 = vadd.f32 %v2169_v43, %v5572_v30  ;;  %v3066_v9 = vmul.f32 0.70710677, %v1753_v44  ;;  %v5821_v58 = vmul.f32 0.70710677, %v5699_v53  ;;  %v508_v39 = vsel %vm155_vm0, %v3849_v40, %v316_v49  ;;  %v3850_v49 = vld [vmem:[#allocation2 + $0x250] sm:$0xff]  ;;  %397 = vrot.lane.b32.xlu2 %v5834_v25, %s3965_s13 }
 0x1cb   :  { %2812 = vst [vmem:[#allocation5 + $0x6e8] sm:$0xff] %v2683_v11  ;;  %v2298_v6 = vadd.f32 %v2170_v16, %v2042_v3  ;;  %v3067_v52 = vmul.f32 0.70710677, %v1745_v32  ;;  %v5827_v4 = vmul.f32 0.70710677, %v5706_v23  ;;  %v2681_v53 = vadd.f32 %v2553_v35, %v5572_v30  ;;  %v5845_v30 = vld [vmem:[#allocation2 + $0x380] sm:$0xff] }
 0x1cc   :  { %7478 = vst [vmem:[#allocation47_spill] sm:$0xff] %v5821_v58  ;;  %v5831_v43 = vmul.f32 0.70710677, %v5793_v22  ;;  %v3451_v56 = vmul.f32 -0.70710677, %v1753_v44  ;;  %v2682_v28 = vadd.f32 %v2554_v15, %v2042_v3  ;;  %v3194_v23 = vadd.f32 %v3066_v9, %v5580_v54  ;;  %413 = vrot.lane.b32.xlu1 %v5845_v30, %s3965_s13  ;;  %v7481_v16 = vld [vmem:[#allocation9_spill] sm:$0xff] }
 0x1cd   :  { %7479 = vst [vmem:[#allocation40_spill] sm:$0xff] %v5827_v4  ;;  %v2939_v40 = vmul.f32 0.70710677, %v1145_v29  ;;  %v3452_v45 = vmul.f32 -0.70710677, %v1745_v32  ;;  %v519_v42 = vsel %vm155_vm0, %v3850_v49, %v338_v26  ;;  %v5850_v32 = vld [vmem:[#allocation2 + $0x378] sm:$0xff] }
 0x1ce   :  { %3325 = vst [vmem:[#allocation5 + $0x768] sm:$0xff] %v3196_v55  ;;  %v5837_v11 = vmul.f32 0.70710677, %v5797_v7  ;;  %v765_v55 = vmul.f32 0.70710677, %v5790_v21  ;;  %v3579_v44 = vadd.f32 %v3451_v56, %v5580_v54  ;;  %411 = vrot.lane.b32.xlu0 %v5850_v32, %s3965_s13  ;;  %v7486_v48 = vrot.slane %v5600_v47, 1 }
 0x1cf   :  { %3710 = vst [vmem:[#allocation5 + $0x7e8] sm:$0xff] %v3581_v46  ;;  %v3195_v35 = vadd.f32 %v3067_v52, %v2939_v40  ;;  %v1021_v29 = vmul.f32 -0.70710677, %v5790_v21  ;;  %v764_v3 = vmul.f32 0.70710677, %v508_v39  ;;  %v3580_v21 = vadd.f32 %v3452_v45, %v2939_v40 }
 0x1d0   :  { %2425 = vst [vmem:[#allocation5 + $0x658] sm:$0xff] %v2297_v41  ;;  %v5854_v46 = vmul.f32 0.70710677, %v5710_v33  ;;  %v5857_v15 = vadd.f32 %v765_v55, %v7481_v16  ;;  %v1020_v41 = vmul.f32 -0.70710677, %v508_v39  ;;  %v7484_v45 = vrot.slane %v5655_v62, 1 }
 0x1d1   :  { %2426 = vst [vmem:[#allocation5 + $0x660] sm:$0xff] %v2298_v6  ;;  %v775_v9 = vmul.f32 0.70710677, %v519_v42  ;;  %v5862_v26 = vadd.f32 %v1021_v29, %v7481_v16  ;;  %v7482_v6 = vld [vmem:[#allocation48_spill] sm:$0xff]  ;;  %v1031_v54 = vmul.f32 -0.70710677, %v519_v42  ;;  %v324_v29 = vpop.permute.xlu1 %323 }
 0x1d2   :  { %2810 = vst [vmem:[#allocation5 + $0x6d8] sm:$0xff] %v2681_v53  ;;  %v892_v52 = vadd.f32 %v764_v3, %v7482_v6  ;;  %v7261_v33 = vrot.slane %v5857_v15, 1  ;;  %v1148_v53 = vadd.f32 %v1020_v41, %v7482_v6  ;;  %v5868_v56 = vmul.f32 0.70710677, %v5755_v2  ;;  %v344_v2 = vpop.permute.xlu2 %343  ;;  %v3851_v41 = vld [vmem:[#allocation2 + $0x268] sm:$0xff] }
 0x1d3   :  { %7480 = vst [vmem:[#allocation41_spill] sm:$0xff] %v5854_v46  ;;  %v7264_v39 = vrot.slane %v5862_v26, 1  ;;  %v2943_v40 = vmul.f32 0.70710677, %v5862_v26  ;;  %v522_v6 = vsel %vm155_vm0, %v3851_v41, %v344_v2  ;;  %v7487_v36 = vrot.slane %v5524_v63, 1 }
 0x1d4   :  { %2811 = vst [vmem:[#allocation5 + $0x6e0] sm:$0xff] %v2682_v28  ;;  %v2046_v28 = vmul.f32 0.70710677, %v5857_v15  ;;  %v1336_v49 = vrot.slane %v892_v52, 1  ;;  %v1721_v42 = vrot.slane %v1148_v53, 1  ;;  %v7489_v41 = vrot.slane %v5527_v31, 1 }
 0x1d5   :  { %3323 = vst [vmem:[#allocation5 + $0x758] sm:$0xff] %v3194_v23  ;;  %v1458_v23 = vsel %vm1341_vm1, %v7261_v33, %v7484_v45  ;;  %v2045_v55 = vmul.f32 0.70710677, %v892_v52 }
 0x1d6   :  { %7483 = vst [vmem:[#allocation43_spill] sm:$0xff] %v5868_v56  ;;  %v2558_v16 = vmul.f32 -0.70710677, %v1458_v23  ;;  %v1465_v46 = vsel %vm1341_vm1, %v1336_v49, %v7487_v36  ;;  %v1849_v63 = vsel %vm1341_vm1, %v1721_v42, %v7489_v41  ;;  %v7490_v56 = vld [vmem:[#allocation17_spill] sm:$0xff] }
 0x1d7   :  { %3324 = vst [vmem:[#allocation5 + $0x760] sm:$0xff] %v3195_v35  ;;  %v7485_v35 = vrot.slane %v5666_v24, 1  ;;  %v5906_v36 = vadd.f32 %v775_v9, %v7490_v56 }
 0x1d8   :  { %3708 = vst [vmem:[#allocation5 + $0x7d8] sm:$0xff] %v3579_v44  ;;  %v2174_v44 = vmul.f32 0.70710677, %v1458_v23  ;;  %v1533_v23 = vsel %vm188_vm2, %v892_v52, %v1465_v46  ;;  %v1917_v46 = vsel %vm188_vm2, %v1148_v53, %v1849_v63  ;;  %v5934_v63 = vld [vmem:[#allocation2 + $0x388] sm:$0xff] }
 0x1d9   :  { %3709 = vst [vmem:[#allocation5 + $0x7e0] sm:$0xff] %v3580_v21  ;;  %v1842_v3 = vsel %vm1341_vm1, %v7264_v39, %v7485_v35  ;;  %v1345_v21 = vsel %vm1341_vm1, %v7486_v48, %v1336_v49  ;;  %v2686_v35 = vadd.f32 %v2558_v16, %v2046_v28  ;;  %v7488_v39 = vrot.slane %v5644_v61, 1  ;;  %v330_v41 = vpop.permute.xlu1 %329  ;;  %415 = vrot.lane.b32.xlu0 %v5934_v63, %s3965_s13 }
 0x1da   :  { %v3071_v45 = vmul.f32 0.70710677, %v1842_v3  ;;  %v3456_v33 = vmul.f32 -0.70710677, %v1842_v3  ;;  %v2302_v4 = vadd.f32 %v2174_v44, %v2046_v28  ;;  %v2172_v48 = vmul.f32 0.70710677, %v1345_v21 }
 0x1db   :  { %v1729_v2 = vsel %vm1341_vm1, %v7488_v39, %v1721_v42  ;;  %v2173_v52 = vmul.f32 0.70710677, %v1533_v23  ;;  %v2556_v61 = vmul.f32 -0.70710677, %v1345_v21  ;;  %v5911_v28 = vadd.f32 %v1031_v54, %v7490_v56  ;;  %2815 = vst [vmem:[#allocation5 + $0x880] sm:$0xff] %v2686_v35  ;;  %v3852_v21 = vld [vmem:[#allocation2 + $0x218] sm:$0xff] }
 0x1dc   :  { %v3199_v3 = vadd.f32 %v3071_v45, %v2943_v40  ;;  %v3584_v47 = vadd.f32 %v3456_v33, %v2943_v40  ;;  %2430 = vst [vmem:[#allocation5 + $0x800] sm:$0xff] %v2302_v4  ;;  %v2300_v33 = vadd.f32 %v2172_v48, %v5623_v51  ;;  %v2557_v31 = vmul.f32 -0.70710677, %v1533_v23  ;;  %v322_v40 = vpop.permute.xlu0 %321  ;;  %v5917_v56 = vld [vmem:[#allocation2 + $0x358] sm:$0xff]  ;;  %v3853_v23 = vld [vmem:[#allocation2 + $0x210] sm:$0xff] }
 0x1dd   :  { %v2942_v39 = vmul.f32 0.70710677, %v1148_v53  ;;  %v2301_v49 = vadd.f32 %v2173_v52, %v2045_v55  ;;  %v2684_v9 = vadd.f32 %v2556_v61, %v5623_v51  ;;  %v3069_v42 = vmul.f32 0.70710677, %v1729_v2  ;;  %403 = vrot.lane.b32.xlu2 %v5917_v56, %s3965_s13 }
 0x1de   :  { %3328 = vst [vmem:[#allocation5 + $0x900] sm:$0xff] %v3199_v3  ;;  %v3070_v4 = vmul.f32 0.70710677, %v1917_v46  ;;  %v2685_v44 = vadd.f32 %v2557_v31, %v2045_v55  ;;  %v3454_v16 = vmul.f32 -0.70710677, %v1729_v2  ;;  %v512_v54 = vsel %vm155_vm0, %v3852_v21, %v324_v29  ;;  %v5930_v2 = vld [vmem:[#allocation2 + $0x390] sm:$0xff] }
 0x1df   :  { %3713 = vst [vmem:[#allocation5 + $0x980] sm:$0xff] %v3584_v47  ;;  %v3455_v45 = vmul.f32 -0.70710677, %v1917_v46  ;;  %v5920_v35 = vmul.f32 0.70710677, %v5906_v36  ;;  %v3197_v51 = vadd.f32 %v3069_v42, %v5649_v12  ;;  %v511_v55 = vsel %vm155_vm0, %v3853_v23, %v322_v40  ;;  %417 = vrot.lane.b32.xlu1 %v5930_v2, %s3965_s13  ;;  %v7491_v42 = vld [vmem:[#allocation18_spill] sm:$0xff] }
 0x1e0   :  { %v5923_v53 = vmul.f32 0.70710677, %v5911_v28  ;;  %2428 = vst [vmem:[#allocation5 + $0x670] sm:$0xff] %v2300_v33  ;;  %v3198_v29 = vadd.f32 %v3070_v4, %v2942_v39  ;;  %v778_v3 = vmul.f32 0.70710677, %v522_v6  ;;  %v3582_v46 = vadd.f32 %v3454_v16, %v5649_v12  ;;  %v3855_v16 = vld [vmem:[#allocation2 + $0x230] sm:$0xff] }
 0x1e1   :  { %2429 = vst [vmem:[#allocation5 + $0x678] sm:$0xff] %v2301_v49  ;;  %v1034_v47 = vmul.f32 -0.70710677, %v522_v6  ;;  %v768_v52 = vmul.f32 0.70710677, %v512_v54  ;;  %v3583_v6 = vadd.f32 %v3455_v45, %v2942_v39  ;;  %v350_v49 = vpop.permute.xlu2 %349  ;;  %v7494_v45 = vld [vmem:[#allocation20_spill] sm:$0xff] }
 0x1e2   :  { %2813 = vst [vmem:[#allocation5 + $0x6f0] sm:$0xff] %v2684_v9  ;;  %v1024_v61 = vmul.f32 -0.70710677, %v512_v54  ;;  %v767_v31 = vmul.f32 0.70710677, %v511_v55  ;;  %v3854_v9 = vld [vmem:[#allocation2 + $0x280] sm:$0xff]  ;;  %v5949_v54 = vsel %vm155_vm0, %v3855_v16, %v330_v41 }
 0x1e3   :  { %2814 = vst [vmem:[#allocation5 + $0x6f8] sm:$0xff] %v2685_v44  ;;  %v1023_v40 = vmul.f32 -0.70710677, %v511_v55  ;;  %v896_v4 = vadd.f32 %v768_v52, %v7491_v42  ;;  %v5945_v12 = vsel %vm155_vm0, %v3854_v9, %v350_v49  ;;  %v5952_v39 = vmul.f32 0.70710677, %v5763_v8  ;;  %v7495_v23 = vld [vmem:[#allocation14_spill] sm:$0xff] }
 0x1e4   :  { %3326 = vst [vmem:[#allocation5 + $0x770] sm:$0xff] %v3197_v51  ;;  %v1152_v21 = vadd.f32 %v1024_v61, %v7491_v42  ;;  %v5955_v44 = vmul.f32 0.70710677, %v5769_v60  ;;  %v5958_v51 = vadd.f32 %v778_v3, %v7494_v45  ;;  %v895_v55 = vadd.f32 %v767_v31, %v7495_v23 }
 0x1e5   :  { %3327 = vst [vmem:[#allocation5 + $0x778] sm:$0xff] %v3198_v29  ;;  %v1241_v52 = vrot.slane %v896_v4, 1  ;;  %v1151_v49 = vadd.f32 %v1023_v40, %v7495_v23  ;;  %v5963_v41 = vmul.f32 0.70710677, %v5834_v25  ;;  %v5966_v8 = vadd.f32 %v1034_v47, %v7494_v45 }
 0x1e6   :  { %7492 = vst [vmem:[#allocation44_spill] sm:$0xff] %v5952_v39  ;;  %v1626_v61 = vrot.slane %v1152_v21, 1  ;;  %v2049_v29 = vmul.f32 0.70710677, %v896_v4  ;;  %v2946_v60 = vmul.f32 0.70710677, %v1152_v21 }
 0x1e7   :  { %7493 = vst [vmem:[#allocation49_spill] sm:$0xff] %v5955_v44  ;;  %v1233_v42 = vrot.slane %v895_v55, 1  ;;  %v7497_v3 = vrot.slane %v5729_v57, 1  ;;  %v1618_v9 = vrot.slane %v1151_v49, 1  ;;  %v2048_v25 = vmul.f32 0.70710677, %v895_v55 }
 0x1e8   :  { %3711 = vst [vmem:[#allocation5 + $0x7f0] sm:$0xff] %v3582_v46  ;;  %v7498_v46 = vrot.slane %v5758_v10, 1  ;;  %v7499_v21 = vrot.slane %v5655_v62, 1  ;;  %v7500_v33 = vrot.slane %v5666_v24, 1  ;;  %v328_v62 = vpop.permute.xlu0 %327  ;;  %v5991_v24 = vmul.f32 0.70710677, %v5845_v30 }
 0x1e9   :  { %7496 = vst [vmem:[#allocation46_spill] sm:$0xff] %v5963_v41  ;;  %v1434_v31 = vsel %vm1341_vm1, %v1241_v52, %v7497_v3  ;;  %v1442_v47 = vsel %vm1341_vm1, %v1233_v42, %v1241_v52  ;;  %v1826_v3 = vsel %vm1341_vm1, %v1618_v9, %v1626_v61 }
 0x1ea   :  { %3712 = vst [vmem:[#allocation5 + $0x7f8] sm:$0xff] %v3583_v6  ;;  %v1818_v40 = vsel %vm1341_vm1, %v1626_v61, %v7498_v46  ;;  %v2177_v16 = vmul.f32 0.70710677, %v1434_v31  ;;  %v2561_v6 = vmul.f32 -0.70710677, %v1434_v31  ;;  %v1450_v45 = vsel %vm1341_vm1, %v7499_v21, %v1233_v42 }
 0x1eb   :  { %v3074_v23 = vmul.f32 0.70710677, %v1818_v40  ;;  %v3459_v4 = vmul.f32 -0.70710677, %v1818_v40  ;;  %v1834_v55 = vsel %vm1341_vm1, %v7500_v33, %v1618_v9  ;;  %v2175_v44 = vmul.f32 0.70710677, %v1450_v45 }
 0x1ec   :  { %v2305_v46 = vadd.f32 %v2177_v16, %v2049_v29  ;;  %v2689_v31 = vadd.f32 %v2561_v6, %v2049_v29  ;;  %v2176_v52 = vmul.f32 0.70710677, %v1442_v47  ;;  %v2559_v40 = vmul.f32 -0.70710677, %v1450_v45  ;;  %7501 = vst [vmem:[#allocation8_spill] sm:$0xff] %v5991_v24 }
 0x1ed   :  { %v3202_v48 = vadd.f32 %v3074_v23, %v2946_v60  ;;  %v3587_v39 = vadd.f32 %v3459_v4, %v2946_v60  ;;  %v2560_v41 = vmul.f32 -0.70710677, %v1442_v47  ;;  %v2303_v42 = vadd.f32 %v2175_v44, %v5689_v18  ;;  %v3856_v47 = vld [vmem:[#allocation2 + $0x228] sm:$0xff]  ;;  %v6000_v4 = vld [vmem:[#allocation2 + $0x370] sm:$0xff] }
 0x1ee   :  { %2433 = vst [vmem:[#allocation5 + $0x818] sm:$0xff] %v2305_v46  ;;  %v3072_v61 = vmul.f32 0.70710677, %v1834_v55  ;;  %v5995_v29 = vmul.f32 0.70710677, %v5958_v51  ;;  %v2304_v60 = vadd.f32 %v2176_v52, %v2048_v25  ;;  %v2687_v16 = vadd.f32 %v2559_v40, %v5689_v18  ;;  %409 = vrot.lane.b32.xlu2 %v6000_v4, %s3965_s13  ;;  %v6005_v46 = vld [vmem:[#allocation2 + $0x3a8] sm:$0xff] }
 0x1ef   :  { %2818 = vst [vmem:[#allocation5 + $0x898] sm:$0xff] %v2689_v31  ;;  %v3073_v9 = vmul.f32 0.70710677, %v1826_v3  ;;  %v2945_v6 = vmul.f32 0.70710677, %v1151_v49  ;;  %v514_v44 = vsel %vm155_vm0, %v3856_v47, %v328_v62  ;;  %v2688_v30 = vadd.f32 %v2560_v41, %v2048_v25  ;;  %423 = vrot.lane.b32.xlu1 %v6005_v46, %s3965_s13  ;;  %v7502_v25 = vld [vmem:[#allocation23_spill] sm:$0xff] }
 0x1f0   :  { %3331 = vst [vmem:[#allocation5 + $0x918] sm:$0xff] %v3202_v48  ;;  %v3457_v23 = vmul.f32 -0.70710677, %v1834_v55  ;;  %v3458_v21 = vmul.f32 -0.70710677, %v1826_v3  ;;  %v3200_v48 = vadd.f32 %v3072_v61, %v5695_v0  ;;  %v7504_v62 = vld [vmem:[#allocation21_spill] sm:$0xff] }
 0x1f1   :  { %3716 = vst [vmem:[#allocation5 + $0x998] sm:$0xff] %v3587_v39  ;;  %v781_v45 = vmul.f32 0.70710677, %v5945_v12  ;;  %v6008_v18 = vmul.f32 0.70710677, %v5966_v8  ;;  %v6014_v39 = vld [vmem:[#allocation2 + $0x3a0] sm:$0xff]  ;;  %v3201_v41 = vadd.f32 %v3073_v9, %v2945_v6 }
 0x1f2   :  { %2431 = vst [vmem:[#allocation5 + $0x808] sm:$0xff] %v2303_v42  ;;  %v771_v49 = vmul.f32 0.70710677, %v5949_v54  ;;  %v1027_v55 = vmul.f32 -0.70710677, %v5949_v54  ;;  %421 = vrot.lane.b32.xlu0 %v6014_v39, %s3965_s13  ;;  %v3585_v52 = vadd.f32 %v3457_v23, %v5695_v0  ;;  %v7505_v54 = vld [vmem:[#allocation16_spill] sm:$0xff]  ;;  %v356_v23 = vpop.permute.xlu2 %355 }
 0x1f3   :  { %2432 = vst [vmem:[#allocation5 + $0x810] sm:$0xff] %v2304_v60  ;;  %v6017_v3 = vadd.f32 %v781_v45, %v7502_v25  ;;  %v770_v31 = vmul.f32 0.70710677, %v514_v44  ;;  %v6024_v40 = vmul.f32 0.70710677, %v5850_v32  ;;  %v3586_v60 = vadd.f32 %v3458_v21, %v2945_v6 }
 0x1f4   :  { %2816 = vst [vmem:[#allocation5 + $0x888] sm:$0xff] %v2687_v16  ;;  %v899_v42 = vadd.f32 %v771_v49, %v7504_v62  ;;  %v1026_v61 = vmul.f32 -0.70710677, %v514_v44  ;;  %v1037_v9 = vmul.f32 -0.70710677, %v5945_v12  ;;  %v1155_v47 = vadd.f32 %v1027_v55, %v7504_v62  ;;  %v3857_v12 = vld [vmem:[#allocation2 + $0x298] sm:$0xff] }
 0x1f5   :  { %7503 = vst [vmem:[#allocation15_spill] sm:$0xff] %v6024_v40  ;;  %v898_v45 = vadd.f32 %v770_v31, %v7505_v54  ;;  %v6031_v33 = vmul.f32 0.70710677, %v6017_v3  ;;  %v6035_v32 = vmul.f32 0.70710677, %v5917_v56  ;;  %v528_v21 = vsel %vm155_vm0, %v3857_v12, %v356_v23 }
 0x1f6   :  { %2817 = vst [vmem:[#allocation5 + $0x890] sm:$0xff] %v2688_v30  ;;  %v1265_v16 = vrot.slane %v899_v42, 1  ;;  %v1154_v0 = vadd.f32 %v1026_v61, %v7505_v54  ;;  %v1650_v44 = vrot.slane %v1155_v47, 1  ;;  %v2052_v6 = vmul.f32 0.70710677, %v899_v42 }
 0x1f7   :  { %3329 = vst [vmem:[#allocation5 + $0x908] sm:$0xff] %v3200_v48  ;;  %v2949_v30 = vmul.f32 0.70710677, %v1155_v47  ;;  %v7506_v48 = vrot.slane %v5793_v22, 1  ;;  %v1257_v55 = vrot.slane %v898_v45, 1  ;;  %v6044_v56 = vadd.f32 %v1037_v9, %v7502_v25 }
 0x1f8   :  { %3330 = vst [vmem:[#allocation5 + $0x910] sm:$0xff] %v3201_v41  ;;  %v1642_v31 = vrot.slane %v1154_v0, 1  ;;  %v2051_v62 = vmul.f32 0.70710677, %v898_v45  ;;  %v7507_v41 = vrot.slane %v5797_v7, 1  ;;  %v7508_v12 = vrot.slane %v5729_v57, 1  ;;  %v336_v45 = vpop.permute.xlu1 %335 }
 0x1f9   :  { %3714 = vst [vmem:[#allocation5 + $0x988] sm:$0xff] %v3585_v52  ;;  %v1410_v49 = vsel %vm1341_vm1, %v1265_v16, %v7506_v48  ;;  %v1418_v23 = vsel %vm1341_vm1, %v1257_v55, %v1265_v16 }
 0x1fa   :  { %3715 = vst [vmem:[#allocation5 + $0x990] sm:$0xff] %v3586_v60  ;;  %v1794_v42 = vsel %vm1341_vm1, %v1650_v44, %v7507_v41  ;;  %v2180_v61 = vmul.f32 0.70710677, %v1410_v49  ;;  %v2564_v47 = vmul.f32 -0.70710677, %v1410_v49  ;;  %v1426_v60 = vsel %vm1341_vm1, %v7508_v12, %v1257_v55  ;;  %v3858_v12 = vld [vmem:[#allocation2 + $0x248] sm:$0xff] }
 0x1fb   :  { %v3077_v52 = vmul.f32 0.70710677, %v1794_v42  ;;  %v3462_v54 = vmul.f32 -0.70710677, %v1794_v42  ;;  %v1802_v48 = vsel %vm1341_vm1, %v1642_v31, %v1650_v44  ;;  %v7509_v41 = vrot.slane %v5758_v10, 1 }
 0x1fc   :  { %v2308_v25 = vadd.f32 %v2180_v61, %v2052_v6  ;;  %v2692_v9 = vadd.f32 %v2564_v47, %v2052_v6  ;;  %v2178_v40 = vmul.f32 0.70710677, %v1426_v60  ;;  %v2179_v16 = vmul.f32 0.70710677, %v1418_v23  ;;  %v334_v61 = vpop.permute.xlu0 %333 }
 0x1fd   :  { %v1810_v49 = vsel %vm1341_vm1, %v7509_v41, %v1642_v31  ;;  %v3205_v42 = vadd.f32 %v3077_v52, %v2949_v30  ;;  %v3590_v58 = vadd.f32 %v3462_v54, %v2949_v30  ;;  %v2562_v24 = vmul.f32 -0.70710677, %v1426_v60  ;;  %v3859_v41 = vld [vmem:[#allocation2 + $0x240] sm:$0xff] }
 0x1fe   :  { %2436 = vst [vmem:[#allocation5 + $0x830] sm:$0xff] %v2308_v25  ;;  %v2563_v55 = vmul.f32 -0.70710677, %v1418_v23  ;;  %v518_v6 = vsel %vm155_vm0, %v3858_v12, %v336_v45  ;;  %v6066_v44 = vmul.f32 0.70710677, %v6044_v56  ;;  %v2306_v10 = vadd.f32 %v2178_v40, %v5752_v5 }
 0x1ff   :  { %2821 = vst [vmem:[#allocation5 + $0x8b0] sm:$0xff] %v2692_v9  ;;  %v2307_v31 = vadd.f32 %v2179_v16, %v2051_v62  ;;  %v3075_v30 = vmul.f32 0.70710677, %v1810_v49  ;;  %v2690_v52 = vadd.f32 %v2562_v24, %v5752_v5  ;;  %v3076_v54 = vmul.f32 0.70710677, %v1802_v48  ;;  %v6073_v9 = vld [vmem:[#allocation2 + $0x3f8] sm:$0xff] }
 0x200   :  { %3334 = vst [vmem:[#allocation5 + $0x930] sm:$0xff] %v3205_v42  ;;  %v3460_v23 = vmul.f32 -0.70710677, %v1810_v49  ;;  %v2691_v60 = vadd.f32 %v2563_v55, %v2051_v62  ;;  %v2948_v25 = vmul.f32 0.70710677, %v1154_v0  ;;  %v517_v12 = vsel %vm155_vm0, %v3859_v41, %v334_v61  ;;  %443 = vrot.lane.b32.xlu2 %v6073_v9, %s3965_s13  ;;  %v6081_v5 = vld [vmem:[#allocation2 + $0x3c0] sm:$0xff] }
 0x201   :  { %3719 = vst [vmem:[#allocation5 + $0x9b0] sm:$0xff] %v3590_v58  ;;  %v3461_v45 = vmul.f32 -0.70710677, %v1802_v48  ;;  %v3203_v40 = vadd.f32 %v3075_v30, %v5782_v19  ;;  %v6077_v16 = vmul.f32 0.70710677, %v5930_v2  ;;  %429 = vrot.lane.b32.xlu1 %v6081_v5, %s3965_s13  ;;  %v6085_v62 = vld [vmem:[#allocation2 + $0x3b8] sm:$0xff] }
 0x202   :  { %2434 = vst [vmem:[#allocation5 + $0x820] sm:$0xff] %v2306_v10  ;;  %v784_v42 = vmul.f32 0.70710677, %v528_v21  ;;  %v3204_v58 = vadd.f32 %v3076_v54, %v2948_v25  ;;  %v1040_v24 = vmul.f32 -0.70710677, %v528_v21  ;;  %v3588_v48 = vadd.f32 %v3460_v23, %v5782_v19  ;;  %427 = vrot.lane.b32.xlu0 %v6085_v62, %s3965_s13  ;;  %v7511_v10 = vld [vmem:[#allocation24_spill] sm:$0xff]  ;;  %v342_v54 = vpop.permute.xlu1 %341 }
 0x203   :  { %7510 = vst [vmem:[#allocation11_spill] sm:$0xff] %v6077_v16  ;;  %v774_v0 = vmul.f32 0.70710677, %v518_v6  ;;  %v3589_v2 = vadd.f32 %v3461_v45, %v2948_v25  ;;  %v1030_v49 = vmul.f32 -0.70710677, %v518_v6 }
 0x204   :  { %2435 = vst [vmem:[#allocation5 + $0x828] sm:$0xff] %v2307_v31  ;;  %v773_v55 = vmul.f32 0.70710677, %v517_v12  ;;  %v6091_v61 = vadd.f32 %v784_v42, %v5280_v50  ;;  %v6094_v21 = vadd.f32 %v1040_v24, %v5280_v50  ;;  %v1029_v30 = vmul.f32 -0.70710677, %v517_v12  ;;  %v3860_v42 = vld [vmem:[#allocation2 + $0x260] sm:$0xff] }
 0x205   :  { %2819 = vst [vmem:[#allocation5 + $0x8a0] sm:$0xff] %v2690_v52  ;;  %v902_v31 = vadd.f32 %v774_v0, %v7511_v10  ;;  %v6098_v19 = vmul.f32 0.70710677, %v5934_v63  ;;  %v1158_v6 = vadd.f32 %v1030_v49, %v7511_v10  ;;  %v7513_v52 = vld [vmem:[#allocation19_spill] sm:$0xff]  ;;  %v521_v24 = vsel %vm155_vm0, %v3860_v42, %v342_v54 }
 0x206   :  { %2820 = vst [vmem:[#allocation5 + $0x8a8] sm:$0xff] %v2691_v60  ;;  %v901_v23 = vadd.f32 %v773_v55, %v7513_v52  ;;  %v6103_v60 = vmul.f32 0.70710677, %v6000_v4  ;;  %v6106_v25 = vmul.f32 0.70710677, %v6091_v61  ;;  %v1157_v41 = vadd.f32 %v1029_v30, %v7513_v52 }
 0x207   :  { %3332 = vst [vmem:[#allocation5 + $0x920] sm:$0xff] %v3203_v40  ;;  %v6109_v50 = vmul.f32 0.70710677, %v6094_v21  ;;  %v1289_v45 = vrot.slane %v902_v31, 1  ;;  %v1674_v63 = vrot.slane %v1158_v6, 1  ;;  %v7515_v4 = vrot.slane %v5906_v36, 1 }
 0x208   :  { %7512 = vst [vmem:[#allocation13_spill] sm:$0xff] %v6098_v19  ;;  %v2055_v12 = vmul.f32 0.70710677, %v902_v31  ;;  %v2952_v40 = vmul.f32 0.70710677, %v1158_v6  ;;  %v1281_v0 = vrot.slane %v901_v23, 1 }
 0x209   :  { %7514 = vst [vmem:[#allocation12_spill] sm:$0xff] %v6103_v60  ;;  %v1666_v49 = vrot.slane %v1157_v41, 1  ;;  %v2054_v55 = vmul.f32 0.70710677, %v901_v23  ;;  %v7516_v10 = vrot.slane %v5911_v28, 1  ;;  %v7517_v54 = vrot.slane %v5793_v22, 1 }
 0x20a   :  { %3333 = vst [vmem:[#allocation5 + $0x928] sm:$0xff] %v3204_v58  ;;  %v1386_v58 = vsel %vm1341_vm1, %v1289_v45, %v7515_v4  ;;  %v2951_v6 = vmul.f32 0.70710677, %v1157_v41  ;;  %v362_v4 = vpop.permute.xlu2 %361 }
 0x20b   :  { %3717 = vst [vmem:[#allocation5 + $0x9a0] sm:$0xff] %v3588_v48  ;;  %v1770_v48 = vsel %vm1341_vm1, %v1674_v63, %v7516_v10  ;;  %v2183_v31 = vmul.f32 0.70710677, %v1386_v58  ;;  %v2567_v30 = vmul.f32 -0.70710677, %v1386_v58  ;;  %v1402_v42 = vsel %vm1341_vm1, %v7517_v54, %v1281_v0  ;;  %v3861_v54 = vld [vmem:[#allocation2 + $0x2b0] sm:$0xff] }
 0x20c   :  { %3718 = vst [vmem:[#allocation5 + $0x9a8] sm:$0xff] %v3589_v2  ;;  %v3080_v52 = vmul.f32 0.70710677, %v1770_v48  ;;  %v3465_v47 = vmul.f32 -0.70710677, %v1770_v48  ;;  %v1394_v2 = vsel %vm1341_vm1, %v1281_v0, %v1289_v45  ;;  %v1778_v19 = vsel %vm1341_vm1, %v1666_v49, %v1674_v63 }
 0x20d   :  { %v2311_v23 = vadd.f32 %v2183_v31, %v2055_v12  ;;  %v2695_v57 = vadd.f32 %v2567_v30, %v2055_v12  ;;  %v7518_v10 = vrot.slane %v5797_v7, 1  ;;  %v2181_v16 = vmul.f32 0.70710677, %v1402_v42  ;;  %v340_v31 = vpop.permute.xlu0 %339 }
 0x20e   :  { %v3208_v58 = vadd.f32 %v3080_v52, %v2952_v40  ;;  %v3593_v48 = vadd.f32 %v3465_v47, %v2952_v40  ;;  %v2182_v45 = vmul.f32 0.70710677, %v1394_v2  ;;  %v2565_v60 = vmul.f32 -0.70710677, %v1402_v42 }
 0x20f   :  { %v1786_v41 = vsel %vm1341_vm1, %v7518_v10, %v1666_v49  ;;  %2439 = vst [vmem:[#allocation5 + $0x848] sm:$0xff] %v2311_v23  ;;  %v2566_v0 = vmul.f32 -0.70710677, %v1394_v2  ;;  %v531_v12 = vsel %vm155_vm0, %v3861_v54, %v362_v4  ;;  %v2309_v7 = vadd.f32 %v2181_v16, %v5831_v43  ;;  %v348_v10 = vpop.permute.xlu1 %347 }
 0x210   :  { %2824 = vst [vmem:[#allocation5 + $0x8c8] sm:$0xff] %v2695_v57  ;;  %v2310_v63 = vadd.f32 %v2182_v45, %v2054_v55  ;;  %v3078_v30 = vmul.f32 0.70710677, %v1786_v41  ;;  %v3079_v49 = vmul.f32 0.70710677, %v1778_v19  ;;  %v2693_v40 = vadd.f32 %v2565_v60, %v5831_v43  ;;  %v3862_v57 = vld [vmem:[#allocation2 + $0x258] sm:$0xff] }
 0x211   :  { %3337 = vst [vmem:[#allocation5 + $0x948] sm:$0xff] %v3208_v58  ;;  %v3463_v52 = vmul.f32 -0.70710677, %v1786_v41  ;;  %v3464_v23 = vmul.f32 -0.70710677, %v1778_v19  ;;  %v2694_v2 = vadd.f32 %v2566_v0, %v2054_v55  ;;  %v520_v16 = vsel %vm155_vm0, %v3862_v57, %v340_v31  ;;  %v6148_v45 = vld [vmem:[#allocation2 + $0x398] sm:$0xff] }
 0x212   :  { %3722 = vst [vmem:[#allocation5 + $0x9c8] sm:$0xff] %v3593_v48  ;;  %v6141_v42 = vmul.f32 0.70710677, %v6005_v46  ;;  %v6144_v4 = vmul.f32 0.70710677, %v6014_v39  ;;  %v3206_v43 = vadd.f32 %v3078_v30, %v5837_v11  ;;  %419 = vrot.lane.b32.xlu2 %v6148_v45, %s3965_s13  ;;  %v6153_v46 = vld [vmem:[#allocation2 + $0x3d8] sm:$0xff]  ;;  %v3207_v39 = vadd.f32 %v3079_v49, %v2951_v6 }
 0x213   :  { %2437 = vst [vmem:[#allocation5 + $0x838] sm:$0xff] %v2309_v7  ;;  %v787_v60 = vmul.f32 0.70710677, %v531_v12  ;;  %v1043_v19 = vmul.f32 -0.70710677, %v531_v12  ;;  %435 = vrot.lane.b32.xlu1 %v6153_v46, %s3965_s13  ;;  %v6157_v58 = vld [vmem:[#allocation2 + $0x3d0] sm:$0xff]  ;;  %v3591_v48 = vadd.f32 %v3463_v52, %v5837_v11  ;;  %v368_v11 = vpop.permute.xlu2 %367 }
 0x214   :  { %7519 = vst [vmem:[#allocation10_spill] sm:$0xff] %v6141_v42  ;;  %v777_v55 = vmul.f32 0.70710677, %v521_v24  ;;  %v1033_v41 = vmul.f32 -0.70710677, %v521_v24  ;;  %v3863_v12 = vld [vmem:[#allocation2 + $0x278] sm:$0xff]  ;;  %433 = vrot.lane.b32.xlu0 %v6157_v58, %s3965_s13  ;;  %v3592_v24 = vadd.f32 %v3464_v23, %v2951_v6 }
 0x215   :  { %7520 = vst [vmem:[#allocation45_spill] sm:$0xff] %v6144_v4  ;;  %v776_v0 = vmul.f32 0.70710677, %v520_v16  ;;  %v1032_v54 = vmul.f32 -0.70710677, %v520_v16  ;;  %v6162_v31 = vsel %vm155_vm0, %v3863_v12, %v348_v10  ;;  %v6167_v7 = vadd.f32 %v787_v60, %v5316_v14  ;;  %v3864_v10 = vld [vmem:[#allocation2 + $0x2c8] sm:$0xff] }
 0x216   :  { %2438 = vst [vmem:[#allocation5 + $0x840] sm:$0xff] %v2310_v63  ;;  %v7521_v63 = vld [vmem:[#allocation27_spill] sm:$0xff]  ;;  %v6173_v57 = vmul.f32 0.70710677, %v6073_v9  ;;  %v6176_v16 = vmul.f32 0.70710677, %v6081_v5  ;;  %v534_v6 = vsel %vm155_vm0, %v3864_v10, %v368_v11 }
 0x217   :  { %2822 = vst [vmem:[#allocation5 + $0x8b8] sm:$0xff] %v2693_v40  ;;  %v905_v30 = vadd.f32 %v777_v55, %v7521_v63  ;;  %v1161_v49 = vadd.f32 %v1033_v41, %v7521_v63  ;;  %v7522_v40 = vld [vmem:[#allocation22_spill] sm:$0xff]  ;;  %v6181_v23 = vmul.f32 0.70710677, %v6167_v7  ;;  %v6185_v55 = vadd.f32 %v1043_v19, %v5316_v14  ;;  %v3867_v42 = vld [vmem:[#allocation2 + $0x2e0] sm:$0xff] }
 0x218   :  { %2823 = vst [vmem:[#allocation5 + $0x8c0] sm:$0xff] %v2694_v2  ;;  %v904_v52 = vadd.f32 %v776_v0, %v7522_v40  ;;  %v7524_v0 = vrot.slane %v5958_v51, 1  ;;  %v7525_v12 = vrot.slane %v5966_v8, 1 }
 0x219   :  { %3335 = vst [vmem:[#allocation5 + $0x938] sm:$0xff] %v3206_v43  ;;  %v1313_v2 = vrot.slane %v905_v30, 1  ;;  %v1698_v60 = vrot.slane %v1161_v49, 1  ;;  %v1160_v43 = vadd.f32 %v1032_v54, %v7522_v40  ;;  %v2058_v9 = vmul.f32 0.70710677, %v905_v30 }
 0x21a   :  { %7523 = vst [vmem:[#allocation9_spill] sm:$0xff] %v6176_v16  ;;  %v2955_v41 = vmul.f32 0.70710677, %v1161_v49  ;;  %v1305_v5 = vrot.slane %v904_v52, 1  ;;  %v2057_v54 = vmul.f32 0.70710677, %v904_v52 }
 0x21b   :  { %3336 = vst [vmem:[#allocation5 + $0x940] sm:$0xff] %v3207_v39  ;;  %v1362_v39 = vsel %vm1341_vm1, %v1313_v2, %v7524_v0  ;;  %v1746_v63 = vsel %vm1341_vm1, %v1698_v60, %v7525_v12  ;;  %v1690_v11 = vrot.slane %v1160_v43, 1  ;;  %v7527_v0 = vrot.slane %v5911_v28, 1 }
 0x21c   :  { %3720 = vst [vmem:[#allocation5 + $0x9b8] sm:$0xff] %v3591_v48  ;;  %v2186_v48 = vmul.f32 0.70710677, %v1362_v39  ;;  %v2570_v40 = vmul.f32 -0.70710677, %v1362_v39  ;;  %v1370_v19 = vsel %vm1341_vm1, %v1305_v5, %v1313_v2 }
 0x21d   :  { %3721 = vst [vmem:[#allocation5 + $0x9c0] sm:$0xff] %v3592_v24  ;;  %v3083_v14 = vmul.f32 0.70710677, %v1746_v63  ;;  %v3468_v30 = vmul.f32 -0.70710677, %v1746_v63  ;;  %v7526_v24 = vrot.slane %v5906_v36, 1  ;;  %v1754_v10 = vsel %vm1341_vm1, %v1690_v11, %v1698_v60  ;;  %v346_v36 = vpop.permute.xlu0 %345 }
 0x21e   :  { %v1762_v52 = vsel %vm1341_vm1, %v7527_v0, %v1690_v11  ;;  %v2314_v12 = vadd.f32 %v2186_v48, %v2058_v9  ;;  %v2698_v39 = vadd.f32 %v2570_v40, %v2058_v9  ;;  %v2185_v2 = vmul.f32 0.70710677, %v1370_v19 }
 0x21f   :  { %v1378_v49 = vsel %vm1341_vm1, %v7526_v24, %v1305_v5  ;;  %v3211_v47 = vadd.f32 %v3083_v14, %v2955_v41  ;;  %v3596_v16 = vadd.f32 %v3468_v30, %v2955_v41  ;;  %v2569_v4 = vmul.f32 -0.70710677, %v1370_v19  ;;  %v3865_v30 = vld [vmem:[#allocation2 + $0x270] sm:$0xff] }
 0x220   :  { %v2184_v22 = vmul.f32 0.70710677, %v1378_v49  ;;  %v2568_v63 = vmul.f32 -0.70710677, %v1378_v49  ;;  %v6209_v5 = vmul.f32 0.70710677, %v6185_v55  ;;  %v2313_v9 = vadd.f32 %v2185_v2, %v2057_v54 }
 0x221   :  { %2442 = vst [vmem:[#allocation5 + $0x860] sm:$0xff] %v2314_v12  ;;  %v3081_v60 = vmul.f32 0.70710677, %v1762_v52  ;;  %v2954_v48 = vmul.f32 0.70710677, %v1160_v43  ;;  %v523_v24 = vsel %vm155_vm0, %v3865_v30, %v346_v36  ;;  %v6216_v49 = vld [vmem:[#allocation2 + $0x3b0] sm:$0xff] }
 0x222   :  { %v2312_v28 = vadd.f32 %v2184_v22, %v5920_v35  ;;  %2827 = vst [vmem:[#allocation5 + $0x8e0] sm:$0xff] %v2698_v39  ;;  %v3082_v40 = vmul.f32 0.70710677, %v1754_v10  ;;  %v2696_v41 = vadd.f32 %v2568_v63, %v5920_v35  ;;  %v3466_v14 = vmul.f32 -0.70710677, %v1762_v52  ;;  %425 = vrot.lane.b32.xlu2 %v6216_v49, %s3965_s13  ;;  %v7528_v2 = vld [vmem:[#allocation30_spill] sm:$0xff] }
 0x223   :  { %3340 = vst [vmem:[#allocation5 + $0x960] sm:$0xff] %v3211_v47  ;;  %v3467_v19 = vmul.f32 -0.70710677, %v1754_v10  ;;  %v2697_v22 = vadd.f32 %v2569_v4, %v2057_v54  ;;  %v6219_v0 = vmul.f32 0.70710677, %v6085_v62  ;;  %v6223_v47 = vld [vmem:[#allocation2 + $0x3f0] sm:$0xff]  ;;  %v3209_v35 = vadd.f32 %v3081_v60, %v5923_v53 }
 0x224   :  { %3725 = vst [vmem:[#allocation5 + $0x9e0] sm:$0xff] %v3596_v16  ;;  %v790_v12 = vmul.f32 0.70710677, %v534_v6  ;;  %v1046_v43 = vmul.f32 -0.70710677, %v534_v6  ;;  %441 = vrot.lane.b32.xlu1 %v6223_v47, %s3965_s13  ;;  %v6229_v16 = vld [vmem:[#allocation2 + $0x3e8] sm:$0xff]  ;;  %v3210_v62 = vadd.f32 %v3082_v40, %v2954_v48  ;;  %v3594_v4 = vadd.f32 %v3466_v14, %v5923_v53 }
 0x225   :  { %2440 = vst [vmem:[#allocation5 + $0x850] sm:$0xff] %v2312_v28  ;;  %v780_v10 = vmul.f32 0.70710677, %v6162_v31  ;;  %v1036_v54 = vmul.f32 -0.70710677, %v6162_v31  ;;  %439 = vrot.lane.b32.xlu0 %v6229_v16, %s3965_s13  ;;  %v354_v28 = vpop.permute.xlu1 %353  ;;  %v3595_v60 = vadd.f32 %v3467_v19, %v2954_v48 }
 0x226   :  { %2441 = vst [vmem:[#allocation5 + $0x858] sm:$0xff] %v2313_v9  ;;  %v779_v52 = vmul.f32 0.70710677, %v523_v24  ;;  %v6236_v6 = vadd.f32 %v790_v12, %v5387_v34  ;;  %v6239_v39 = vadd.f32 %v1046_v43, %v5387_v34  ;;  %v1035_v36 = vmul.f32 -0.70710677, %v523_v24  ;;  %v3866_v24 = vld [vmem:[#allocation2 + $0x290] sm:$0xff] }
 0x227   :  { %2825 = vst [vmem:[#allocation5 + $0x8d0] sm:$0xff] %v2696_v41  ;;  %v908_v63 = vadd.f32 %v780_v10, %v7528_v2  ;;  %v1164_v53 = vadd.f32 %v1036_v54, %v7528_v2  ;;  %v6245_v9 = vmul.f32 0.70710677, %v6148_v45  ;;  %v7529_v45 = vrot.slane %v5857_v15, 1 }
 0x228   :  { %2826 = vst [vmem:[#allocation5 + $0x8d8] sm:$0xff] %v2697_v22  ;;  %v907_v31 = vadd.f32 %v779_v52, %v5274_v17  ;;  %v6248_v40 = vmul.f32 0.70710677, %v6236_v6  ;;  %v6251_v34 = vmul.f32 0.70710677, %v6239_v39  ;;  %v1163_v14 = vadd.f32 %v1035_v36, %v5274_v17 }
 0x229   :  { %3338 = vst [vmem:[#allocation5 + $0x950] sm:$0xff] %v3209_v35  ;;  %v1337_v41 = vrot.slane %v908_v63, 1  ;;  %v1722_v30 = vrot.slane %v1164_v53, 1  ;;  %v2061_v48 = vmul.f32 0.70710677, %v908_v63  ;;  %v527_v22 = vsel %vm155_vm0, %v3866_v24, %v354_v28 }
 0x22a   :  { %3339 = vst [vmem:[#allocation5 + $0x958] sm:$0xff] %v3210_v62  ;;  %v2958_v19 = vmul.f32 0.70710677, %v1164_v53  ;;  %v1329_v35 = vrot.slane %v907_v31, 1  ;;  %v1714_v43 = vrot.slane %v1163_v14, 1  ;;  %v7530_v62 = vrot.slane %v5862_v26, 1 }
 0x22b   :  { %3723 = vst [vmem:[#allocation5 + $0x9d0] sm:$0xff] %v3594_v4  ;;  %v1466_v12 = vsel %vm1341_vm1, %v1337_v41, %v7529_v45  ;;  %v2060_v10 = vmul.f32 0.70710677, %v907_v31  ;;  %v2957_v52 = vmul.f32 0.70710677, %v1163_v14  ;;  %v7532_v26 = vrot.slane %v5958_v51, 1 }
 0x22c   :  { %3724 = vst [vmem:[#allocation5 + $0x9d8] sm:$0xff] %v3595_v60  ;;  %v1549_v17 = vsel %vm188_vm2, %v908_v63, %v1466_v12  ;;  %v1850_v54 = vsel %vm1341_vm1, %v1722_v30, %v7530_v62  ;;  %v6267_v4 = vmul.f32 0.70710677, %v6153_v46  ;;  %v1346_v28 = vsel %vm1341_vm1, %v1329_v35, %v1337_v41  ;;  %v374_v60 = vpop.permute.xlu2 %373  ;;  %v352_v41 = vpop.permute.xlu0 %351 }
 0x22d   :  { %v1933_v15 = vsel %vm188_vm2, %v1164_v53, %v1850_v54  ;;  %v2189_v2 = vmul.f32 0.70710677, %v1549_v17  ;;  %v2573_v36 = vmul.f32 -0.70710677, %v1549_v17  ;;  %v1354_v24 = vsel %vm1341_vm1, %v7532_v26, %v1329_v35 }
 0x22e   :  { %7531 = vst [vmem:[#allocation48_spill] sm:$0xff] %v6267_v4  ;;  %v3086_v31 = vmul.f32 0.70710677, %v1933_v15  ;;  %v3471_v63 = vmul.f32 -0.70710677, %v1933_v15  ;;  %v1730_v46 = vsel %vm1341_vm1, %v1714_v43, %v1722_v30  ;;  %v7533_v53 = vrot.slane %v5966_v8, 1 }
 0x22f   :  { %v2317_v14 = vadd.f32 %v2189_v2, %v2061_v48  ;;  %v2701_v45 = vadd.f32 %v2573_v36, %v2061_v48  ;;  %v2187_v17 = vmul.f32 0.70710677, %v1354_v24  ;;  %v2188_v15 = vmul.f32 0.70710677, %v1346_v28 }
 0x230   :  { %v1738_v12 = vsel %vm1341_vm1, %v7533_v53, %v1714_v43  ;;  %v3214_v62 = vadd.f32 %v3086_v31, %v2958_v19  ;;  %v3599_v54 = vadd.f32 %v3471_v63, %v2958_v19  ;;  %v2571_v11 = vmul.f32 -0.70710677, %v1354_v24  ;;  %v3868_v43 = vld [vmem:[#allocation2 + $0x288] sm:$0xff] }
 0x231   :  { %2445 = vst [vmem:[#allocation5 + $0x878] sm:$0xff] %v2317_v14  ;;  %v2315_v51 = vadd.f32 %v2187_v17, %v5995_v29  ;;  %v2572_v35 = vmul.f32 -0.70710677, %v1346_v28  ;;  %v3084_v26 = vmul.f32 0.70710677, %v1738_v12  ;;  %v537_v30 = vsel %vm155_vm0, %v3867_v42, %v374_v60 }
 0x232   :  { %2830 = vst [vmem:[#allocation5 + $0x8f8] sm:$0xff] %v2701_v45  ;;  %v2316_v8 = vadd.f32 %v2188_v15, %v2060_v10  ;;  %v3085_v48 = vmul.f32 0.70710677, %v1730_v46  ;;  %v3469_v2 = vmul.f32 -0.70710677, %v1738_v12  ;;  %v526_v36 = vsel %vm155_vm0, %v3868_v43, %v352_v41 }
 0x233   :  { %3343 = vst [vmem:[#allocation5 + $0x978] sm:$0xff] %v3214_v62  ;;  %v2699_v31 = vadd.f32 %v2571_v11, %v5995_v29  ;;  %v3470_v63 = vmul.f32 -0.70710677, %v1730_v46  ;;  %v6291_v28 = vmul.f32 0.70710677, %v6157_v58  ;;  %v2700_v42 = vadd.f32 %v2572_v35, %v2060_v10  ;;  %v360_v46 = vpop.permute.xlu1 %359  ;;  %v6299_v62 = vld [vmem:[#allocation2 + $0x3c8] sm:$0xff] }
 0x234   :  { %3728 = vst [vmem:[#allocation5 + $0x9f8] sm:$0xff] %v3599_v54  ;;  %v793_v60 = vmul.f32 0.70710677, %v537_v30  ;;  %v1049_v14 = vmul.f32 -0.70710677, %v537_v30  ;;  %v3212_v45 = vadd.f32 %v3084_v26, %v6008_v18  ;;  %v3213_v53 = vadd.f32 %v3085_v48, %v2957_v52  ;;  %v7535_v54 = vld [vmem:[#allocation25_spill] sm:$0xff]  ;;  %431 = vrot.lane.b32.xlu2 %v6299_v62, %s3965_s13 }
 0x235   :  { %7534 = vst [vmem:[#allocation17_spill] sm:$0xff] %v6291_v28  ;;  %v783_v12 = vmul.f32 0.70710677, %v527_v22  ;;  %v1039_v17 = vmul.f32 -0.70710677, %v527_v22  ;;  %v3597_v41 = vadd.f32 %v3469_v2, %v6008_v18  ;;  %v380_v18 = vpop.permute.xlu2 %379  ;;  %v3598_v35 = vadd.f32 %v3470_v63, %v2957_v52  ;;  %v7536_v30 = vld [vmem:[#allocation26_spill] sm:$0xff] }
 0x236   :  { %2443 = vst [vmem:[#allocation5 + $0x868] sm:$0xff] %v2315_v51  ;;  %v6297_v29 = vadd.f32 %v793_v60, %v5457_v13  ;;  %v782_v58 = vmul.f32 0.70710677, %v526_v36  ;;  %v1038_v11 = vmul.f32 -0.70710677, %v526_v36  ;;  %v6302_v10 = vadd.f32 %v1049_v14, %v5457_v13  ;;  %v3869_v63 = vld [vmem:[#allocation2 + $0x2f8] sm:$0xff] }
 0x237   :  { %2444 = vst [vmem:[#allocation5 + $0x870] sm:$0xff] %v2316_v8  ;;  %v911_v15 = vadd.f32 %v783_v12, %v7535_v54  ;;  %v1167_v51 = vadd.f32 %v1039_v17, %v7535_v54  ;;  %v6307_v22 = vmul.f32 0.70710677, %v6216_v49  ;;  %v6316_v13 = vmul.f32 0.70710677, %v6223_v47 }
 0x238   :  { %2828 = vst [vmem:[#allocation5 + $0x8e8] sm:$0xff] %v2699_v31  ;;  %v6312_v26 = vmul.f32 0.70710677, %v6297_v29  ;;  %v910_v8 = vadd.f32 %v782_v58, %v7536_v30  ;;  %v6319_v48 = vmul.f32 0.70710677, %v6302_v10  ;;  %v1166_v43 = vadd.f32 %v1038_v11, %v7536_v30 }
 0x239   :  { %2829 = vst [vmem:[#allocation5 + $0x8f0] sm:$0xff] %v2700_v42  ;;  %v1234_v49 = vrot.slane %v911_v15, 1  ;;  %v1619_v2 = vrot.slane %v1167_v51, 1  ;;  %v2064_v36 = vmul.f32 0.70710677, %v911_v15  ;;  %v540_v42 = vsel %vm155_vm0, %v3869_v63, %v380_v18 }
 0x23a   :  { %7537 = vst [vmem:[#allocation18_spill] sm:$0xff] %v6316_v13  ;;  %v2961_v31 = vmul.f32 0.70710677, %v1167_v51  ;;  %v1226_v52 = vrot.slane %v910_v8, 1  ;;  %v7538_v47 = vrot.slane %v6091_v61, 1  ;;  %v7539_v14 = vrot.slane %v6094_v21, 1  ;;  %v358_v13 = vpop.permute.xlu0 %357 }
 0x23b   :  { %3341 = vst [vmem:[#allocation5 + $0x968] sm:$0xff] %v3212_v45  ;;  %v1611_v12 = vrot.slane %v1166_v43, 1  ;;  %v7541_v30 = vrot.slane %v6044_v56, 1  ;;  %v366_v4 = vpop.permute.xlu1 %365 }
 0x23c   :  { %3342 = vst [vmem:[#allocation5 + $0x970] sm:$0xff] %v3213_v53  ;;  %v1443_v60 = vsel %vm1341_vm1, %v1234_v49, %v7538_v47  ;;  %v1827_v45 = vsel %vm1341_vm1, %v1619_v2, %v7539_v14  ;;  %v2063_v53 = vmul.f32 0.70710677, %v910_v8  ;;  %v1451_v11 = vsel %vm1341_vm1, %v1226_v52, %v1234_v49 }
 0x23d   :  { %3726 = vst [vmem:[#allocation5 + $0x9e8] sm:$0xff] %v3597_v41  ;;  %v2192_v17 = vmul.f32 0.70710677, %v1443_v60  ;;  %v2576_v58 = vmul.f32 -0.70710677, %v1443_v60  ;;  %v7540_v41 = vrot.slane %v6017_v3, 1  ;;  %v1835_v18 = vsel %vm1341_vm1, %v1611_v12, %v1619_v2 }
 0x23e   :  { %3727 = vst [vmem:[#allocation5 + $0x9f0] sm:$0xff] %v3598_v35  ;;  %v3089_v15 = vmul.f32 0.70710677, %v1827_v45  ;;  %v3474_v51 = vmul.f32 -0.70710677, %v1827_v45  ;;  %v1843_v35 = vsel %vm1341_vm1, %v7541_v30, %v1611_v12  ;;  %v3870_v2 = vld [vmem:[#allocation2 + $0x2a8] sm:$0xff] }
 0x23f   :  { %v1459_v54 = vsel %vm1341_vm1, %v7540_v41, %v1226_v52  ;;  %v2320_v8 = vadd.f32 %v2192_v17, %v2064_v36  ;;  %v2704_v63 = vadd.f32 %v2576_v58, %v2064_v36  ;;  %v2191_v60 = vmul.f32 0.70710677, %v1451_v11 }
 0x240   :  { %v2190_v47 = vmul.f32 0.70710677, %v1459_v54  ;;  %v3217_v49 = vadd.f32 %v3089_v15, %v2961_v31  ;;  %v3602_v14 = vadd.f32 %v3474_v51, %v2961_v31  ;;  %v2574_v24 = vmul.f32 -0.70710677, %v1459_v54  ;;  %v6354_v51 = vld [vmem:[#allocation2 + $0x3e0] sm:$0xff] }
 0x241   :  { %v2575_v19 = vmul.f32 -0.70710677, %v1451_v11  ;;  %2448 = vst [vmem:[#allocation5 + $0xa10] sm:$0xff] %v2320_v8  ;;  %v2960_v45 = vmul.f32 0.70710677, %v1166_v43  ;;  %v530_v28 = vsel %vm155_vm0, %v3870_v2, %v360_v46  ;;  %v2319_v36 = vadd.f32 %v2191_v60, %v2063_v53  ;;  %v3871_v43 = vld [vmem:[#allocation2 + $0x2a0] sm:$0xff]  ;;  %437 = vrot.lane.b32.xlu2 %v6354_v51, %s3965_s13 }
 0x242   :  { %v2318_v52 = vadd.f32 %v2190_v47, %v6031_v33  ;;  %v3087_v41 = vmul.f32 0.70710677, %v1843_v35  ;;  %2833 = vst [vmem:[#allocation5 + $0xa90] sm:$0xff] %v2704_v63  ;;  %v3088_v17 = vmul.f32 0.70710677, %v1835_v18  ;;  %v2702_v31 = vadd.f32 %v2574_v24, %v6031_v33  ;;  %v3872_v63 = vld [vmem:[#allocation2 + $0x2c0] sm:$0xff] }
 0x243   :  { %v3472_v58 = vmul.f32 -0.70710677, %v1843_v35  ;;  %3346 = vst [vmem:[#allocation5 + $0xb10] sm:$0xff] %v3217_v49  ;;  %v3473_v11 = vmul.f32 -0.70710677, %v1835_v18  ;;  %v529_v15 = vsel %vm155_vm0, %v3871_v43, %v358_v13  ;;  %v2703_v46 = vadd.f32 %v2575_v19, %v2063_v53  ;;  %v7543_v47 = vld [vmem:[#allocation33_spill] sm:$0xff] }
 0x244   :  { %v6350_v54 = vmul.f32 0.70710677, %v6229_v16  ;;  %3731 = vst [vmem:[#allocation5 + $0xb90] sm:$0xff] %v3602_v14  ;;  %v796_v30 = vmul.f32 0.70710677, %v540_v42  ;;  %v6358_v35 = vsel %vm155_vm0, %v3872_v63, %v366_v4  ;;  %v3215_v33 = vadd.f32 %v3087_v41, %v6066_v44 }
 0x245   :  { %v1052_v8 = vmul.f32 -0.70710677, %v540_v42  ;;  %2446 = vst [vmem:[#allocation5 + $0xa00] sm:$0xff] %v2318_v52  ;;  %v3216_v16 = vadd.f32 %v3088_v17, %v2960_v45  ;;  %v786_v24 = vmul.f32 0.70710677, %v530_v28  ;;  %v3600_v18 = vadd.f32 %v3472_v58, %v6066_v44  ;;  %v7544_v44 = vld [vmem:[#allocation28_spill] sm:$0xff] }
 0x246   :  { %7542 = vst [vmem:[#allocation20_spill] sm:$0xff] %v6350_v54  ;;  %v1042_v13 = vmul.f32 -0.70710677, %v530_v28  ;;  %v6365_v19 = vadd.f32 %v796_v30, %v5531_v20  ;;  %v785_v4 = vmul.f32 0.70710677, %v529_v15  ;;  %v3601_v53 = vadd.f32 %v3473_v11, %v2960_v45  ;;  %v364_v30 = vpop.permute.xlu0 %363 }
 0x247   :  { %2447 = vst [vmem:[#allocation5 + $0xa08] sm:$0xff] %v2319_v36  ;;  %v6368_v42 = vadd.f32 %v1052_v8, %v5531_v20  ;;  %v914_v60 = vadd.f32 %v786_v24, %v7543_v47  ;;  %v1041_v14 = vmul.f32 -0.70710677, %v529_v15  ;;  %v789_v2 = vmul.f32 0.70710677, %v6358_v35 }
 0x248   :  { %2831 = vst [vmem:[#allocation5 + $0xa80] sm:$0xff] %v2702_v31  ;;  %v1170_v49 = vadd.f32 %v1042_v13, %v7543_v47  ;;  %v7282_v28 = vrot.slane %v6365_v19, 1  ;;  %v913_v41 = vadd.f32 %v785_v4, %v7544_v44  ;;  %v2077_v36 = vmul.f32 0.70710677, %v6365_v19 }
 0x249   :  { %2832 = vst [vmem:[#allocation5 + $0xa88] sm:$0xff] %v2703_v46  ;;  %v7281_v52 = vrot.slane %v6368_v42, 1  ;;  %v1258_v45 = vrot.slane %v914_v60, 1  ;;  %v7545_v58 = vrot.slane %v6017_v3, 1  ;;  %v7546_v11 = vrot.slane %v6044_v56, 1 }
 0x24a   :  { %3344 = vst [vmem:[#allocation5 + $0xb00] sm:$0xff] %v3215_v33  ;;  %v1643_v17 = vrot.slane %v1170_v49, 1  ;;  %v2974_v15 = vmul.f32 0.70710677, %v6368_v42  ;;  %v2067_v46 = vmul.f32 0.70710677, %v914_v60 }
 0x24b   :  { %3345 = vst [vmem:[#allocation5 + $0xb08] sm:$0xff] %v3216_v16  ;;  %v1467_v31 = vsel %vm1341_vm1, %v7282_v28, %v7545_v58  ;;  %v1851_v43 = vsel %vm1341_vm1, %v7281_v52, %v7546_v11  ;;  %v7547_v56 = vrot.slane %v6167_v7, 1  ;;  %v7548_v33 = vrot.slane %v6185_v55, 1 }
 0x24c   :  { %3729 = vst [vmem:[#allocation5 + $0xb80] sm:$0xff] %v3600_v18  ;;  %v1565_v3 = vsel %vm188_vm2, %v6365_v19, %v1467_v31  ;;  %v1949_v8 = vsel %vm188_vm2, %v6368_v42, %v1851_v43  ;;  %v1169_v18 = vadd.f32 %v1041_v14, %v7544_v44  ;;  %v1250_v4 = vrot.slane %v913_v41, 1  ;;  %v7549_v31 = vld [vmem:[#allocation29_spill] sm:$0xff] }
 0x24d   :  { %v1419_v63 = vsel %vm1341_vm1, %v1258_v45, %v7547_v56  ;;  %v1803_v16 = vsel %vm1341_vm1, %v1643_v17, %v7548_v33  ;;  %3730 = vst [vmem:[#allocation5 + $0xb88] sm:$0xff] %v3601_v53  ;;  %v2205_v24 = vmul.f32 0.70710677, %v1565_v3  ;;  %v2589_v13 = vmul.f32 -0.70710677, %v1565_v3 }
 0x24e   :  { %v3102_v47 = vmul.f32 0.70710677, %v1949_v8  ;;  %v3487_v60 = vmul.f32 -0.70710677, %v1949_v8  ;;  %v2195_v58 = vmul.f32 0.70710677, %v1419_v63  ;;  %v6407_v11 = vadd.f32 %v789_v2, %v7549_v31 }
 0x24f   :  { %v2333_v43 = vadd.f32 %v2205_v24, %v2077_v36  ;;  %v2717_v52 = vadd.f32 %v2589_v13, %v2077_v36  ;;  %v2579_v56 = vmul.f32 -0.70710677, %v1419_v63  ;;  %v3092_v28 = vmul.f32 0.70710677, %v1803_v16 }
 0x250   :  { %v3230_v20 = vadd.f32 %v3102_v47, %v2974_v15  ;;  %v3615_v12 = vadd.f32 %v3487_v60, %v2974_v15  ;;  %v2964_v54 = vmul.f32 0.70710677, %v1170_v49  ;;  %v3477_v33 = vmul.f32 -0.70710677, %v1803_v16  ;;  %v3873_v47 = vld [vmem:[#allocation2 + $0x2b8] sm:$0xff] }
 0x251   :  { %2461 = vst [vmem:[#allocation5 + $0xa78] sm:$0xff] %v2333_v43  ;;  %v2323_v53 = vadd.f32 %v2195_v58, %v2067_v46  ;;  %v1427_v14 = vsel %vm1341_vm1, %v1250_v4, %v1258_v45  ;;  %v7550_v44 = vrot.slane %v6091_v61, 1  ;;  %v6416_v2 = vmul.f32 0.70710677, %v6299_v62  ;;  %v372_v45 = vpop.permute.xlu1 %371 }
 0x252   :  { %2846 = vst [vmem:[#allocation5 + $0xaf8] sm:$0xff] %v2717_v52  ;;  %v2707_v36 = vadd.f32 %v2579_v56, %v2067_v46  ;;  %v3220_v8 = vadd.f32 %v3092_v28, %v2964_v54  ;;  %v1635_v63 = vrot.slane %v1169_v18, 1  ;;  %v3605_v49 = vadd.f32 %v3477_v33, %v2964_v54 }
 0x253   :  { %v1435_v3 = vsel %vm1341_vm1, %v7550_v44, %v1250_v4  ;;  %3359 = vst [vmem:[#allocation5 + $0xb78] sm:$0xff] %v3230_v20  ;;  %v2194_v16 = vmul.f32 0.70710677, %v1427_v14  ;;  %v1282_v13 = vrot.slane %v6407_v11, 1  ;;  %v7551_v4 = vrot.slane %v6094_v21, 1 }
 0x254   :  { %v2193_v15 = vmul.f32 0.70710677, %v1435_v3  ;;  %v2577_v24 = vmul.f32 -0.70710677, %v1435_v3  ;;  %3744 = vst [vmem:[#allocation5 + $0xbf8] sm:$0xff] %v3615_v12  ;;  %v1811_v61 = vsel %vm1341_vm1, %v1635_v63, %v1643_v17  ;;  %v532_v60 = vsel %vm155_vm0, %v3873_v47, %v364_v30  ;;  %v370_v12 = vpop.permute.xlu0 %369 }
 0x255   :  { %v1819_v62 = vsel %vm1341_vm1, %v7551_v4, %v1635_v63  ;;  %v2066_v52 = vmul.f32 0.70710677, %v913_v41  ;;  %v2578_v28 = vmul.f32 -0.70710677, %v1427_v14  ;;  %2451 = vst [vmem:[#allocation5 + $0xa28] sm:$0xff] %v2323_v53  ;;  %v7552_v21 = vrot.slane %v6236_v6, 1 }
 0x256   :  { %v2321_v20 = vadd.f32 %v2193_v15, %v6106_v25  ;;  %v2963_v54 = vmul.f32 0.70710677, %v1169_v18  ;;  %v3090_v46 = vmul.f32 0.70710677, %v1819_v62  ;;  %2836 = vst [vmem:[#allocation5 + $0xaa8] sm:$0xff] %v2707_v36  ;;  %v2705_v18 = vadd.f32 %v2577_v24, %v6106_v25  ;;  %v3874_v53 = vld [vmem:[#allocation2 + $0x2d8] sm:$0xff] }
 0x257   :  { %v2322_v58 = vadd.f32 %v2194_v16, %v2066_v52  ;;  %v3091_v17 = vmul.f32 0.70710677, %v1811_v61  ;;  %v3475_v43 = vmul.f32 -0.70710677, %v1819_v62  ;;  %v1395_v41 = vsel %vm1341_vm1, %v1282_v13, %v7552_v21  ;;  %3349 = vst [vmem:[#allocation5 + $0xb28] sm:$0xff] %v3220_v8  ;;  %v3875_v36 = vld [vmem:[#allocation2 + $0x2d0] sm:$0xff] }
 0x258   :  { %v3476_v56 = vmul.f32 -0.70710677, %v1811_v61  ;;  %v1045_v33 = vmul.f32 -0.70710677, %v6358_v35  ;;  %v536_v30 = vsel %vm155_vm0, %v3874_v53, %v372_v45  ;;  %3734 = vst [vmem:[#allocation5 + $0xba8] sm:$0xff] %v3605_v49  ;;  %v2706_v14 = vadd.f32 %v2578_v28, %v2066_v52 }
 0x259   :  { %v2070_v44 = vmul.f32 0.70710677, %v6407_v11  ;;  %v2198_v3 = vmul.f32 0.70710677, %v1395_v41  ;;  %v6441_v63 = vsel %vm155_vm0, %v3875_v36, %v370_v12  ;;  %2449 = vst [vmem:[#allocation5 + $0xa18] sm:$0xff] %v2321_v20  ;;  %v3218_v25 = vadd.f32 %v3090_v46, %v6109_v50 }
 0x25a   :  { %v1173_v8 = vadd.f32 %v1045_v33, %v7549_v31  ;;  %v2582_v35 = vmul.f32 -0.70710677, %v1395_v41  ;;  %v788_v15 = vmul.f32 0.70710677, %v532_v60  ;;  %2450 = vst [vmem:[#allocation5 + $0xa20] sm:$0xff] %v2322_v58  ;;  %v3219_v16 = vadd.f32 %v3091_v17, %v2963_v54  ;;  %v378_v58 = vpop.permute.xlu1 %377 }
 0x25b   :  { %v3603_v49 = vadd.f32 %v3475_v43, %v6109_v50  ;;  %v3604_v24 = vadd.f32 %v3476_v56, %v2963_v54  ;;  %v1044_v45 = vmul.f32 -0.70710677, %v532_v60  ;;  %2834 = vst [vmem:[#allocation5 + $0xa98] sm:$0xff] %v2705_v18  ;;  %v2326_v4 = vadd.f32 %v2198_v3, %v2070_v44 }
 0x25c   :  { %v1667_v61 = vrot.slane %v1173_v8, 1  ;;  %v2967_v62 = vmul.f32 0.70710677, %v1173_v8  ;;  %v916_v52 = vadd.f32 %v788_v15, %v5452_v27  ;;  %2835 = vst [vmem:[#allocation5 + $0xaa0] sm:$0xff] %v2706_v14  ;;  %v2710_v28 = vadd.f32 %v2582_v35, %v2070_v44 }
 0x25d   :  { %v1172_v20 = vadd.f32 %v1044_v45, %v5452_v27  ;;  %v792_v46 = vmul.f32 0.70710677, %v536_v30  ;;  %v1048_v31 = vmul.f32 -0.70710677, %v536_v30  ;;  %3347 = vst [vmem:[#allocation5 + $0xb18] sm:$0xff] %v3218_v25  ;;  %v7553_v47 = vrot.slane %v6239_v39, 1 }
 0x25e   :  { %v1274_v54 = vrot.slane %v916_v52, 1  ;;  %v2069_v60 = vmul.f32 0.70710677, %v916_v52  ;;  %v791_v12 = vmul.f32 0.70710677, %v6441_v63  ;;  %3348 = vst [vmem:[#allocation5 + $0xb20] sm:$0xff] %v3219_v16 }
 0x25f   :  { %v1779_v50 = vsel %vm1341_vm1, %v1667_v61, %v7553_v47  ;;  %v1659_v21 = vrot.slane %v1172_v20, 1  ;;  %v920_v41 = vadd.f32 %v792_v46, %v5491_v38  ;;  %3732 = vst [vmem:[#allocation5 + $0xb98] sm:$0xff] %v3603_v49  ;;  %v7554_v18 = vrot.slane %v6167_v7, 1  ;;  %v3876_v25 = vld [vmem:[#allocation2 + $0x2f0] sm:$0xff]  ;;  %v7556_v16 = vld [vmem:[#allocation36_spill] sm:$0xff] }
 0x260   :  { %v3095_v17 = vmul.f32 0.70710677, %v1779_v50  ;;  %v3480_v43 = vmul.f32 -0.70710677, %v1779_v50  ;;  %v1403_v27 = vsel %vm1341_vm1, %v1274_v54, %v1282_v13  ;;  %v2966_v33 = vmul.f32 0.70710677, %v1172_v20 }
 0x261   :  { %v1411_v56 = vsel %vm1341_vm1, %v7554_v18, %v1274_v54  ;;  %v6463_v53 = vadd.f32 %v1048_v31, %v5491_v38  ;;  %3733 = vst [vmem:[#allocation5 + $0xba0] sm:$0xff] %v3604_v24  ;;  %v1787_v44 = vsel %vm1341_vm1, %v1659_v21, %v1667_v61  ;;  %v7555_v11 = vrot.slane %v6185_v55, 1 }
 0x262   :  { %v3223_v30 = vadd.f32 %v3095_v17, %v2967_v62  ;;  %v3608_v14 = vadd.f32 %v3480_v43, %v2967_v62  ;;  %2454 = vst [vmem:[#allocation5 + $0xa40] sm:$0xff] %v2326_v4  ;;  %v2196_v7 = vmul.f32 0.70710677, %v1411_v56  ;;  %v2197_v3 = vmul.f32 0.70710677, %v1403_v27  ;;  %v376_v4 = vpop.permute.xlu0 %375  ;;  %v3877_v43 = vld [vmem:[#allocation2 + $0x2e8] sm:$0xff] }
 0x263   :  { %v1795_v13 = vsel %vm1341_vm1, %v7555_v11, %v1659_v21  ;;  %v1306_v36 = vrot.slane %v920_v41, 1  ;;  %v6473_v38 = vsel %vm155_vm0, %v3876_v25, %v378_v58  ;;  %2839 = vst [vmem:[#allocation5 + $0xac0] sm:$0xff] %v2710_v28  ;;  %v2580_v8 = vmul.f32 -0.70710677, %v1411_v56 }
 0x264   :  { %v2581_v35 = vmul.f32 -0.70710677, %v1403_v27  ;;  %v1691_v15 = vrot.slane %v6463_v53, 1  ;;  %v919_v49 = vadd.f32 %v791_v12, %v7556_v16  ;;  %3352 = vst [vmem:[#allocation5 + $0xb40] sm:$0xff] %v3223_v30  ;;  %v2324_v55 = vadd.f32 %v2196_v7, %v6181_v23  ;;  %v384_v30 = vpop.permute.xlu1 %383 }
 0x265   :  { %v2325_v24 = vadd.f32 %v2197_v3, %v2069_v60  ;;  %v3093_v45 = vmul.f32 0.70710677, %v1795_v13  ;;  %v3094_v61 = vmul.f32 0.70710677, %v1787_v44  ;;  %3737 = vst [vmem:[#allocation5 + $0xbc0] sm:$0xff] %v3608_v14  ;;  %v2708_v62 = vadd.f32 %v2580_v8, %v6181_v23 }
 0x266   :  { %v2709_v52 = vadd.f32 %v2581_v35, %v2069_v60  ;;  %v3478_v20 = vmul.f32 -0.70710677, %v1795_v13  ;;  %v3479_v46 = vmul.f32 -0.70710677, %v1787_v44  ;;  %2452 = vst [vmem:[#allocation5 + $0xa30] sm:$0xff] %v2324_v55  ;;  %v7557_v47 = vrot.slane %v6297_v29, 1  ;;  %v386_v60 = vpop.permute.xlu2 %385 }
 0x267   :  { %v3221_v28 = vadd.f32 %v3093_v45, %v6209_v5  ;;  %v6481_v31 = vmul.f32 0.70710677, %v6354_v51  ;;  %v7558_v54 = vrot.slane %v6302_v10, 1  ;;  %2453 = vst [vmem:[#allocation5 + $0xa38] sm:$0xff] %v2325_v24  ;;  %v3222_v12 = vadd.f32 %v3094_v61, %v2966_v33  ;;  %v3878_v13 = vld [vmem:[#allocation2 + $0x310] sm:$0xff]  ;;  %v3879_v24 = vld [vmem:[#allocation2 + $0x308] sm:$0xff] }
 0x268   :  { %v1371_v50 = vsel %vm1341_vm1, %v1306_v36, %v7557_v47  ;;  %v2073_v58 = vmul.f32 0.70710677, %v920_v41  ;;  %v538_v51 = vsel %vm155_vm0, %v3877_v43, %v376_v4  ;;  %2837 = vst [vmem:[#allocation5 + $0xab0] sm:$0xff] %v2708_v62  ;;  %v3606_v21 = vadd.f32 %v3478_v20, %v6209_v5 }
 0x269   :  { %v1755_v23 = vsel %vm1341_vm1, %v1691_v15, %v7558_v54  ;;  %v2201_v17 = vmul.f32 0.70710677, %v1371_v50  ;;  %v2585_v27 = vmul.f32 -0.70710677, %v1371_v50  ;;  %v2970_v18 = vmul.f32 0.70710677, %v6463_v53 }
 0x26a   :  { %v1298_v56 = vrot.slane %v919_v49, 1  ;;  %2838 = vst [vmem:[#allocation5 + $0xab8] sm:$0xff] %v2709_v52  ;;  %v3607_v14 = vadd.f32 %v3479_v46, %v2966_v33  ;;  %v3098_v44 = vmul.f32 0.70710677, %v1755_v23  ;;  %v3483_v11 = vmul.f32 -0.70710677, %v1755_v23 }
 0x26b   :  { %v6499_v41 = vsel %vm155_vm0, %v3878_v13, %v386_v60  ;;  %3350 = vst [vmem:[#allocation5 + $0xb30] sm:$0xff] %v3221_v28  ;;  %v2329_v7 = vadd.f32 %v2201_v17, %v2073_v58  ;;  %v1047_v3 = vmul.f32 -0.70710677, %v6441_v63  ;;  %v7559_v25 = vrot.slane %v6236_v6, 1  ;;  %v7560_v54 = vld [vmem:[#allocation31_spill] sm:$0xff] }
 0x26c   :  { %v1379_v5 = vsel %vm1341_vm1, %v1298_v56, %v1306_v36  ;;  %3351 = vst [vmem:[#allocation5 + $0xb38] sm:$0xff] %v3222_v12  ;;  %v2713_v33 = vadd.f32 %v2585_v27, %v2073_v58  ;;  %v2072_v35 = vmul.f32 0.70710677, %v919_v49  ;;  %v6510_v45 = vsel %vm155_vm0, %v3879_v24, %v384_v30  ;;  %v382_v12 = vpop.permute.xlu0 %381 }
 0x26d   :  { %v1387_v8 = vsel %vm1341_vm1, %v7559_v25, %v1298_v56  ;;  %3735 = vst [vmem:[#allocation5 + $0xbb0] sm:$0xff] %v3606_v21  ;;  %v3226_v61 = vadd.f32 %v3098_v44, %v2970_v18  ;;  %v1175_v63 = vadd.f32 %v1047_v3, %v7556_v16  ;;  %v2200_v4 = vmul.f32 0.70710677, %v1379_v5 }
 0x26e   :  { %v2199_v55 = vmul.f32 0.70710677, %v1387_v8  ;;  %v2583_v36 = vmul.f32 -0.70710677, %v1387_v8  ;;  %3736 = vst [vmem:[#allocation5 + $0xbb8] sm:$0xff] %v3607_v14  ;;  %v3611_v6 = vadd.f32 %v3483_v11, %v2970_v18  ;;  %v7561_v17 = vrot.slane %v6239_v39, 1 }
 0x26f   :  { %v2584_v52 = vmul.f32 -0.70710677, %v1379_v5  ;;  %v795_v20 = vmul.f32 0.70710677, %v6473_v38  ;;  %2457 = vst [vmem:[#allocation5 + $0xa58] sm:$0xff] %v2329_v7  ;;  %v1683_v49 = vrot.slane %v1175_v63, 1  ;;  %v2328_v46 = vadd.f32 %v2200_v4, %v2072_v35 }
 0x270   :  { %v2327_v62 = vadd.f32 %v2199_v55, %v6248_v40  ;;  %v2711_v28 = vadd.f32 %v2583_v36, %v6248_v40  ;;  %v2969_v47 = vmul.f32 0.70710677, %v1175_v63  ;;  %2842 = vst [vmem:[#allocation5 + $0xad8] sm:$0xff] %v2713_v33  ;;  %v1051_v16 = vmul.f32 -0.70710677, %v6473_v38  ;;  %v7562_v14 = vld [vmem:[#allocation32_spill] sm:$0xff]  ;;  %v392_v33 = vpop.permute.xlu2 %391 }
 0x271   :  { %v2712_v50 = vadd.f32 %v2584_v52, %v2072_v35  ;;  %v923_v23 = vadd.f32 %v795_v20, %v7560_v54  ;;  %v794_v60 = vmul.f32 0.70710677, %v538_v51  ;;  %3355 = vst [vmem:[#allocation5 + $0xb58] sm:$0xff] %v3226_v61  ;;  %v1763_v58 = vsel %vm1341_vm1, %v1683_v49, %v1691_v15 }
 0x272   :  { %v1771_v40 = vsel %vm1341_vm1, %v7561_v17, %v1683_v49  ;;  %v1050_v43 = vmul.f32 -0.70710677, %v538_v51  ;;  %v799_v21 = vmul.f32 0.70710677, %v6499_v41  ;;  %3740 = vst [vmem:[#allocation5 + $0xbd8] sm:$0xff] %v3611_v6  ;;  %v1179_v38 = vadd.f32 %v1051_v16, %v7560_v54  ;;  %v3880_v49 = vld [vmem:[#allocation2 + $0x300] sm:$0xff] }
 0x273   :  { %v3096_v27 = vmul.f32 0.70710677, %v1771_v40  ;;  %v3097_v18 = vmul.f32 0.70710677, %v1763_v58  ;;  %v1330_v56 = vrot.slane %v923_v23, 1  ;;  %2455 = vst [vmem:[#allocation5 + $0xa48] sm:$0xff] %v2327_v62  ;;  %v922_v44 = vadd.f32 %v794_v60, %v7562_v14  ;;  %v390_v62 = vpop.permute.xlu1 %389 }
 0x274   :  { %v3481_v30 = vmul.f32 -0.70710677, %v1771_v40  ;;  %v3482_v53 = vmul.f32 -0.70710677, %v1763_v58  ;;  %v1178_v15 = vadd.f32 %v1050_v43, %v7562_v14  ;;  %2456 = vst [vmem:[#allocation5 + $0xa50] sm:$0xff] %v2328_v46  ;;  %v7563_v51 = vrot.slane %v6365_v19, 1  ;;  %v388_v17 = vpop.permute.xlu0 %387 }
 0x275   :  { %v3224_v39 = vadd.f32 %v3096_v27, %v6251_v34  ;;  %v3225_v11 = vadd.f32 %v3097_v18, %v2969_v47  ;;  %v1715_v7 = vrot.slane %v1179_v38, 1  ;;  %2840 = vst [vmem:[#allocation5 + $0xac8] sm:$0xff] %v2711_v28  ;;  %v2076_v25 = vmul.f32 0.70710677, %v923_v23  ;;  %v3881_v23 = vld [vmem:[#allocation2 + $0x328] sm:$0xff]  ;;  %v7567_v43 = vld [vmem:[#allocation47_spill] sm:$0xff] }
 0x276   :  { %v1347_v13 = vsel %vm1341_vm1, %v1330_v56, %v7563_v51  ;;  %v3609_v3 = vadd.f32 %v3481_v30, %v6251_v34  ;;  %v3610_v5 = vadd.f32 %v3482_v53, %v2969_v47  ;;  %2841 = vst [vmem:[#allocation5 + $0xad0] sm:$0xff] %v2712_v50  ;;  %v7564_v35 = vrot.slane %v6368_v42, 1  ;;  %v3882_v18 = vld [vmem:[#allocation2 + $0x320] sm:$0xff]  ;;  %v3883_v51 = vld [vmem:[#allocation2 + $0x318] sm:$0xff] }
 0x277   :  { %v2204_v8 = vmul.f32 0.70710677, %v1347_v13  ;;  %v2588_v24 = vmul.f32 -0.70710677, %v1347_v13  ;;  %v2973_v61 = vmul.f32 0.70710677, %v1179_v38  ;;  %v541_v46 = vsel %vm155_vm0, %v3880_v49, %v382_v12 }
 0x278   :  { %v1731_v55 = vsel %vm1341_vm1, %v1715_v7, %v7564_v35  ;;  %v1322_v19 = vrot.slane %v922_v44, 1  ;;  %3353 = vst [vmem:[#allocation5 + $0xb48] sm:$0xff] %v3224_v39  ;;  %v1707_v6 = vrot.slane %v1178_v15, 1  ;;  %v7565_v20 = vrot.slane %v6297_v29, 1 }
 0x279   :  { %v2332_v63 = vadd.f32 %v2204_v8, %v2076_v25  ;;  %v3101_v4 = vmul.f32 0.70710677, %v1731_v55  ;;  %v3486_v36 = vmul.f32 -0.70710677, %v1731_v55  ;;  %3354 = vst [vmem:[#allocation5 + $0xb50] sm:$0xff] %v3225_v11  ;;  %v2716_v34 = vadd.f32 %v2588_v24, %v2076_v25 }
 0x27a   :  { %v1355_v52 = vsel %vm1341_vm1, %v1322_v19, %v1330_v56  ;;  %v1363_v42 = vsel %vm1341_vm1, %v7565_v20, %v1322_v19  ;;  %3738 = vst [vmem:[#allocation5 + $0xbc8] sm:$0xff] %v3609_v3  ;;  %v7566_v47 = vrot.slane %v6302_v10, 1  ;;  %v2075_v54 = vmul.f32 0.70710677, %v922_v44  ;;  %v7568_v19 = vld [vmem:[#allocation42_spill] sm:$0xff]  ;;  %v3884_v20 = vld [vmem:[#allocation2 + $0x340] sm:$0xff] }
 0x27b   :  { %v3229_v28 = vadd.f32 %v3101_v4, %v2973_v61  ;;  %v6554_v16 = vsel %vm155_vm0, %v3881_v23, %v392_v33  ;;  %3739 = vst [vmem:[#allocation5 + $0xbd0] sm:$0xff] %v3610_v5  ;;  %v3614_v29 = vadd.f32 %v3486_v36, %v2973_v61  ;;  %v1739_v60 = vsel %vm1341_vm1, %v1707_v6, %v1715_v7  ;;  %v398_v33 = vpop.permute.xlu2 %397  ;;  %v7570_v23 = vld [vmem:[#allocation43_spill] sm:$0xff] }
 0x27c   :  { %v1747_v50 = vsel %vm1341_vm1, %v7566_v47, %v1707_v6  ;;  %v2202_v58 = vmul.f32 0.70710677, %v1363_v42  ;;  %v2203_v12 = vmul.f32 0.70710677, %v1355_v52  ;;  %2460 = vst [vmem:[#allocation5 + $0xa70] sm:$0xff] %v2332_v63  ;;  %v6559_v27 = vadd.f32 %v799_v21, %v7567_v43  ;;  %v396_v6 = vpop.permute.xlu1 %395 }
 0x27d   :  { %v2586_v40 = vmul.f32 -0.70710677, %v1363_v42  ;;  %v2587_v10 = vmul.f32 -0.70710677, %v1355_v52  ;;  %v6563_v38 = vsel %vm155_vm0, %v3882_v18, %v390_v62  ;;  %2845 = vst [vmem:[#allocation5 + $0xaf0] sm:$0xff] %v2716_v34  ;;  %v6569_v21 = vsel %vm155_vm0, %v3883_v51, %v388_v17 }
 0x27e   :  { %v2330_v56 = vadd.f32 %v2202_v58, %v6312_v26  ;;  %v2331_v30 = vadd.f32 %v2203_v12, %v2075_v54  ;;  %v2972_v53 = vmul.f32 0.70710677, %v1178_v15  ;;  %v3099_v14 = vmul.f32 0.70710677, %v1747_v50  ;;  %3358 = vst [vmem:[#allocation5 + $0xb70] sm:$0xff] %v3229_v28 }
 0x27f   :  { %v2714_v44 = vadd.f32 %v2586_v40, %v6312_v26  ;;  %v3100_v39 = vmul.f32 0.70710677, %v1739_v60  ;;  %v3484_v11 = vmul.f32 -0.70710677, %v1747_v50  ;;  %3743 = vst [vmem:[#allocation5 + $0xbf0] sm:$0xff] %v3614_v29  ;;  %v2715_v13 = vadd.f32 %v2587_v10, %v2075_v54 }
 0x280   :  { %v3227_v7 = vadd.f32 %v3099_v14, %v6319_v48  ;;  %v3485_v3 = vmul.f32 -0.70710677, %v1739_v60  ;;  %v1055_v5 = vmul.f32 -0.70710677, %v6499_v41  ;;  %2458 = vst [vmem:[#allocation5 + $0xa60] sm:$0xff] %v2330_v56  ;;  %v1235_v25 = vrot.slane %v6559_v27, 1 }
 0x281   :  { %v3228_v15 = vadd.f32 %v3100_v39, %v2972_v53  ;;  %v6575_v26 = vmul.f32 0.70710677, %v6559_v27  ;;  %v798_v8 = vmul.f32 0.70710677, %v6510_v45  ;;  %2459 = vst [vmem:[#allocation5 + $0xa68] sm:$0xff] %v2331_v30  ;;  %v3612_v35 = vadd.f32 %v3484_v11, %v6319_v48  ;;  %v7569_v48 = vld [vmem:[#allocation34_spill] sm:$0xff] }
 0x282   :  { %v6580_v55 = vadd.f32 %v1055_v5, %v7567_v43  ;;  %v1054_v24 = vmul.f32 -0.70710677, %v6510_v45  ;;  %v797_v61 = vmul.f32 0.70710677, %v541_v46  ;;  %2843 = vst [vmem:[#allocation5 + $0xae0] sm:$0xff] %v2714_v44  ;;  %v3613_v41 = vadd.f32 %v3485_v3, %v2972_v53  ;;  %v3885_v5 = vld [vmem:[#allocation2 + $0x338] sm:$0xff] }
 0x283   :  { %v926_v63 = vadd.f32 %v798_v8, %v7568_v19  ;;  %v1053_v4 = vmul.f32 -0.70710677, %v541_v46  ;;  %v802_v36 = vmul.f32 0.70710677, %v6554_v16  ;;  %2844 = vst [vmem:[#allocation5 + $0xae8] sm:$0xff] %v2715_v13  ;;  %v6592_v45 = vsel %vm155_vm0, %v3884_v20, %v398_v33  ;;  %v394_v8 = vpop.permute.xlu0 %393 }
 0x284   :  { %v1620_v62 = vrot.slane %v6580_v55, 1  ;;  %v1182_v34 = vadd.f32 %v1054_v24, %v7568_v19  ;;  %v6588_v52 = vadd.f32 %v797_v61, %v7569_v48  ;;  %3356 = vst [vmem:[#allocation5 + $0xb60] sm:$0xff] %v3227_v7  ;;  %v6595_v42 = vmul.f32 0.70710677, %v6580_v55 }
 0x285   :  { %v1227_v49 = vrot.slane %v926_v63, 1  ;;  %v2079_v46 = vmul.f32 0.70710677, %v926_v63  ;;  %v6598_v28 = vadd.f32 %v1053_v4, %v7569_v48  ;;  %3357 = vst [vmem:[#allocation5 + $0xb68] sm:$0xff] %v3228_v15  ;;  %v6602_v29 = vadd.f32 %v802_v36, %v7570_v23 }
 0x286   :  { %v1612_v47 = vrot.slane %v1182_v34, 1  ;;  %v2976_v50 = vmul.f32 0.70710677, %v1182_v34  ;;  %v1219_v54 = vrot.slane %v6588_v52, 1  ;;  %3741 = vst [vmem:[#allocation5 + $0xbe0] sm:$0xff] %v3612_v35  ;;  %v6625_v15 = vsel %vm155_vm0, %v3885_v5, %v396_v6  ;;  %v402_v34 = vpop.permute.xlu1 %401 }
 0x287   :  { %v1452_v60 = vsel %vm1341_vm1, %v1227_v49, %v1235_v25  ;;  %v1604_v58 = vrot.slane %v6598_v28, 1  ;;  %v2078_v12 = vmul.f32 0.70710677, %v6588_v52  ;;  %v2975_v17 = vmul.f32 0.70710677, %v6598_v28  ;;  %3742 = vst [vmem:[#allocation5 + $0xbe8] sm:$0xff] %v3613_v41  ;;  %v404_v41 = vpop.permute.xlu2 %403 }
 0x288   :  { %v1836_v40 = vsel %vm1341_vm1, %v1612_v47, %v1620_v62  ;;  %v2207_v10 = vmul.f32 0.70710677, %v1452_v60  ;;  %v2591_v43 = vmul.f32 -0.70710677, %v1452_v60  ;;  %v1460_v18 = vsel %vm1341_vm1, %v1219_v54, %v1227_v49 }
 0x289   :  { %v3104_v56 = vmul.f32 0.70710677, %v1836_v40  ;;  %v3489_v30 = vmul.f32 -0.70710677, %v1836_v40  ;;  %v1844_v53 = vsel %vm1341_vm1, %v1604_v58, %v1612_v47  ;;  %v2206_v14 = vmul.f32 0.70710677, %v1460_v18 }
 0x28a   :  { %v2335_v44 = vadd.f32 %v2207_v10, %v2079_v46  ;;  %v2719_v39 = vadd.f32 %v2591_v43, %v2079_v46  ;;  %v2590_v11 = vmul.f32 -0.70710677, %v1460_v18  ;;  %v3103_v51 = vmul.f32 0.70710677, %v1844_v53  ;;  %v7571_v46 = vld [vmem:[#allocation35_spill] sm:$0xff]  ;;  %v3888_v43 = vld [vmem:[#allocation2 + $0x350] sm:$0xff] }
 0x28b   :  { %v3232_v13 = vadd.f32 %v3104_v56, %v2976_v50  ;;  %v3617_v7 = vadd.f32 %v3489_v30, %v2976_v50  ;;  %v3488_v3 = vmul.f32 -0.70710677, %v1844_v53  ;;  %v2334_v33 = vadd.f32 %v2206_v14, %v2078_v12  ;;  %v7572_v40 = vld [vmem:[#allocation39_spill] sm:$0xff] }
 0x28c   :  { %2463 = vst [vmem:[#allocation5 + $0xc08] sm:$0xff] %v2335_v44  ;;  %v2718_v35 = vadd.f32 %v2590_v11, %v2078_v12  ;;  %v3231_v24 = vadd.f32 %v3103_v51, %v2975_v17  ;;  %v1058_v61 = vmul.f32 -0.70710677, %v6554_v16  ;;  %v1259_v63 = vrot.slane %v6602_v29, 1  ;;  %v3886_v16 = vld [vmem:[#allocation2 + $0x330] sm:$0xff]  ;;  %v3887_v12 = vld [vmem:[#allocation2 + $0x358] sm:$0xff] }
 0x28d   :  { %2848 = vst [vmem:[#allocation5 + $0xc88] sm:$0xff] %v2719_v39  ;;  %v3616_v19 = vadd.f32 %v3488_v3, %v2975_v17  ;;  %v6630_v4 = vmul.f32 0.70710677, %v6602_v29  ;;  %v801_v36 = vmul.f32 0.70710677, %v6563_v38  ;;  %v6640_v49 = vsel %vm155_vm0, %v3886_v16, %v394_v8  ;;  %v7573_v11 = vld [vmem:[#allocation46_spill] sm:$0xff] }
 0x28e   :  { %3361 = vst [vmem:[#allocation5 + $0xd08] sm:$0xff] %v3232_v13  ;;  %v6634_v6 = vadd.f32 %v1058_v61, %v7570_v23  ;;  %v1057_v48 = vmul.f32 -0.70710677, %v6563_v38  ;;  %v800_v20 = vmul.f32 0.70710677, %v6569_v21  ;;  %v6647_v23 = vsel %vm155_vm0, %v3887_v12, %v404_v41 }
 0x28f   :  { %3746 = vst [vmem:[#allocation5 + $0xd88] sm:$0xff] %v3617_v7  ;;  %v929_v47 = vadd.f32 %v801_v36, %v7571_v46  ;;  %v1056_v50 = vmul.f32 -0.70710677, %v6569_v21  ;;  %v805_v60 = vmul.f32 0.70710677, %v6592_v45  ;;  %v6654_v18 = vsel %vm155_vm0, %v3888_v43, %v402_v34  ;;  %v400_v34 = vpop.permute.xlu0 %399 }
 0x290   :  { %2462 = vst [vmem:[#allocation5 + $0xc00] sm:$0xff] %v2334_v33  ;;  %v1644_v38 = vrot.slane %v6634_v6, 1  ;;  %v1185_v17 = vadd.f32 %v1057_v48, %v7571_v46  ;;  %v928_v10 = vadd.f32 %v800_v20, %v7572_v40  ;;  %v6657_v21 = vmul.f32 0.70710677, %v6634_v6 }
 0x291   :  { %2847 = vst [vmem:[#allocation5 + $0xc80] sm:$0xff] %v2718_v35  ;;  %v1251_v56 = vrot.slane %v929_v47, 1  ;;  %v2082_v30 = vmul.f32 0.70710677, %v929_v47  ;;  %v1184_v53 = vadd.f32 %v1056_v50, %v7572_v40  ;;  %v6661_v51 = vadd.f32 %v805_v60, %v7573_v11  ;;  %v3889_v40 = vld [vmem:[#allocation2 + $0x348] sm:$0xff] }
 0x292   :  { %3360 = vst [vmem:[#allocation5 + $0xd00] sm:$0xff] %v3231_v24  ;;  %v1636_v14 = vrot.slane %v1185_v17, 1  ;;  %v2979_v44 = vmul.f32 0.70710677, %v1185_v17  ;;  %v1243_v39 = vrot.slane %v928_v10, 1 }
 0x293   :  { %3745 = vst [vmem:[#allocation5 + $0xd80] sm:$0xff] %v3616_v19  ;;  %v1428_v13 = vsel %vm1341_vm1, %v1251_v56, %v1259_v63  ;;  %v1628_v7 = vrot.slane %v1184_v53, 1  ;;  %v2081_v3 = vmul.f32 0.70710677, %v928_v10  ;;  %v2978_v5 = vmul.f32 0.70710677, %v1184_v53 }
 0x294   :  { %v1812_v8 = vsel %vm1341_vm1, %v1636_v14, %v1644_v38  ;;  %v2210_v33 = vmul.f32 0.70710677, %v1428_v13  ;;  %v2594_v35 = vmul.f32 -0.70710677, %v1428_v13  ;;  %v1436_v24 = vsel %vm1341_vm1, %v1243_v39, %v1251_v56 }
 0x295   :  { %v3107_v61 = vmul.f32 0.70710677, %v1812_v8  ;;  %v3492_v41 = vmul.f32 -0.70710677, %v1812_v8  ;;  %v1444_v19 = vsel %vm1341_vm1, %v1235_v25, %v1243_v39  ;;  %v1820_v36 = vsel %vm1341_vm1, %v1628_v7, %v1636_v14 }
 0x296   :  { %v2338_v48 = vadd.f32 %v2210_v33, %v2082_v30  ;;  %v2722_v20 = vadd.f32 %v2594_v35, %v2082_v30  ;;  %v1828_v16 = vsel %vm1341_vm1, %v1620_v62, %v1628_v7  ;;  %v2208_v46 = vmul.f32 0.70710677, %v1444_v19  ;;  %v410_v33 = vpop.permute.xlu2 %409 }
 0x297   :  { %v3235_v47 = vadd.f32 %v3107_v61, %v2979_v44  ;;  %v3620_v50 = vadd.f32 %v3492_v41, %v2979_v44  ;;  %v2209_v60 = vmul.f32 0.70710677, %v1436_v24  ;;  %v2592_v12 = vmul.f32 -0.70710677, %v1444_v19  ;;  %v7574_v61 = vld [vmem:[#allocation37_spill] sm:$0xff] }
 0x298   :  { %2466 = vst [vmem:[#allocation5 + $0xc20] sm:$0xff] %v2338_v48  ;;  %v2336_v27 = vadd.f32 %v2208_v46, %v6575_v26  ;;  %v2593_v25 = vmul.f32 -0.70710677, %v1436_v24  ;;  %v3105_v17 = vmul.f32 0.70710677, %v1828_v16  ;;  %v6686_v10 = vsel %vm155_vm0, %v3889_v40, %v400_v34  ;;  %v7575_v48 = vld [vmem:[#allocation38_spill] sm:$0xff] }
 0x299   :  { %2851 = vst [vmem:[#allocation5 + $0xca0] sm:$0xff] %v2722_v20  ;;  %v2337_v55 = vadd.f32 %v2209_v60, %v2081_v3  ;;  %v3106_v43 = vmul.f32 0.70710677, %v1820_v36  ;;  %v3490_v56 = vmul.f32 -0.70710677, %v1828_v16  ;;  %v1283_v62 = vrot.slane %v6661_v51, 1 }
 0x29a   :  { %3364 = vst [vmem:[#allocation5 + $0xd20] sm:$0xff] %v3235_v47  ;;  %v2720_v30 = vadd.f32 %v2592_v12, %v6575_v26  ;;  %v2721_v53 = vadd.f32 %v2593_v25, %v2081_v3  ;;  %v3491_v14 = vmul.f32 -0.70710677, %v1820_v36  ;;  %v1061_v44 = vmul.f32 -0.70710677, %v6592_v45  ;;  %v3890_v20 = vld [vmem:[#allocation2 + $0x370] sm:$0xff] }
 0x29b   :  { %3749 = vst [vmem:[#allocation5 + $0xda0] sm:$0xff] %v3620_v50  ;;  %v3233_v39 = vadd.f32 %v3105_v17, %v6595_v42  ;;  %v3234_v13 = vadd.f32 %v3106_v43, %v2978_v5  ;;  %v6693_v7 = vmul.f32 0.70710677, %v6661_v51  ;;  %v804_v8 = vmul.f32 0.70710677, %v6625_v15 }
 0x29c   :  { %2464 = vst [vmem:[#allocation5 + $0xc10] sm:$0xff] %v2336_v27  ;;  %v3618_v35 = vadd.f32 %v3490_v56, %v6595_v42  ;;  %v6698_v24 = vadd.f32 %v1061_v44, %v7573_v11  ;;  %v1060_v26 = vmul.f32 -0.70710677, %v6625_v15  ;;  %v803_v45 = vmul.f32 0.70710677, %v6640_v49 }
 0x29d   :  { %2465 = vst [vmem:[#allocation5 + $0xc18] sm:$0xff] %v2337_v55  ;;  %v3619_v3 = vadd.f32 %v3491_v14, %v2978_v5  ;;  %v932_v41 = vadd.f32 %v804_v8, %v7574_v61  ;;  %v1059_v19 = vmul.f32 -0.70710677, %v6640_v49  ;;  %v808_v36 = vmul.f32 0.70710677, %v6647_v23 }
 0x29e   :  { %2849 = vst [vmem:[#allocation5 + $0xc90] sm:$0xff] %v2720_v30  ;;  %v1668_v34 = vrot.slane %v6698_v24, 1  ;;  %v1188_v42 = vadd.f32 %v1060_v26, %v7574_v61  ;;  %v931_v11 = vadd.f32 %v803_v45, %v7575_v48  ;;  %v6710_v15 = vsel %vm155_vm0, %v3890_v20, %v410_v33 }
 0x29f   :  { %2850 = vst [vmem:[#allocation5 + $0xc98] sm:$0xff] %v2721_v53  ;;  %v6713_v5 = vmul.f32 0.70710677, %v6698_v24  ;;  %v1275_v16 = vrot.slane %v932_v41, 1  ;;  %v2085_v49 = vmul.f32 0.70710677, %v932_v41  ;;  %v1187_v46 = vadd.f32 %v1059_v19, %v7575_v48 }
 0x2a0   :  { %3362 = vst [vmem:[#allocation5 + $0xd10] sm:$0xff] %v3233_v39  ;;  %v1660_v47 = vrot.slane %v1188_v42, 1  ;;  %v2982_v50 = vmul.f32 0.70710677, %v1188_v42  ;;  %v1267_v60 = vrot.slane %v931_v11, 1  ;;  %v6717_v12 = vadd.f32 %v808_v36, %v6035_v32  ;;  %v3891_v36 = vld [vmem:[#allocation2 + $0x368] sm:$0xff] }
 0x2a1   :  { %3363 = vst [vmem:[#allocation5 + $0xd18] sm:$0xff] %v3234_v13  ;;  %v1404_v27 = vsel %vm1341_vm1, %v1275_v16, %v1283_v62  ;;  %v1652_v25 = vrot.slane %v1187_v46, 1  ;;  %v2084_v17 = vmul.f32 0.70710677, %v931_v11  ;;  %v2981_v40 = vmul.f32 0.70710677, %v1187_v46  ;;  %v408_v13 = vpop.permute.xlu1 %407 }
 0x2a2   :  { %3747 = vst [vmem:[#allocation5 + $0xd90] sm:$0xff] %v3618_v35  ;;  %v1788_v55 = vsel %vm1341_vm1, %v1660_v47, %v1668_v34  ;;  %v2213_v43 = vmul.f32 0.70710677, %v1404_v27  ;;  %v2597_v56 = vmul.f32 -0.70710677, %v1404_v27  ;;  %v1412_v30 = vsel %vm1341_vm1, %v1267_v60, %v1275_v16 }
 0x2a3   :  { %3748 = vst [vmem:[#allocation5 + $0xd98] sm:$0xff] %v3619_v3  ;;  %v3110_v53 = vmul.f32 0.70710677, %v1788_v55  ;;  %v3495_v14 = vmul.f32 -0.70710677, %v1788_v55  ;;  %v1420_v44 = vsel %vm1341_vm1, %v1259_v63, %v1267_v60  ;;  %v1796_v39 = vsel %vm1341_vm1, %v1652_v25, %v1660_v47 }
 0x2a4   :  { %v2341_v8 = vadd.f32 %v2213_v43, %v2085_v49  ;;  %v2725_v33 = vadd.f32 %v2597_v56, %v2085_v49  ;;  %v1804_v35 = vsel %vm1341_vm1, %v1644_v38, %v1652_v25  ;;  %v2211_v26 = vmul.f32 0.70710677, %v1420_v44  ;;  %v406_v25 = vpop.permute.xlu0 %405  ;;  %v7576_v56 = vld [vmem:[#allocation40_spill] sm:$0xff] }
 0x2a5   :  { %v3238_v45 = vadd.f32 %v3110_v53, %v2982_v50  ;;  %v3623_v3 = vadd.f32 %v3495_v14, %v2982_v50  ;;  %v2212_v61 = vmul.f32 0.70710677, %v1412_v30  ;;  %v2595_v41 = vmul.f32 -0.70710677, %v1420_v44 }
 0x2a6   :  { %2469 = vst [vmem:[#allocation5 + $0xc38] sm:$0xff] %v2341_v8  ;;  %v2339_v29 = vadd.f32 %v2211_v26, %v6630_v4  ;;  %v2596_v63 = vmul.f32 -0.70710677, %v1412_v30  ;;  %v3108_v19 = vmul.f32 0.70710677, %v1804_v35  ;;  %v6742_v42 = vsel %vm155_vm0, %v3891_v36, %v408_v13  ;;  %v3892_v13 = vld [vmem:[#allocation2 + $0x360] sm:$0xff] }
 0x2a7   :  { %2854 = vst [vmem:[#allocation5 + $0xcb8] sm:$0xff] %v2725_v33  ;;  %v2340_v6 = vadd.f32 %v2212_v61, %v2084_v17  ;;  %v3109_v48 = vmul.f32 0.70710677, %v1796_v39  ;;  %v3493_v11 = vmul.f32 -0.70710677, %v1804_v35  ;;  %v1307_v38 = vrot.slane %v6717_v12, 1 }
 0x2a8   :  { %3367 = vst [vmem:[#allocation5 + $0xd38] sm:$0xff] %v3238_v45  ;;  %v2723_v20 = vadd.f32 %v2595_v41, %v6630_v4  ;;  %v2724_v16 = vadd.f32 %v2596_v63, %v2084_v17  ;;  %v3494_v49 = vmul.f32 -0.70710677, %v1796_v39  ;;  %v1064_v46 = vmul.f32 -0.70710677, %v6647_v23  ;;  %v7577_v39 = vld [vmem:[#allocation41_spill] sm:$0xff] }
 0x2a9   :  { %3752 = vst [vmem:[#allocation5 + $0xdb8] sm:$0xff] %v3623_v3  ;;  %v3236_v47 = vadd.f32 %v3108_v19, %v6657_v21  ;;  %v3237_v50 = vadd.f32 %v3109_v48, %v2981_v40  ;;  %v6749_v60 = vmul.f32 0.70710677, %v6717_v12  ;;  %v807_v27 = vmul.f32 0.70710677, %v6654_v18  ;;  %v7578_v3 = vld [vmem:[#allocation12_spill] sm:$0xff] }
 0x2aa   :  { %2467 = vst [vmem:[#allocation5 + $0xc28] sm:$0xff] %v2339_v29  ;;  %v3621_v55 = vadd.f32 %v3493_v11, %v6657_v21  ;;  %v6754_v43 = vadd.f32 %v1064_v46, %v6035_v32  ;;  %v1063_v4 = vmul.f32 -0.70710677, %v6654_v18  ;;  %v806_v23 = vmul.f32 0.70710677, %v6686_v10 }
 0x2ab   :  { %2468 = vst [vmem:[#allocation5 + $0xc30] sm:$0xff] %v2340_v6  ;;  %v3622_v17 = vadd.f32 %v3494_v49, %v2981_v40  ;;  %v935_v30 = vadd.f32 %v807_v27, %v7576_v56  ;;  %v1062_v53 = vmul.f32 -0.70710677, %v6686_v10  ;;  %v811_v14 = vmul.f32 0.70710677, %v6710_v15 }
 0x2ac   :  { %2852 = vst [vmem:[#allocation5 + $0xca8] sm:$0xff] %v2723_v20  ;;  %v1692_v44 = vrot.slane %v6754_v43, 1  ;;  %v1191_v21 = vadd.f32 %v1063_v4, %v7576_v56  ;;  %v934_v32 = vadd.f32 %v806_v23, %v7577_v39  ;;  %v6766_v18 = vsel %vm155_vm0, %v3892_v13, %v406_v25 }
 0x2ad   :  { %2853 = vst [vmem:[#allocation5 + $0xcb0] sm:$0xff] %v2724_v16  ;;  %v6769_v40 = vmul.f32 0.70710677, %v6754_v43  ;;  %v1299_v8 = vrot.slane %v935_v30, 1  ;;  %v2088_v10 = vmul.f32 0.70710677, %v935_v30  ;;  %v1190_v33 = vadd.f32 %v1062_v53, %v7577_v39 }
 0x2ae   :  { %3365 = vst [vmem:[#allocation5 + $0xd28] sm:$0xff] %v3236_v47  ;;  %v1684_v35 = vrot.slane %v1191_v21, 1  ;;  %v2985_v26 = vmul.f32 0.70710677, %v1191_v21  ;;  %v1291_v45 = vrot.slane %v934_v32, 1  ;;  %v6773_v61 = vadd.f32 %v811_v14, %v7578_v3  ;;  %v444_v47 = vpop.permute.xlu2 %443  ;;  %v3893_v53 = vld [vmem:[#allocation2 + $0x3f8] sm:$0xff] }
 0x2af   :  { %3366 = vst [vmem:[#allocation5 + $0xd30] sm:$0xff] %v3237_v50  ;;  %v1380_v41 = vsel %vm1341_vm1, %v1299_v8, %v1307_v38  ;;  %v1676_v29 = vrot.slane %v1190_v33, 1  ;;  %v2087_v63 = vmul.f32 0.70710677, %v934_v32  ;;  %v2984_v19 = vmul.f32 0.70710677, %v1190_v33 }
 0x2b0   :  { %3750 = vst [vmem:[#allocation5 + $0xda8] sm:$0xff] %v3621_v55  ;;  %v1764_v36 = vsel %vm1341_vm1, %v1684_v35, %v1692_v44  ;;  %v2216_v6 = vmul.f32 0.70710677, %v1380_v41  ;;  %v2600_v48 = vmul.f32 -0.70710677, %v1380_v41  ;;  %v1388_v11 = vsel %vm1341_vm1, %v1291_v45, %v1299_v8  ;;  %v414_v41 = vpop.permute.xlu1 %413 }
 0x2b1   :  { %3751 = vst [vmem:[#allocation5 + $0xdb0] sm:$0xff] %v3622_v17  ;;  %v3113_v20 = vmul.f32 0.70710677, %v1764_v36  ;;  %v3498_v16 = vmul.f32 -0.70710677, %v1764_v36  ;;  %v1396_v49 = vsel %vm1341_vm1, %v1283_v62, %v1291_v45  ;;  %v1772_v46 = vsel %vm1341_vm1, %v1676_v29, %v1684_v35 }
 0x2b2   :  { %v2344_v50 = vadd.f32 %v2216_v6, %v2088_v10  ;;  %v2728_v27 = vadd.f32 %v2600_v48, %v2088_v10  ;;  %v1780_v25 = vsel %vm1341_vm1, %v1668_v34, %v1676_v29  ;;  %v2214_v55 = vmul.f32 0.70710677, %v1396_v49  ;;  %v7579_v6 = vld [vmem:[#allocation44_spill] sm:$0xff] }
 0x2b3   :  { %v3241_v4 = vadd.f32 %v3113_v20, %v2985_v26  ;;  %v3626_v23 = vadd.f32 %v3498_v16, %v2985_v26  ;;  %v2215_v17 = vmul.f32 0.70710677, %v1388_v11  ;;  %v2598_v56 = vmul.f32 -0.70710677, %v1396_v49  ;;  %v7580_v49 = vld [vmem:[#allocation49_spill] sm:$0xff] }
 0x2b4   :  { %2472 = vst [vmem:[#allocation5 + $0xc50] sm:$0xff] %v2344_v50  ;;  %v2342_v51 = vadd.f32 %v2214_v55, %v6693_v7  ;;  %v2599_v62 = vmul.f32 -0.70710677, %v1388_v11  ;;  %v3111_v30 = vmul.f32 0.70710677, %v1780_v25  ;;  %v6798_v14 = vsel %vm155_vm0, %v3893_v53, %v444_v47 }
 0x2b5   :  { %2857 = vst [vmem:[#allocation5 + $0xcd0] sm:$0xff] %v2728_v27  ;;  %v2343_v24 = vadd.f32 %v2215_v17, %v2087_v63  ;;  %v3112_v21 = vmul.f32 0.70710677, %v1772_v46  ;;  %v3496_v39 = vmul.f32 -0.70710677, %v1780_v25  ;;  %v1331_v34 = vrot.slane %v6773_v61, 1 }
 0x2b6   :  { %3370 = vst [vmem:[#allocation5 + $0xd50] sm:$0xff] %v3241_v4  ;;  %v2726_v32 = vadd.f32 %v2598_v56, %v6693_v7  ;;  %v2727_v13 = vadd.f32 %v2599_v62, %v2087_v63  ;;  %v3497_v8 = vmul.f32 -0.70710677, %v1772_v46  ;;  %v1067_v10 = vmul.f32 -0.70710677, %v6710_v15  ;;  %v3894_v46 = vld [vmem:[#allocation2 + $0x380] sm:$0xff] }
 0x2b7   :  { %3755 = vst [vmem:[#allocation5 + $0xdd0] sm:$0xff] %v3626_v23  ;;  %v3239_v33 = vadd.f32 %v3111_v30, %v6713_v5  ;;  %v3240_v35 = vadd.f32 %v3112_v21, %v2984_v19  ;;  %v6805_v26 = vmul.f32 0.70710677, %v6773_v61  ;;  %v810_v45 = vmul.f32 0.70710677, %v6742_v42 }
 0x2b8   :  { %2470 = vst [vmem:[#allocation5 + $0xc40] sm:$0xff] %v2342_v51  ;;  %v3624_v29 = vadd.f32 %v3496_v39, %v6713_v5  ;;  %v6810_v36 = vadd.f32 %v1067_v10, %v7578_v3  ;;  %v1066_v7 = vmul.f32 -0.70710677, %v6742_v42  ;;  %v809_v15 = vmul.f32 0.70710677, %v6766_v18 }
 0x2b9   :  { %2471 = vst [vmem:[#allocation5 + $0xc48] sm:$0xff] %v2343_v24  ;;  %v3625_v63 = vadd.f32 %v3497_v8, %v2984_v19  ;;  %v938_v48 = vadd.f32 %v810_v45, %v7579_v6  ;;  %v1065_v11 = vmul.f32 -0.70710677, %v6766_v18  ;;  %v828_v20 = vmul.f32 0.70710677, %v6798_v14  ;;  %v412_v8 = vpop.permute.xlu0 %411 }
 0x2ba   :  { %2855 = vst [vmem:[#allocation5 + $0xcc0] sm:$0xff] %v2726_v32  ;;  %v1716_v16 = vrot.slane %v6810_v36, 1  ;;  %v1194_v5 = vadd.f32 %v1066_v7, %v7579_v6  ;;  %v937_v3 = vadd.f32 %v809_v15, %v7580_v49  ;;  %v557_v42 = vsel %vm155_vm0, %v3894_v46, %v414_v41  ;;  %v3895_v6 = vld [vmem:[#allocation2 + $0x378] sm:$0xff] }
 0x2bb   :  { %2856 = vst [vmem:[#allocation5 + $0xcc8] sm:$0xff] %v2727_v13  ;;  %v6823_v19 = vmul.f32 0.70710677, %v6810_v36  ;;  %v1323_v47 = vrot.slane %v938_v48, 1  ;;  %v2091_v50 = vmul.f32 0.70710677, %v938_v48  ;;  %v1193_v18 = vadd.f32 %v1065_v11, %v7580_v49 }
 0x2bc   :  { %3368 = vst [vmem:[#allocation5 + $0xd40] sm:$0xff] %v3239_v33  ;;  %v1708_v27 = vrot.slane %v1194_v5, 1  ;;  %v2988_v25 = vmul.f32 0.70710677, %v1194_v5  ;;  %v1315_v55 = vrot.slane %v937_v3, 1  ;;  %v6827_v4 = vadd.f32 %v828_v20, %v6173_v57 }
 0x2bd   :  { %3369 = vst [vmem:[#allocation5 + $0xd48] sm:$0xff] %v3240_v35  ;;  %v1356_v23 = vsel %vm1341_vm1, %v1323_v47, %v1331_v34  ;;  %v1700_v17 = vrot.slane %v1193_v18, 1  ;;  %v2090_v56 = vmul.f32 0.70710677, %v937_v3  ;;  %v2987_v51 = vmul.f32 0.70710677, %v1193_v18 }
 0x2be   :  { %3753 = vst [vmem:[#allocation5 + $0xdc0] sm:$0xff] %v3624_v29  ;;  %v1740_v62 = vsel %vm1341_vm1, %v1708_v27, %v1716_v16  ;;  %v2219_v30 = vmul.f32 0.70710677, %v1356_v23  ;;  %v2603_v53 = vmul.f32 -0.70710677, %v1356_v23  ;;  %v1364_v24 = vsel %vm1341_vm1, %v1315_v55, %v1323_v47  ;;  %v420_v47 = vpop.permute.xlu2 %419 }
 0x2bf   :  { %3754 = vst [vmem:[#allocation5 + $0xdc8] sm:$0xff] %v3625_v63  ;;  %v3116_v21 = vmul.f32 0.70710677, %v1740_v62  ;;  %v3501_v39 = vmul.f32 -0.70710677, %v1740_v62  ;;  %v1372_v32 = vsel %vm1341_vm1, %v1307_v38, %v1315_v55  ;;  %v1748_v13 = vsel %vm1341_vm1, %v1700_v17, %v1708_v27  ;;  %v7581_v62 = vld [vmem:[#allocation8_spill] sm:$0xff] }
 0x2c0   :  { %v2347_v10 = vadd.f32 %v2219_v30, %v2091_v50  ;;  %v2731_v33 = vadd.f32 %v2603_v53, %v2091_v50  ;;  %v1756_v35 = vsel %vm1341_vm1, %v1692_v44, %v1700_v17  ;;  %v2217_v45 = vmul.f32 0.70710677, %v1372_v32  ;;  %v3896_v53 = vld [vmem:[#allocation2 + $0x398] sm:$0xff] }
 0x2c1   :  { %v3244_v41 = vadd.f32 %v3116_v21, %v2988_v25  ;;  %v3629_v29 = vadd.f32 %v3501_v39, %v2988_v25  ;;  %v2218_v7 = vmul.f32 0.70710677, %v1364_v24  ;;  %v2601_v15 = vmul.f32 -0.70710677, %v1372_v32  ;;  %v418_v21 = vpop.permute.xlu1 %417 }
 0x2c2   :  { %2475 = vst [vmem:[#allocation5 + $0xc68] sm:$0xff] %v2347_v10  ;;  %v2345_v12 = vadd.f32 %v2217_v45, %v6749_v60  ;;  %v2602_v38 = vmul.f32 -0.70710677, %v1364_v24  ;;  %v3114_v63 = vmul.f32 0.70710677, %v1756_v35  ;;  %v556_v48 = vsel %vm155_vm0, %v3895_v6, %v412_v8 }
 0x2c3   :  { %2860 = vst [vmem:[#allocation5 + $0xce8] sm:$0xff] %v2731_v33  ;;  %v2346_v11 = vadd.f32 %v2218_v7, %v2090_v56  ;;  %v3115_v43 = vmul.f32 0.70710677, %v1748_v13  ;;  %v3499_v20 = vmul.f32 -0.70710677, %v1756_v35  ;;  %v1340_v44 = vrot.slane %v6827_v4, 1 }
 0x2c4   :  { %3373 = vst [vmem:[#allocation5 + $0xd68] sm:$0xff] %v3244_v41  ;;  %v2729_v5 = vadd.f32 %v2601_v15, %v6749_v60  ;;  %v2730_v49 = vadd.f32 %v2602_v38, %v2090_v56  ;;  %v3500_v3 = vmul.f32 -0.70710677, %v1748_v13  ;;  %v1084_v46 = vmul.f32 -0.70710677, %v6798_v14  ;;  %v3897_v41 = vld [vmem:[#allocation2 + $0x390] sm:$0xff] }
 0x2c5   :  { %3758 = vst [vmem:[#allocation5 + $0xde8] sm:$0xff] %v3629_v29  ;;  %v3242_v50 = vadd.f32 %v3114_v63, %v6769_v40  ;;  %v3243_v18 = vadd.f32 %v3115_v43, %v2987_v51  ;;  %v2109_v27 = vmul.f32 0.70710677, %v6827_v4  ;;  %v813_v25 = vmul.f32 0.70710677, %v557_v42 }
 0x2c6   :  { %2473 = vst [vmem:[#allocation5 + $0xc58] sm:$0xff] %v2345_v12  ;;  %v3627_v55 = vadd.f32 %v3499_v20, %v6769_v40  ;;  %v6859_v23 = vadd.f32 %v1084_v46, %v6173_v57  ;;  %v1069_v17 = vmul.f32 -0.70710677, %v557_v42  ;;  %v812_v60 = vmul.f32 0.70710677, %v556_v48  ;;  %v7582_v42 = vld [vmem:[#allocation15_spill] sm:$0xff] }
 0x2c7   :  { %2474 = vst [vmem:[#allocation5 + $0xc60] sm:$0xff] %v2346_v11  ;;  %v3628_v56 = vadd.f32 %v3500_v3, %v2987_v51  ;;  %v6862_v14 = vadd.f32 %v813_v25, %v7581_v62  ;;  %v1068_v30 = vmul.f32 -0.70710677, %v556_v48  ;;  %v560_v24 = vsel %vm155_vm0, %v3896_v53, %v420_v47 }
 0x2c8   :  { %2858 = vst [vmem:[#allocation5 + $0xcd8] sm:$0xff] %v2729_v5  ;;  %v1725_v39 = vrot.slane %v6859_v23, 1  ;;  %v3006_v40 = vmul.f32 0.70710677, %v6859_v23  ;;  %v6869_v57 = vadd.f32 %v1069_v17, %v7581_v62  ;;  %v940_v32 = vadd.f32 %v812_v60, %v7582_v42 }
 0x2c9   :  { %2859 = vst [vmem:[#allocation5 + $0xce0] sm:$0xff] %v2730_v49  ;;  %v1220_v51 = vrot.slane %v6862_v14, 1  ;;  %v6874_v13 = vmul.f32 0.70710677, %v6862_v14  ;;  %v1196_v8 = vadd.f32 %v1068_v30, %v7582_v42  ;;  %v816_v10 = vmul.f32 0.70710677, %v560_v24 }
 0x2ca   :  { %3371 = vst [vmem:[#allocation5 + $0xd58] sm:$0xff] %v3242_v50  ;;  %v1605_v33 = vrot.slane %v6869_v57, 1  ;;  %v6879_v35 = vmul.f32 0.70710677, %v6869_v57  ;;  %v1339_v45 = vrot.slane %v940_v32, 1  ;;  %v559_v29 = vsel %vm155_vm0, %v3897_v41, %v418_v21 }
 0x2cb   :  { %3372 = vst [vmem:[#allocation5 + $0xd60] sm:$0xff] %v3243_v18  ;;  %v1469_v7 = vsel %vm1341_vm1, %v1340_v44, %v1220_v51  ;;  %v1724_v15 = vrot.slane %v1196_v8, 1  ;;  %v2093_v12 = vmul.f32 0.70710677, %v940_v32  ;;  %v2990_v38 = vmul.f32 0.70710677, %v1196_v8  ;;  %v416_v18 = vpop.permute.xlu0 %415 }
 0x2cc   :  { %3756 = vst [vmem:[#allocation5 + $0xdd8] sm:$0xff] %v3627_v55  ;;  %v1597_v63 = vsel %vm188_vm2, %v6827_v4, %v1469_v7  ;;  %v1853_v6 = vsel %vm1341_vm1, %v1725_v39, %v1605_v33  ;;  %v1348_v48 = vsel %vm1341_vm1, %v1331_v34, %v1339_v45  ;;  %v1468_v11 = vsel %vm1341_vm1, %v1339_v45, %v1219_v54 }
 0x2cd   :  { %3757 = vst [vmem:[#allocation5 + $0xde0] sm:$0xff] %v3628_v56  ;;  %v1981_v43 = vsel %vm188_vm2, %v6859_v23, %v1853_v6  ;;  %v2237_v20 = vmul.f32 0.70710677, %v1597_v63  ;;  %v2621_v5 = vmul.f32 -0.70710677, %v1597_v63  ;;  %v1581_v49 = vsel %vm188_vm2, %v940_v32, %v1468_v11  ;;  %v426_v32 = vpop.permute.xlu2 %425 }
 0x2ce   :  { %v3134_v3 = vmul.f32 0.70710677, %v1981_v43  ;;  %v3519_v61 = vmul.f32 -0.70710677, %v1981_v43  ;;  %v1732_v52 = vsel %vm1341_vm1, %v1716_v16, %v1724_v15  ;;  %v1852_v54 = vsel %vm1341_vm1, %v1724_v15, %v1604_v58 }
 0x2cf   :  { %v2365_v34 = vadd.f32 %v2237_v20, %v2109_v27  ;;  %v2749_v46 = vadd.f32 %v2621_v5, %v2109_v27  ;;  %v1965_v47 = vsel %vm188_vm2, %v1196_v8, %v1852_v54  ;;  %v2220_v50 = vmul.f32 0.70710677, %v1348_v48 }
 0x2d0   :  { %v3262_v25 = vadd.f32 %v3134_v3, %v3006_v40  ;;  %v3647_v55 = vadd.f32 %v3519_v61, %v3006_v40  ;;  %v2221_v17 = vmul.f32 0.70710677, %v1581_v49  ;;  %v2604_v60 = vmul.f32 -0.70710677, %v1348_v48  ;;  %v3899_v48 = vld [vmem:[#allocation2 + $0x3b0] sm:$0xff] }
 0x2d1   :  { %2493 = vst [vmem:[#allocation5 + $0xe78] sm:$0xff] %v2365_v34  ;;  %v2348_v36 = vadd.f32 %v2220_v50, %v6805_v26  ;;  %v2605_v16 = vmul.f32 -0.70710677, %v1581_v49  ;;  %v3117_v56 = vmul.f32 0.70710677, %v1732_v52  ;;  %v6923_v28 = vadd.f32 %v816_v10, %v6245_v9 }
 0x2d2   :  { %2878 = vst [vmem:[#allocation5 + $0xef8] sm:$0xff] %v2749_v46  ;;  %v2349_v58 = vadd.f32 %v2221_v17, %v2093_v12  ;;  %v3118_v27 = vmul.f32 0.70710677, %v1965_v47  ;;  %v3502_v62 = vmul.f32 -0.70710677, %v1732_v52  ;;  %v558_v30 = vsel %vm155_vm0, %v3898_v1, %v416_v18 }
 0x2d3   :  { %3391 = vst [vmem:[#allocation5 + $0xf78] sm:$0xff] %v3262_v25  ;;  %v2732_v53 = vadd.f32 %v2604_v60, %v6805_v26  ;;  %v2733_v21 = vadd.f32 %v2605_v16, %v2093_v12  ;;  %v3503_v40 = vmul.f32 -0.70710677, %v1965_v47  ;;  %v1072_v42 = vmul.f32 -0.70710677, %v560_v24  ;;  %v424_v25 = vpop.permute.xlu1 %423 }
 0x2d4   :  { %3776 = vst [vmem:[#allocation5 + $0xff8] sm:$0xff] %v3647_v55  ;;  %v3245_v8 = vadd.f32 %v3117_v56, %v6823_v19  ;;  %v3246_v10 = vadd.f32 %v3118_v27, %v2990_v38  ;;  %v3630_v45 = vadd.f32 %v3502_v62, %v6823_v19  ;;  %v6931_v41 = vmul.f32 0.70710677, %v6923_v28 }
 0x2d5   :  { %2476 = vst [vmem:[#allocation5 + $0xc70] sm:$0xff] %v2348_v36  ;;  %v6934_v7 = vadd.f32 %v1072_v42, %v6245_v9  ;;  %v1244_v15 = vrot.slane %v6923_v28, 1  ;;  %v815_v26 = vmul.f32 0.70710677, %v559_v29  ;;  %v1071_v12 = vmul.f32 -0.70710677, %v559_v29 }
 0x2d6   :  { %2477 = vst [vmem:[#allocation5 + $0xc78] sm:$0xff] %v2349_v58  ;;  %v3631_v24 = vadd.f32 %v3503_v40, %v2990_v38  ;;  %v814_v63 = vmul.f32 0.70710677, %v558_v30  ;;  %v1070_v6 = vmul.f32 -0.70710677, %v558_v30  ;;  %v563_v11 = vsel %vm155_vm0, %v3899_v48, %v426_v32  ;;  %v7583_v9 = vld [vmem:[#allocation11_spill] sm:$0xff] }
 0x2d7   :  { %2861 = vst [vmem:[#allocation5 + $0xcf0] sm:$0xff] %v2732_v53  ;;  %v1629_v19 = vrot.slane %v6934_v7, 1  ;;  %v6941_v43 = vmul.f32 0.70710677, %v6934_v7  ;;  %v943_v20 = vadd.f32 %v815_v26, %v7583_v9  ;;  %v1199_v5 = vadd.f32 %v1071_v12, %v7583_v9  ;;  %v7584_v29 = vld [vmem:[#allocation13_spill] sm:$0xff] }
 0x2d8   :  { %2862 = vst [vmem:[#allocation5 + $0xcf8] sm:$0xff] %v2733_v21  ;;  %v942_v49 = vadd.f32 %v814_v63, %v7584_v29  ;;  %v1198_v38 = vadd.f32 %v1070_v6, %v7584_v29  ;;  %v819_v3 = vmul.f32 0.70710677, %v563_v11  ;;  %v1075_v61 = vmul.f32 -0.70710677, %v563_v11  ;;  %v3900_v63 = vld [vmem:[#allocation2 + $0x3a8] sm:$0xff] }
 0x2d9   :  { %3374 = vst [vmem:[#allocation5 + $0xd70] sm:$0xff] %v3245_v8  ;;  %v1236_v52 = vrot.slane %v943_v20, 1  ;;  %v1621_v54 = vrot.slane %v1199_v5, 1  ;;  %v2096_v34 = vmul.f32 0.70710677, %v943_v20  ;;  %v422_v8 = vpop.permute.xlu0 %421  ;;  %v562_v57 = vsel %vm155_vm0, %v3900_v63, %v424_v25  ;;  %v3901_v11 = vld [vmem:[#allocation2 + $0x3a0] sm:$0xff]  ;;  %v432_v20 = vpop.permute.xlu2 %431 }
 0x2da   :  { %3375 = vst [vmem:[#allocation5 + $0xd78] sm:$0xff] %v3246_v10  ;;  %v2993_v46 = vmul.f32 0.70710677, %v1199_v5  ;;  %v1228_v47 = vrot.slane %v942_v49, 1  ;;  %v1613_v50 = vrot.slane %v1198_v38, 1  ;;  %v6948_v18 = vadd.f32 %v819_v3, %v6307_v22 }
 0x2db   :  { %3759 = vst [vmem:[#allocation5 + $0xdf0] sm:$0xff] %v3630_v45  ;;  %v1445_v55 = vsel %vm1341_vm1, %v1236_v52, %v1244_v15  ;;  %v1829_v17 = vsel %vm1341_vm1, %v1621_v54, %v1629_v19  ;;  %v2095_v60 = vmul.f32 0.70710677, %v942_v49  ;;  %v2992_v36 = vmul.f32 0.70710677, %v1198_v38 }
 0x2dc   :  { %3760 = vst [vmem:[#allocation5 + $0xdf8] sm:$0xff] %v3631_v24  ;;  %v2224_v16 = vmul.f32 0.70710677, %v1445_v55  ;;  %v2608_v56 = vmul.f32 -0.70710677, %v1445_v55  ;;  %v1453_v58 = vsel %vm1341_vm1, %v1228_v47, %v1236_v52  ;;  %v1461_v27 = vsel %vm1341_vm1, %v1220_v51, %v1228_v47  ;;  %v7585_v55 = vld [vmem:[#allocation10_spill] sm:$0xff] }
 0x2dd   :  { %v3121_v62 = vmul.f32 0.70710677, %v1829_v17  ;;  %v3506_v1 = vmul.f32 -0.70710677, %v1829_v17  ;;  %v1837_v30 = vsel %vm1341_vm1, %v1613_v50, %v1621_v54  ;;  %v1845_v53 = vsel %vm1341_vm1, %v1605_v33, %v1613_v50  ;;  %v3902_v50 = vld [vmem:[#allocation2 + $0x3c8] sm:$0xff] }
 0x2de   :  { %v2352_v21 = vadd.f32 %v2224_v16, %v2096_v34  ;;  %v2736_v40 = vadd.f32 %v2608_v56, %v2096_v34  ;;  %v2222_v42 = vmul.f32 0.70710677, %v1461_v27  ;;  %v2223_v32 = vmul.f32 0.70710677, %v1453_v58 }
 0x2df   :  { %v3249_v10 = vadd.f32 %v3121_v62, %v2993_v46  ;;  %v3634_v14 = vadd.f32 %v3506_v1, %v2993_v46  ;;  %v2606_v45 = vmul.f32 -0.70710677, %v1461_v27  ;;  %v2607_v26 = vmul.f32 -0.70710677, %v1453_v58  ;;  %v7586_v1 = vld [vmem:[#allocation45_spill] sm:$0xff] }
 0x2e0   :  { %2480 = vst [vmem:[#allocation5 + $0xe10] sm:$0xff] %v2352_v21  ;;  %v2350_v51 = vadd.f32 %v2222_v42, %v6874_v13  ;;  %v3119_v12 = vmul.f32 0.70710677, %v1845_v53  ;;  %v3120_v24 = vmul.f32 0.70710677, %v1837_v30  ;;  %v2351_v33 = vadd.f32 %v2223_v32, %v2095_v60  ;;  %v3903_v21 = vld [vmem:[#allocation2 + $0x3c0] sm:$0xff] }
 0x2e1   :  { %2865 = vst [vmem:[#allocation5 + $0xe90] sm:$0xff] %v2736_v40  ;;  %v3504_v6 = vmul.f32 -0.70710677, %v1845_v53  ;;  %v3505_v48 = vmul.f32 -0.70710677, %v1837_v30  ;;  %v561_v9 = vsel %vm155_vm0, %v3901_v11, %v422_v8  ;;  %v2734_v5 = vadd.f32 %v2606_v45, %v6874_v13  ;;  %v428_v11 = vpop.permute.xlu0 %427 }
 0x2e2   :  { %3378 = vst [vmem:[#allocation5 + $0xf10] sm:$0xff] %v3249_v10  ;;  %v2735_v29 = vadd.f32 %v2607_v26, %v2095_v60  ;;  %v3247_v49 = vadd.f32 %v3119_v12, %v6879_v35  ;;  %v6978_v38 = vadd.f32 %v1075_v61, %v6307_v22  ;;  %v3248_v3 = vadd.f32 %v3120_v24, %v2992_v36  ;;  %v430_v61 = vpop.permute.xlu1 %429 }
 0x2e3   :  { %3763 = vst [vmem:[#allocation5 + $0xf90] sm:$0xff] %v3634_v14  ;;  %v1268_v52 = vrot.slane %v6948_v18, 1  ;;  %v6982_v54 = vmul.f32 0.70710677, %v6948_v18  ;;  %v818_v34 = vmul.f32 0.70710677, %v562_v57  ;;  %v3632_v46 = vadd.f32 %v3504_v6, %v6879_v35 }
 0x2e4   :  { %2478 = vst [vmem:[#allocation5 + $0xe00] sm:$0xff] %v2350_v51  ;;  %v6986_v47 = vmul.f32 0.70710677, %v6978_v38  ;;  %v1074_v13 = vmul.f32 -0.70710677, %v562_v57  ;;  %v566_v22 = vsel %vm155_vm0, %v3902_v50, %v432_v20  ;;  %v3633_v25 = vadd.f32 %v3505_v48, %v2992_v36 }
 0x2e5   :  { %2479 = vst [vmem:[#allocation5 + $0xe08] sm:$0xff] %v2351_v33  ;;  %v946_v17 = vadd.f32 %v818_v34, %v7585_v55  ;;  %v817_v60 = vmul.f32 0.70710677, %v561_v9  ;;  %v1073_v16 = vmul.f32 -0.70710677, %v561_v9  ;;  %v1653_v56 = vrot.slane %v6978_v38, 1 }
 0x2e6   :  { %2863 = vst [vmem:[#allocation5 + $0xe80] sm:$0xff] %v2734_v5  ;;  %v1202_v35 = vadd.f32 %v1074_v13, %v7585_v55  ;;  %v822_v58 = vmul.f32 0.70710677, %v566_v22  ;;  %v1078_v27 = vmul.f32 -0.70710677, %v566_v22  ;;  %v6997_v36 = vsel %vm155_vm0, %v3903_v21, %v430_v61  ;;  %v3904_v13 = vld [vmem:[#allocation2 + $0x3b8] sm:$0xff]  ;;  %v438_v22 = vpop.permute.xlu2 %437 }
 0x2e7   :  { %2864 = vst [vmem:[#allocation5 + $0xe88] sm:$0xff] %v2735_v29  ;;  %v1260_v62 = vrot.slane %v946_v17, 1  ;;  %v945_v30 = vadd.f32 %v817_v60, %v7586_v1  ;;  %v1201_v53 = vadd.f32 %v1073_v16, %v7586_v1  ;;  %v2099_v42 = vmul.f32 0.70710677, %v946_v17  ;;  %v3905_v1 = vld [vmem:[#allocation2 + $0x3e0] sm:$0xff] }
 0x2e8   :  { %3376 = vst [vmem:[#allocation5 + $0xf00] sm:$0xff] %v3247_v49  ;;  %v1645_v40 = vrot.slane %v1202_v35, 1  ;;  %v2996_v32 = vmul.f32 0.70710677, %v1202_v35  ;;  %v7000_v8 = vadd.f32 %v822_v58, %v6416_v2  ;;  %v7011_v63 = vadd.f32 %v1078_v27, %v6416_v2 }
 0x2e9   :  { %3377 = vst [vmem:[#allocation5 + $0xf08] sm:$0xff] %v3248_v3  ;;  %v1421_v10 = vsel %vm1341_vm1, %v1260_v62, %v1268_v52  ;;  %v1252_v14 = vrot.slane %v945_v30, 1  ;;  %v1637_v45 = vrot.slane %v1201_v53, 1  ;;  %v2098_v26 = vmul.f32 0.70710677, %v945_v30 }
 0x2ea   :  { %3761 = vst [vmem:[#allocation5 + $0xf80] sm:$0xff] %v3632_v46  ;;  %v1805_v51 = vsel %vm1341_vm1, %v1645_v40, %v1653_v56  ;;  %v2227_v12 = vmul.f32 0.70710677, %v1421_v10  ;;  %v2611_v24 = vmul.f32 -0.70710677, %v1421_v10  ;;  %v564_v50 = vsel %vm155_vm0, %v3904_v13, %v428_v11  ;;  %v436_v55 = vpop.permute.xlu1 %435 }
 0x2eb   :  { %3762 = vst [vmem:[#allocation5 + $0xf88] sm:$0xff] %v3633_v25  ;;  %v3124_v57 = vmul.f32 0.70710677, %v1805_v51  ;;  %v3509_v33 = vmul.f32 -0.70710677, %v1805_v51  ;;  %v1429_v6 = vsel %vm1341_vm1, %v1252_v14, %v1260_v62  ;;  %v1437_v48 = vsel %vm1341_vm1, %v1244_v15, %v1252_v14  ;;  %v7587_v51 = vld [vmem:[#allocation9_spill] sm:$0xff] }
 0x2ec   :  { %v2355_v9 = vadd.f32 %v2227_v12, %v2099_v42  ;;  %v2739_v20 = vadd.f32 %v2611_v24, %v2099_v42  ;;  %v1813_v5 = vsel %vm1341_vm1, %v1637_v45, %v1645_v40  ;;  %v1821_v2 = vsel %vm1341_vm1, %v1629_v19, %v1637_v45  ;;  %v3906_v40 = vld [vmem:[#allocation2 + $0x3d8] sm:$0xff] }
 0x2ed   :  { %v3252_v29 = vadd.f32 %v3124_v57, %v2996_v32  ;;  %v3637_v49 = vadd.f32 %v3509_v33, %v2996_v32  ;;  %v2225_v3 = vmul.f32 0.70710677, %v1437_v48  ;;  %v2226_v34 = vmul.f32 0.70710677, %v1429_v6 }
 0x2ee   :  { %2483 = vst [vmem:[#allocation5 + $0xe28] sm:$0xff] %v2355_v9  ;;  %v2609_v28 = vmul.f32 -0.70710677, %v1437_v48  ;;  %v2610_v46 = vmul.f32 -0.70710677, %v1429_v6  ;;  %v1292_v15 = vrot.slane %v7000_v8, 1  ;;  %v569_v30 = vsel %vm155_vm0, %v3905_v1, %v438_v22  ;;  %v434_v9 = vpop.permute.xlu0 %433 }
 0x2ef   :  { %2868 = vst [vmem:[#allocation5 + $0xea8] sm:$0xff] %v2739_v20  ;;  %v2353_v7 = vadd.f32 %v2225_v3, %v6931_v41  ;;  %v2354_v61 = vadd.f32 %v2226_v34, %v2098_v26  ;;  %v2995_v25 = vmul.f32 0.70710677, %v1201_v53  ;;  %v3122_v19 = vmul.f32 0.70710677, %v1821_v2 }
 0x2f0   :  { %3381 = vst [vmem:[#allocation5 + $0xf28] sm:$0xff] %v3252_v29  ;;  %v2737_v17 = vadd.f32 %v2609_v28, %v6931_v41  ;;  %v3123_v60 = vmul.f32 0.70710677, %v1813_v5  ;;  %v3507_v16 = vmul.f32 -0.70710677, %v1821_v2  ;;  %v1677_v35 = vrot.slane %v7011_v63, 1 }
 0x2f1   :  { %3766 = vst [vmem:[#allocation5 + $0xfa8] sm:$0xff] %v3637_v49  ;;  %v2738_v58 = vadd.f32 %v2610_v46, %v2098_v26  ;;  %v3508_v27 = vmul.f32 -0.70710677, %v1813_v5  ;;  %v7032_v62 = vmul.f32 0.70710677, %v7000_v8  ;;  %v3250_v53 = vadd.f32 %v3122_v19, %v6941_v43 }
 0x2f2   :  { %2481 = vst [vmem:[#allocation5 + $0xe18] sm:$0xff] %v2353_v7  ;;  %v7038_v21 = vmul.f32 0.70710677, %v7011_v63  ;;  %v821_v41 = vmul.f32 0.70710677, %v6997_v36  ;;  %v7043_v42 = vsel %vm155_vm0, %v3906_v40, %v436_v55  ;;  %v3251_v32 = vadd.f32 %v3123_v60, %v2995_v25 }
 0x2f3   :  { %2482 = vst [vmem:[#allocation5 + $0xe20] sm:$0xff] %v2354_v61  ;;  %v3635_v10 = vadd.f32 %v3507_v16, %v6941_v43  ;;  %v1077_v14 = vmul.f32 -0.70710677, %v6997_v36  ;;  %v820_v45 = vmul.f32 0.70710677, %v564_v50  ;;  %v3636_v26 = vadd.f32 %v3508_v27, %v2995_v25 }
 0x2f4   :  { %2866 = vst [vmem:[#allocation5 + $0xe98] sm:$0xff] %v2737_v17  ;;  %v949_v12 = vadd.f32 %v821_v41, %v7587_v51  ;;  %v1076_v24 = vmul.f32 -0.70710677, %v564_v50  ;;  %v825_v57 = vmul.f32 0.70710677, %v569_v30 }
 0x2f5   :  { %2867 = vst [vmem:[#allocation5 + $0xea0] sm:$0xff] %v2738_v58  ;;  %v1205_v33 = vadd.f32 %v1077_v14, %v7587_v51  ;;  %v948_v6 = vadd.f32 %v820_v45, %v6219_v0  ;;  %v1081_v48 = vmul.f32 -0.70710677, %v569_v30  ;;  %v824_v11 = vmul.f32 0.70710677, %v7043_v42  ;;  %v3907_v14 = vld [vmem:[#allocation2 + $0x3d0] sm:$0xff] }
 0x2f6   :  { %3379 = vst [vmem:[#allocation5 + $0xf18] sm:$0xff] %v3250_v53  ;;  %v1284_v43 = vrot.slane %v949_v12, 1  ;;  %v2102_v20 = vmul.f32 0.70710677, %v949_v12  ;;  %v1204_v36 = vadd.f32 %v1076_v24, %v6219_v0  ;;  %v7053_v5 = vadd.f32 %v825_v57, %v6481_v31  ;;  %v442_v53 = vpop.permute.xlu1 %441  ;;  %v3908_v51 = vld [vmem:[#allocation2 + $0x3f0] sm:$0xff]  ;;  %v440_v24 = vpop.permute.xlu0 %439 }
 0x2f7   :  { %3380 = vst [vmem:[#allocation5 + $0xf20] sm:$0xff] %v3251_v32  ;;  %v1669_v2 = vrot.slane %v1205_v33, 1  ;;  %v2999_v29 = vmul.f32 0.70710677, %v1205_v33  ;;  %v1276_v49 = vrot.slane %v948_v6, 1  ;;  %v7056_v3 = vadd.f32 %v1081_v48, %v6481_v31 }
 0x2f8   :  { %3764 = vst [vmem:[#allocation5 + $0xf98] sm:$0xff] %v3635_v10  ;;  %v1397_v34 = vsel %vm1341_vm1, %v1284_v43, %v1292_v15  ;;  %v1661_v28 = vrot.slane %v1204_v36, 1  ;;  %v2101_v46 = vmul.f32 0.70710677, %v948_v6  ;;  %v2998_v13 = vmul.f32 0.70710677, %v1204_v36 }
 0x2f9   :  { %3765 = vst [vmem:[#allocation5 + $0xfa0] sm:$0xff] %v3636_v26  ;;  %v1781_v0 = vsel %vm1341_vm1, %v1669_v2, %v1677_v35  ;;  %v2230_v50 = vmul.f32 0.70710677, %v1397_v34  ;;  %v2614_v22 = vmul.f32 -0.70710677, %v1397_v34  ;;  %v1405_v31 = vsel %vm1341_vm1, %v1276_v49, %v1284_v43  ;;  %v7588_v43 = vld [vmem:[#allocation48_spill] sm:$0xff] }
 0x2fa   :  { %v3127_v7 = vmul.f32 0.70710677, %v1781_v0  ;;  %v3512_v61 = vmul.f32 -0.70710677, %v1781_v0  ;;  %v1413_v25 = vsel %vm1341_vm1, %v1268_v52, %v1276_v49  ;;  %v1789_v19 = vsel %vm1341_vm1, %v1661_v28, %v1669_v2  ;;  %v3909_v34 = vld [vmem:[#allocation2 + $0x3e8] sm:$0xff] }
 0x2fb   :  { %v2358_v55 = vadd.f32 %v2230_v50, %v2102_v20  ;;  %v2742_v17 = vadd.f32 %v2614_v22, %v2102_v20  ;;  %v1797_v60 = vsel %vm1341_vm1, %v1653_v56, %v1661_v28  ;;  %v2228_v16 = vmul.f32 0.70710677, %v1413_v25 }
 0x2fc   :  { %v3255_v58 = vadd.f32 %v3127_v7, %v2999_v29  ;;  %v3640_v27 = vadd.f32 %v3512_v61, %v2999_v29  ;;  %v2229_v1 = vmul.f32 0.70710677, %v1405_v31  ;;  %v2612_v30 = vmul.f32 -0.70710677, %v1413_v25 }
 0x2fd   :  { %2486 = vst [vmem:[#allocation5 + $0xe40] sm:$0xff] %v2358_v55  ;;  %v2356_v18 = vadd.f32 %v2228_v16, %v6982_v54  ;;  %v2613_v52 = vmul.f32 -0.70710677, %v1405_v31  ;;  %v3125_v41 = vmul.f32 0.70710677, %v1797_v60  ;;  %v567_v38 = vsel %vm155_vm0, %v3907_v14, %v434_v9 }
 0x2fe   :  { %2871 = vst [vmem:[#allocation5 + $0xec0] sm:$0xff] %v2742_v17  ;;  %v2357_v40 = vadd.f32 %v2229_v1, %v2101_v46  ;;  %v3126_v32 = vmul.f32 0.70710677, %v1789_v19  ;;  %v3510_v10 = vmul.f32 -0.70710677, %v1797_v60  ;;  %v2740_v56 = vadd.f32 %v2612_v30, %v6982_v54 }
 0x2ff   :  { %3384 = vst [vmem:[#allocation5 + $0xf40] sm:$0xff] %v3255_v58  ;;  %v3511_v45 = vmul.f32 -0.70710677, %v1789_v19  ;;  %v1316_v26 = vrot.slane %v7053_v5, 1  ;;  %v571_v12 = vsel %vm155_vm0, %v3908_v51, %v442_v53  ;;  %v2741_v57 = vadd.f32 %v2613_v52, %v2101_v46 }
 0x300   :  { %3769 = vst [vmem:[#allocation5 + $0xfc0] sm:$0xff] %v3640_v27  ;;  %v3253_v33 = vadd.f32 %v3125_v41, %v6986_v47  ;;  %v3254_v6 = vadd.f32 %v3126_v32, %v2998_v13  ;;  %v1701_v48 = vrot.slane %v7056_v3, 1  ;;  %v3638_v9 = vadd.f32 %v3510_v10, %v6986_v47  ;;  %v7589_v47 = vld [vmem:[#allocation17_spill] sm:$0xff] }
 0x301   :  { %2484 = vst [vmem:[#allocation5 + $0xe30] sm:$0xff] %v2356_v18  ;;  %v952_v54 = vadd.f32 %v824_v11, %v7588_v43  ;;  %v1080_v20 = vmul.f32 -0.70710677, %v7043_v42  ;;  %v823_v36 = vmul.f32 0.70710677, %v567_v38  ;;  %v3639_v2 = vadd.f32 %v3511_v45, %v2998_v13  ;;  %v7590_v11 = vld [vmem:[#allocation18_spill] sm:$0xff] }
 0x302   :  { %2485 = vst [vmem:[#allocation5 + $0xe38] sm:$0xff] %v2357_v40  ;;  %v1079_v29 = vmul.f32 -0.70710677, %v567_v38  ;;  %v827_v49 = vmul.f32 0.70710677, %v571_v12  ;;  %v7092_v28 = vsel %vm155_vm0, %v3909_v34, %v440_v24 }
 0x303   :  { %2869 = vst [vmem:[#allocation5 + $0xeb0] sm:$0xff] %v2740_v56  ;;  %v1208_v46 = vadd.f32 %v1080_v20, %v7588_v43  ;;  %v1308_v0 = vrot.slane %v952_v54, 1  ;;  %v2105_v50 = vmul.f32 0.70710677, %v952_v54  ;;  %v951_v22 = vadd.f32 %v823_v36, %v7589_v47 }
 0x304   :  { %2870 = vst [vmem:[#allocation5 + $0xeb8] sm:$0xff] %v2741_v57  ;;  %v1207_v42 = vadd.f32 %v1079_v29, %v7589_v47  ;;  %v7098_v31 = vadd.f32 %v827_v49, %v7590_v11  ;;  %v1083_v13 = vmul.f32 -0.70710677, %v571_v12  ;;  %v826_v7 = vmul.f32 0.70710677, %v7092_v28  ;;  %v7591_v49 = vld [vmem:[#allocation20_spill] sm:$0xff] }
 0x305   :  { %3382 = vst [vmem:[#allocation5 + $0xf30] sm:$0xff] %v3253_v33  ;;  %v1373_v37 = vsel %vm1341_vm1, %v1308_v0, %v1316_v26  ;;  %v1693_v61 = vrot.slane %v1208_v46, 1  ;;  %v3002_v25 = vmul.f32 0.70710677, %v1208_v46  ;;  %v1300_v19 = vrot.slane %v951_v22, 1 }
 0x306   :  { %3383 = vst [vmem:[#allocation5 + $0xf38] sm:$0xff] %v3254_v6  ;;  %v2233_v55 = vmul.f32 0.70710677, %v1373_v37  ;;  %v2617_v17 = vmul.f32 -0.70710677, %v1373_v37  ;;  %v1685_v60 = vrot.slane %v1207_v42, 1  ;;  %v7106_v16 = vadd.f32 %v1083_v13, %v7590_v11 }
 0x307   :  { %3767 = vst [vmem:[#allocation5 + $0xfb0] sm:$0xff] %v3638_v9  ;;  %v1757_v58 = vsel %vm1341_vm1, %v1693_v61, %v1701_v48  ;;  %v1381_v27 = vsel %vm1341_vm1, %v1300_v19, %v1308_v0  ;;  %v1389_v1 = vsel %vm1341_vm1, %v1292_v15, %v1300_v19  ;;  %v2104_v30 = vmul.f32 0.70710677, %v951_v22 }
 0x308   :  { %3768 = vst [vmem:[#allocation5 + $0xfb8] sm:$0xff] %v3639_v2  ;;  %v2361_v53 = vadd.f32 %v2233_v55, %v2105_v50  ;;  %v2745_v18 = vadd.f32 %v2617_v17, %v2105_v50  ;;  %v3130_v52 = vmul.f32 0.70710677, %v1757_v58  ;;  %v3515_v41 = vmul.f32 -0.70710677, %v1757_v58 }
 0x309   :  { %v1765_v40 = vsel %vm1341_vm1, %v1685_v60, %v1693_v61  ;;  %v1773_v32 = vsel %vm1341_vm1, %v1677_v35, %v1685_v60  ;;  %v2231_v10 = vmul.f32 0.70710677, %v1389_v1  ;;  %v2232_v14 = vmul.f32 0.70710677, %v1381_v27 }
 0x30a   :  { %2489 = vst [vmem:[#allocation5 + $0xe58] sm:$0xff] %v2361_v53  ;;  %v3258_v8 = vadd.f32 %v3130_v52, %v3002_v25  ;;  %v3643_v38 = vadd.f32 %v3515_v41, %v3002_v25  ;;  %v2615_v15 = vmul.f32 -0.70710677, %v1389_v1  ;;  %v2616_v56 = vmul.f32 -0.70710677, %v1381_v27 }
 0x30b   :  { %2874 = vst [vmem:[#allocation5 + $0xed8] sm:$0xff] %v2745_v18  ;;  %v2359_v45 = vadd.f32 %v2231_v10, %v7032_v62  ;;  %v2360_v51 = vadd.f32 %v2232_v14, %v2104_v30  ;;  %v3001_v12 = vmul.f32 0.70710677, %v1207_v42  ;;  %v3128_v24 = vmul.f32 0.70710677, %v1773_v32 }
 0x30c   :  { %3387 = vst [vmem:[#allocation5 + $0xf58] sm:$0xff] %v3258_v8  ;;  %v2743_v57 = vadd.f32 %v2615_v15, %v7032_v62  ;;  %v3129_v63 = vmul.f32 0.70710677, %v1765_v40  ;;  %v3513_v33 = vmul.f32 -0.70710677, %v1773_v32  ;;  %v2744_v35 = vadd.f32 %v2616_v56, %v2104_v30 }
 0x30d   :  { %3772 = vst [vmem:[#allocation5 + $0xfd8] sm:$0xff] %v3643_v38  ;;  %v3514_v6 = vmul.f32 -0.70710677, %v1765_v40  ;;  %v1332_v9 = vrot.slane %v7098_v31, 1  ;;  %v1717_v43 = vrot.slane %v7106_v16, 1  ;;  %v3256_v20 = vadd.f32 %v3128_v24, %v7038_v21 }
 0x30e   :  { %v2106_v54 = vmul.f32 0.70710677, %v7053_v5  ;;  %2487 = vst [vmem:[#allocation5 + $0xe48] sm:$0xff] %v2359_v45  ;;  %v3257_v36 = vadd.f32 %v3129_v63, %v3001_v12  ;;  %v2108_v29 = vmul.f32 0.70710677, %v7098_v31  ;;  %v954_v34 = vadd.f32 %v826_v7, %v7591_v49 }
 0x30f   :  { %2488 = vst [vmem:[#allocation5 + $0xe50] sm:$0xff] %v2360_v51  ;;  %v1349_v62 = vsel %vm1341_vm1, %v1332_v9, %v1340_v44  ;;  %v1733_v2 = vsel %vm1341_vm1, %v1717_v43, %v1725_v39  ;;  %v3641_v46 = vadd.f32 %v3513_v33, %v7038_v21  ;;  %v3642_v47 = vadd.f32 %v3514_v6, %v3001_v12 }
 0x310   :  { %2872 = vst [vmem:[#allocation5 + $0xec8] sm:$0xff] %v2743_v57  ;;  %v2236_v0 = vmul.f32 0.70710677, %v1349_v62  ;;  %v2620_v50 = vmul.f32 -0.70710677, %v1349_v62  ;;  %v1324_v42 = vrot.slane %v954_v34, 1 }
 0x311   :  { %2873 = vst [vmem:[#allocation5 + $0xed0] sm:$0xff] %v2744_v35  ;;  %v3133_v4 = vmul.f32 0.70710677, %v1733_v2  ;;  %v3518_v22 = vmul.f32 -0.70710677, %v1733_v2 }
 0x312   :  { %3385 = vst [vmem:[#allocation5 + $0xf48] sm:$0xff] %v3256_v20  ;;  %v2364_v44 = vadd.f32 %v2236_v0, %v2108_v29  ;;  %v3005_v23 = vmul.f32 0.70710677, %v7106_v16  ;;  %v1082_v39 = vmul.f32 -0.70710677, %v7092_v28  ;;  %v2748_v11 = vadd.f32 %v2620_v50, %v2108_v29 }
 0x313   :  { %3386 = vst [vmem:[#allocation5 + $0xf50] sm:$0xff] %v3257_v36  ;;  %v1357_v31 = vsel %vm1341_vm1, %v1324_v42, %v1332_v9  ;;  %v1365_v21 = vsel %vm1341_vm1, %v1316_v26, %v1324_v42  ;;  %v2107_v13 = vmul.f32 0.70710677, %v954_v34  ;;  %v3003_v16 = vmul.f32 0.70710677, %v7056_v3 }
 0x314   :  { %3770 = vst [vmem:[#allocation5 + $0xfc8] sm:$0xff] %v3641_v46  ;;  %v3261_v7 = vadd.f32 %v3133_v4, %v3005_v23  ;;  %v1210_v37 = vadd.f32 %v1082_v39, %v7591_v49  ;;  %v2234_v61 = vmul.f32 0.70710677, %v1365_v21  ;;  %v2235_v25 = vmul.f32 0.70710677, %v1357_v31 }
 0x315   :  { %3771 = vst [vmem:[#allocation5 + $0xfd0] sm:$0xff] %v3642_v47  ;;  %v3646_v19 = vadd.f32 %v3518_v22, %v3005_v23  ;;  %v2618_v28 = vmul.f32 -0.70710677, %v1365_v21  ;;  %v2619_v55 = vmul.f32 -0.70710677, %v1357_v31 }
 0x316   :  { %2492 = vst [vmem:[#allocation5 + $0xe70] sm:$0xff] %v2364_v44  ;;  %v1709_v17 = vrot.slane %v1210_v37, 1  ;;  %v2362_v60 = vadd.f32 %v2234_v61, %v2106_v54  ;;  %v2363_v5 = vadd.f32 %v2235_v25, %v2107_v13  ;;  %v3004_v1 = vmul.f32 0.70710677, %v1210_v37 }
 0x317   :  { %2877 = vst [vmem:[#allocation5 + $0xef0] sm:$0xff] %v2748_v11  ;;  %v2746_v27 = vadd.f32 %v2618_v28, %v2106_v54  ;;  %v2747_v30 = vadd.f32 %v2619_v55, %v2107_v13 }
 0x318   :  { %3390 = vst [vmem:[#allocation5 + $0xf70] sm:$0xff] %v3261_v7  ;;  %v1741_v26 = vsel %vm1341_vm1, %v1709_v17, %v1717_v43  ;;  %v1749_v58 = vsel %vm1341_vm1, %v1701_v48, %v1709_v17 }
 0x319   :  { %3775 = vst [vmem:[#allocation5 + $0xff0] sm:$0xff] %v3646_v19  ;;  %v3131_v53 = vmul.f32 0.70710677, %v1749_v58  ;;  %v3132_v18 = vmul.f32 0.70710677, %v1741_v26 }
 0x31a   :  { %2490 = vst [vmem:[#allocation5 + $0xe60] sm:$0xff] %v2362_v60  ;;  %v3516_v52 = vmul.f32 -0.70710677, %v1749_v58  ;;  %v3517_v41 = vmul.f32 -0.70710677, %v1741_v26 }
 0x31b   :  { %2491 = vst [vmem:[#allocation5 + $0xe68] sm:$0xff] %v2363_v5  ;;  %v3259_v40 = vadd.f32 %v3131_v53, %v3003_v16  ;;  %v3260_v32 = vadd.f32 %v3132_v18, %v3004_v1 }
 0x31c   :  { %2875 = vst [vmem:[#allocation5 + $0xee0] sm:$0xff] %v2746_v27  ;;  %v3644_v10 = vadd.f32 %v3516_v52, %v3003_v16  ;;  %v3645_v59 = vadd.f32 %v3517_v41, %v3004_v1 }
 0x31d   :  { %2876 = vst [vmem:[#allocation5 + $0xee8] sm:$0xff] %v2747_v30 }
 0x31e   :  { %3388 = vst [vmem:[#allocation5 + $0xf60] sm:$0xff] %v3259_v40 }
 0x31f   :  { %3389 = vst [vmem:[#allocation5 + $0xf68] sm:$0xff] %v3260_v32 }
 0x320   :  { %3773 = vst [vmem:[#allocation5 + $0xfe0] sm:$0xff] %v3644_v10 }
 0x321   :  { %3774 = vst [vmem:[#allocation5 + $0xfe8] sm:$0xff] %v3645_v59 }
 0x322   :  { %3789 = dma.vmem_to_hbm [thread:$0]  %s3782_s14, 65536, %s3784_s17, [#allocation4], %s3963_s11, %s3963_s11, %s3964_s12  }
 0x323   :  { %3960 = dma.done.wait [#allocation4], 65536  }
 0x324   :  { %3961 = vsyncadd [#allocation4], 4294901760 }
 0x325   :  { %3794 = vsyncpa [#allocation3], 1 }
 0x326   :  { %3795 = vsyncpa [#allocation4], 1 }

</bundles_post_ra>
